<compile_context>
chip_gen: v6e
topology: v6e:2x2x1
jax: 0.10.0
libtpu: 0.0.40
codegen_flags: <defaults>
</compile_context>

<pallas_src>
import functools

import jax
import jax.numpy as jnp
from jax import lax
from jax.experimental import pallas as pl
from jax.experimental.pallas import tpu as pltpu


# ---------------------------------------------------------------------------
# Fused forward kernel
#   refs (inputs):
#     we      : [N, We]          word embeddings, N = T*B (row n = t*B + b)
#     xc      : [L*N, K*C]       im2col char windows, row = t_char*N + n
#     cw      : [K*C, O]         conv weight (reshaped from [K, C, O])
#     cb      : [1, O]           conv bias
#     per layer l: wih [2, I_l, 4H], whh [2, H, 4H], b [2, 1, 4H]   (dir 0=fwd, 1=bwd)
#     fcw     : [2H, Dout]
#     fcb     : [1, Dout]
#   output:
#     out     : [N, Dout]
# ---------------------------------------------------------------------------
def postagger_kernel(*refs, T, B, H, L, n_layers):
    we_ref, xc_ref, cw_ref, cb_ref = refs[:4]
    lstm_refs = refs[4:4 + 3 * n_layers]
    fcw_ref = refs[4 + 3 * n_layers]
    fcb_ref = refs[5 + 3 * n_layers]
    out_ref = refs[6 + 3 * n_layers]
    N = T * B

    # ---- char CNN: one im2col matmul, max over time, bias added once ----
    conv = jnp.dot(xc_ref[...], cw_ref[...],
                   preferred_element_type=jnp.float32)            # [L*N, O]
    acc = conv[0:N, :]
    for t in range(1, L):
        acc = jnp.maximum(acc, conv[t * N:(t + 1) * N, :])
    char_feat = acc + cb_ref[...]                                  # [N, O]

    full = jnp.concatenate([we_ref[...], char_feat], axis=-1)      # [N, We+O]
    xs = [full[t * B:(t + 1) * B, :] for t in range(T)]            # T x [B, We+O]

    # ---- LSTM cell (PyTorch gate order i, f, g, o; bias = b_ih + b_hh) ----
    def lstm_cell(x, h, c, wih, whh, b):
        g = jnp.dot(x, wih, preferred_element_type=jnp.float32) + b
        if h is not None:  # skip whh @ 0 on the first step
            g = g + jnp.dot(h, whh, preferred_element_type=jnp.float32)
        i = jax.nn.sigmoid(g[:, 0 * H:1 * H])
        f = jax.nn.sigmoid(g[:, 1 * H:2 * H])
        gg = jnp.tanh(g[:, 2 * H:3 * H])
        o = jax.nn.sigmoid(g[:, 3 * H:4 * H])
        c_new = i * gg if c is None else f * c + i * gg
        h_new = o * jnp.tanh(c_new)
        return h_new, c_new

    # ---- biLSTM layers: fwd + bwd fused in one unrolled time loop ----
    for l in range(n_layers):
        wih_ref, whh_ref, b_ref = lstm_refs[3 * l:3 * l + 3]
        wih_f, wih_b = wih_ref[0], wih_ref[1]
        whh_f, whh_b = whh_ref[0], whh_ref[1]
        bf, bb = b_ref[0], b_ref[1]

        hf = cf = hb = cb = None
        outs_f = [None] * T
        outs_b = [None] * T
        for t in range(T):
            hf, cf = lstm_cell(xs[t], hf, cf, wih_f, whh_f, bf)
            outs_f[t] = hf
            tb = T - 1 - t
            hb, cb = lstm_cell(xs[tb], hb, cb, wih_b, whh_b, bb)
            outs_b[tb] = hb
        xs = [jnp.concatenate([outs_f[t], outs_b[t]], axis=-1) for t in range(T)]

    # ---- final Linear fused into the epilogue ----
    feat = jnp.concatenate(xs, axis=0)                             # [N, 2H]
    out_ref[...] = (jnp.dot(feat, fcw_ref[...],
                            preferred_element_type=jnp.float32) + fcb_ref[...])


def _full_spec(shape):
    nd = len(shape)
    return pl.BlockSpec(shape, lambda i, nd=nd: (0,) * nd)


# ---------------------------------------------------------------------------
# Parameter init (deterministic, synthetic; weights already in kernel layout)
# ---------------------------------------------------------------------------
def init_params(key, cfg):
    We, C = cfg["word_embedding_dim"], cfg["char_embedding_dim"]
    K, O = cfg["kernel_size"], cfg["kernel_num"]
    H = cfg["lstm_hidden_dim"]
    ks = jax.random.split(key, 7)

    word_emb = 0.1 * jax.random.normal(ks[0], (cfg["word_vocab_size"], We), jnp.float32)
    word_emb = word_emb.at[cfg["word_pad_idx"]].set(0.0)
    char_emb = 0.1 * jax.random.normal(ks[1], (cfg["char_vocab_size"], C), jnp.float32)
    char_emb = char_emb.at[cfg["char_pad_idx"]].set(0.0)

    # NOTE: layouts are pre-transposed vs. real PyTorch checkpoints
    # (conv [K,C,O] vs [O,C,K]; wih [I,4H] vs [4H,I]); loading real weights needs a permute.
    conv_w = jax.random.normal(ks[2], (K, C, O), jnp.float32) * float(1.0 / (C * K) ** 0.5)
    conv_b = 0.01 * jax.random.normal(ks[3], (1, O), jnp.float32)

    scale = float(1.0 / H ** 0.5)
    lstm = []
    lk = jax.random.split(ks[4], cfg["lstm_n_layers"] * 6)
    in_dim = We + O
    for l in range(cfg["lstm_n_layers"]):
        b6 = l * 6
        lstm.append(dict(
            wih_f=jax.random.uniform(lk[b6 + 0], (in_dim, 4 * H), jnp.float32, -scale, scale),
            whh_f=jax.random.uniform(lk[b6 + 1], (H, 4 * H), jnp.float32, -scale, scale),
            b_f=jax.random.uniform(lk[b6 + 2], (1, 4 * H), jnp.float32, -scale, scale),
            wih_b=jax.random.uniform(lk[b6 + 3], (in_dim, 4 * H), jnp.float32, -scale, scale),
            whh_b=jax.random.uniform(lk[b6 + 4], (H, 4 * H), jnp.float32, -scale, scale),
            b_b=jax.random.uniform(lk[b6 + 5], (1, 4 * H), jnp.float32, -scale, scale),
        ))
        in_dim = 2 * H

    fc_w = jax.random.uniform(ks[5], (2 * H, cfg["lstm_output_dim"]), jnp.float32, -scale, scale)
    fc_b = jax.random.uniform(ks[6], (1, cfg["lstm_output_dim"]), jnp.float32, -scale, scale)
    return dict(word_emb=word_emb, char_emb=char_emb, conv_w=conv_w, conv_b=conv_b,
                lstm=lstm, fc_w=fc_w, fc_b=fc_b)


# ---------------------------------------------------------------------------
# Forward pass: XLA glue = embedding gathers + pad + im2col layout; one kernel.
# TODO(synk): embedding gathers / im2col window build stay in XLA glue
# (data-dependent gather is not lowered inside the kernel).
# ---------------------------------------------------------------------------
def pallas_forward(params, words, chars, cfg):
    We = cfg["word_embedding_dim"]
    C = cfg["char_embedding_dim"]
    K = cfg["kernel_size"]
    O = cfg["kernel_num"]
    H = cfg["lstm_hidden_dim"]
    Dout = cfg["lstm_output_dim"]
    NL = cfg["lstm_n_layers"]
    T, B = words.shape
    L = chars.shape[2]
    N = T * B

    # dropout == identity at inference
    we = jnp.take(params["word_emb"], words, axis=0).reshape(N, We)          # [N, We]
    ce = jnp.take(params["char_emb"], chars, axis=0).reshape(N, L, C)        # [N, L, C]
    pad = (K - 1) // 2
    xp = jnp.pad(ce, ((0, 0), (pad, pad), (0, 0)))                           # [N, L+2p, C]

    # im2col windows, rows ordered (t_char, n) so the kernel max-over-time is
    # contiguous full-tile row slices.
    widx = jnp.arange(L)[:, None] + jnp.arange(K)[None, :]                   # [L, K]
    win = xp[:, widx, :]                                                     # [N, L, K, C]
    xc = jnp.transpose(win, (1, 0, 2, 3)).reshape(L * N, K * C)              # [L*N, K*C]
    cw2 = params["conv_w"].reshape(K * C, O)                                 # [K*C, O]

    lstm_args = []
    for l in range(NL):
        p = params["lstm"][l]
        lstm_args += [jnp.stack([p["wih_f"], p["wih_b"]]),
                      jnp.stack([p["whh_f"], p["whh_b"]]),
                      jnp.stack([p["b_f"], p["b_b"]])]

    args = [we, xc, cw2, params["conv_b"]] + lstm_args + [params["fc_w"], params["fc_b"]]

    kernel = functools.partial(postagger_kernel, T=T, B=B, H=H, L=L, n_layers=NL)
    out = pl.pallas_call(
        kernel,
        out_shape=jax.ShapeDtypeStruct((N, Dout), jnp.float32),
        grid_spec=pl.GridSpec(
            grid=(1,),
            in_specs=[_full_spec(a.shape) for a in args],
            out_specs=_full_spec((N, Dout)),
        ),
    )(*args)
    return out.reshape(T, B, Dout)


# ---------------------------------------------------------------------------
# Pure-JAX reference (for correctness check)
# ---------------------------------------------------------------------------
def reference_forward(params, words, chars, cfg):
    H = cfg["lstm_hidden_dim"]
    we = params["word_emb"][words]
    ce = params["char_emb"][chars]
    T, B, L, C = ce.shape
    x = ce.reshape(T * B, L, C)
    pad = (cfg["kernel_size"] - 1) // 2
    xp = jnp.pad(x, ((0, 0), (pad, pad), (0, 0)))
    K = cfg["kernel_size"]
    cols = []
    for t in range(L):
        s = params["conv_b"]
        for k in range(K):
            s = s + jnp.dot(xp[:, t + k, :], params["conv_w"][k],
                            preferred_element_type=jnp.float32)
        cols.append(s)
    conv = jnp.stack(cols, axis=1)                              # [N, L, O]
    char_feat = conv.max(axis=1).reshape(T, B, cfg["kernel_num"])
    full = jnp.concatenate([we, char_feat], axis=-1)

    def lstm_dir(xseq, wih, whh, b, reverse):
        if reverse:
            xseq = xseq[::-1]

        def step(carry, xt):
            h, c = carry
            g_all = (jnp.dot(xt, wih, preferred_element_type=jnp.float32)
                     + jnp.dot(h, whh, preferred_element_type=jnp.float32) + b[0])
            i = jax.nn.sigmoid(g_all[:, 0 * H:1 * H])
            f = jax.nn.sigmoid(g_all[:, 1 * H:2 * H])
            g = jnp.tanh(g_all[:, 2 * H:3 * H])
            o = jax.nn.sigmoid(g_all[:, 3 * H:4 * H])
            c = f * c + i * g
            h = o * jnp.tanh(c)
            return (h, c), h

        h0 = jnp.zeros((xseq.shape[1], H), jnp.float32)
        _, hs = lax.scan(step, (h0, h0), xseq)
        return hs[::-1] if reverse else hs

    inp = full
    for l in range(cfg["lstm_n_layers"]):
        p = params["lstm"][l]
        fwd = lstm_dir(inp, p["wih_f"], p["whh_f"], p["b_f"], False)
        bwd = lstm_dir(inp, p["wih_b"], p["whh_b"], p["b_b"], True)
        inp = jnp.concatenate([fwd, bwd], axis=-1)
    return jnp.dot(inp, params["fc_w"], preferred_element_type=jnp.float32) + params["fc_b"][0]


if __name__ == "__main__":
    cfg = dict(
        word_vocab_size=50, word_embedding_dim=32, word_pad_idx=0,
        char_vocab_size=30, char_embedding_dim=16,
        kernel_size=3, kernel_num=32, char_pad_idx=0,
        lstm_hidden_dim=32, lstm_output_dim=16, lstm_n_layers=2,
        dropout_rate=0.25,  # inference: identity
    )
    T, B, L = 8, 2, 8

    key = jax.random.PRNGKey(0)
    kp, kw, kc = jax.random.split(key, 3)
    params = init_params(kp, cfg)
    words = jax.random.randint(kw, (T, B), 0, cfg["word_vocab_size"], dtype=jnp.int32)
    chars = jax.random.randint(kc, (T, B, L), 0, cfg["char_vocab_size"], dtype=jnp.int32)

    fwd = jax.jit(lambda p, w, c: pallas_forward(p, w, c, cfg))
    out = jax.block_until_ready(fwd(params, words, chars))
    ref = jax.block_until_ready(reference_forward(params, words, chars, cfg))

    assert out.shape == (T, B, cfg["lstm_output_dim"]), out.shape
    assert bool(jnp.all(jnp.isfinite(out)))
    assert bool(jnp.allclose(out, ref, atol=5e-2, rtol=5e-2)), float(jnp.max(jnp.abs(out - ref)))
    print("KERNEL_OK")
</pallas_src>

<mosaic_0001>
module attributes {stable_mosaic.version = 11 : i64} {
  func.func @postagger_kernel(%arg0: i32, %arg1: memref<16x32xf32, #tpu.memory_space<vmem>>, %arg2: memref<128x48xf32, #tpu.memory_space<vmem>>, %arg3: memref<48x32xf32, #tpu.memory_space<vmem>>, %arg4: memref<1x32xf32, #tpu.memory_space<vmem>>, %arg5: memref<2x64x128xf32, #tpu.memory_space<vmem>>, %arg6: memref<2x32x128xf32, #tpu.memory_space<vmem>>, %arg7: memref<2x1x128xf32, #tpu.memory_space<vmem>>, %arg8: memref<2x64x128xf32, #tpu.memory_space<vmem>>, %arg9: memref<2x32x128xf32, #tpu.memory_space<vmem>>, %arg10: memref<2x1x128xf32, #tpu.memory_space<vmem>>, %arg11: memref<64x16xf32, #tpu.memory_space<vmem>>, %arg12: memref<1x16xf32, #tpu.memory_space<vmem>>, %arg13: memref<16x16xf32, #tpu.memory_space<vmem>>) attributes {dimension_semantics = [#tpu.dimension_semantics<arbitrary>], iteration_bounds = array<i64: 1>, scalar_prefetch = 0 : i64, scratch_operands = 0 : i64, tpu.core_type = #tpu.core_type<tc>, window_params = [{pipeline_mode = #tpu.pipeline_mode<synchronous>, transform_indices = @transform_0, window_bounds = array<i64: 16, 32>}, {pipeline_mode = #tpu.pipeline_mode<synchronous>, transform_indices = @transform_1, window_bounds = array<i64: 128, 48>}, {pipeline_mode = #tpu.pipeline_mode<synchronous>, transform_indices = @transform_2, window_bounds = array<i64: 48, 32>}, {pipeline_mode = #tpu.pipeline_mode<synchronous>, transform_indices = @transform_3, window_bounds = array<i64: 1, 32>}, {pipeline_mode = #tpu.pipeline_mode<synchronous>, transform_indices = @transform_4, window_bounds = array<i64: 2, 64, 128>}, {pipeline_mode = #tpu.pipeline_mode<synchronous>, transform_indices = @transform_5, window_bounds = array<i64: 2, 32, 128>}, {pipeline_mode = #tpu.pipeline_mode<synchronous>, transform_indices = @transform_6, window_bounds = array<i64: 2, 1, 128>}, {pipeline_mode = #tpu.pipeline_mode<synchronous>, transform_indices = @transform_7, window_bounds = array<i64: 2, 64, 128>}, {pipeline_mode = #tpu.pipeline_mode<synchronous>, transform_indices = @transform_8, window_bounds = array<i64: 2, 32, 128>}, {pipeline_mode = #tpu.pipeline_mode<synchronous>, transform_indices = @transform_9, window_bounds = array<i64: 2, 1, 128>}, {pipeline_mode = #tpu.pipeline_mode<synchronous>, transform_indices = @transform_10, window_bounds = array<i64: 64, 16>}, {pipeline_mode = #tpu.pipeline_mode<synchronous>, transform_indices = @transform_11, window_bounds = array<i64: 1, 16>}, {pipeline_mode = #tpu.pipeline_mode<synchronous>, transform_indices = @transform_12, window_bounds = array<i64: 16, 16>}]} {
    %c0 = arith.constant 0 : index
    %c0_0 = arith.constant 0 : index
    %0 = vector.load %arg2[%c0, %c0_0] : memref<128x48xf32, #tpu.memory_space<vmem>>, vector<128x48xf32>
    %c0_1 = arith.constant 0 : index
    %c0_2 = arith.constant 0 : index
    %1 = vector.load %arg3[%c0_1, %c0_2] : memref<48x32xf32, #tpu.memory_space<vmem>>, vector<48x32xf32>
    %cst = arith.constant dense<0.000000e+00> : vector<128x32xf32>
    %2 = tpu.matmul %0, %1, %cst {dimension_numbers = #tpu.dot_dimension_numbers<[1], [0], [0], [1], [0, 0, 1, 1], [], []>} : vector<128x48xf32>, vector<48x32xf32>, vector<128x32xf32> -> vector<128x32xf32>
    %3 = vector.extract_strided_slice %2 {offsets = [0, 0], sizes = [16, 32], strides = [1, 1]} : vector<128x32xf32> to vector<16x32xf32>
    %4 = vector.extract_strided_slice %2 {offsets = [16, 0], sizes = [16, 32], strides = [1, 1]} : vector<128x32xf32> to vector<16x32xf32>
    %5 = arith.maximumf %3, %4 : vector<16x32xf32>
    %6 = vector.extract_strided_slice %2 {offsets = [32, 0], sizes = [16, 32], strides = [1, 1]} : vector<128x32xf32> to vector<16x32xf32>
    %7 = arith.maximumf %5, %6 : vector<16x32xf32>
    %8 = vector.extract_strided_slice %2 {offsets = [48, 0], sizes = [16, 32], strides = [1, 1]} : vector<128x32xf32> to vector<16x32xf32>
    %9 = arith.maximumf %7, %8 : vector<16x32xf32>
    %10 = vector.extract_strided_slice %2 {offsets = [64, 0], sizes = [16, 32], strides = [1, 1]} : vector<128x32xf32> to vector<16x32xf32>
    %11 = arith.maximumf %9, %10 : vector<16x32xf32>
    %12 = vector.extract_strided_slice %2 {offsets = [80, 0], sizes = [16, 32], strides = [1, 1]} : vector<128x32xf32> to vector<16x32xf32>
    %13 = arith.maximumf %11, %12 : vector<16x32xf32>
    %14 = vector.extract_strided_slice %2 {offsets = [96, 0], sizes = [16, 32], strides = [1, 1]} : vector<128x32xf32> to vector<16x32xf32>
    %15 = arith.maximumf %13, %14 : vector<16x32xf32>
    %16 = vector.extract_strided_slice %2 {offsets = [112, 0], sizes = [16, 32], strides = [1, 1]} : vector<128x32xf32> to vector<16x32xf32>
    %17 = arith.maximumf %15, %16 : vector<16x32xf32>
    %c0_3 = arith.constant 0 : index
    %c0_4 = arith.constant 0 : index
    %18 = vector.load %arg4[%c0_3, %c0_4] : memref<1x32xf32, #tpu.memory_space<vmem>>, vector<1x32xf32>
    %19 = vector.broadcast %18 : vector<1x32xf32> to vector<16x32xf32>
    %20 = arith.addf %17, %19 : vector<16x32xf32>
    %c0_5 = arith.constant 0 : index
    %c0_6 = arith.constant 0 : index
    %21 = vector.load %arg1[%c0_5, %c0_6] : memref<16x32xf32, #tpu.memory_space<vmem>>, vector<16x32xf32>
    %22 = tpu.concatenate %21, %20 in 1 : vector<16x32xf32>, vector<16x32xf32> -> vector<16x64xf32>
    %23 = vector.extract_strided_slice %22 {offsets = [0, 0], sizes = [2, 64], strides = [1, 1]} : vector<16x64xf32> to vector<2x64xf32>
    %24 = vector.extract_strided_slice %22 {offsets = [2, 0], sizes = [2, 64], strides = [1, 1]} : vector<16x64xf32> to vector<2x64xf32>
    %25 = vector.extract_strided_slice %22 {offsets = [4, 0], sizes = [2, 64], strides = [1, 1]} : vector<16x64xf32> to vector<2x64xf32>
    %26 = vector.extract_strided_slice %22 {offsets = [6, 0], sizes = [2, 64], strides = [1, 1]} : vector<16x64xf32> to vector<2x64xf32>
    %27 = vector.extract_strided_slice %22 {offsets = [8, 0], sizes = [2, 64], strides = [1, 1]} : vector<16x64xf32> to vector<2x64xf32>
    %28 = vector.extract_strided_slice %22 {offsets = [10, 0], sizes = [2, 64], strides = [1, 1]} : vector<16x64xf32> to vector<2x64xf32>
    %29 = vector.extract_strided_slice %22 {offsets = [12, 0], sizes = [2, 64], strides = [1, 1]} : vector<16x64xf32> to vector<2x64xf32>
    %30 = vector.extract_strided_slice %22 {offsets = [14, 0], sizes = [2, 64], strides = [1, 1]} : vector<16x64xf32> to vector<2x64xf32>
    %c0_7 = arith.constant 0 : index
    %c0_8 = arith.constant 0 : index
    %c0_9 = arith.constant 0 : index
    %31 = vector.load %arg5[%c0_7, %c0_8, %c0_9] : memref<2x64x128xf32, #tpu.memory_space<vmem>>, vector<1x64x128xf32>
    %32 = vector.shape_cast %31 : vector<1x64x128xf32> to vector<64x128xf32>
    %c1 = arith.constant 1 : index
    %c0_10 = arith.constant 0 : index
    %c0_11 = arith.constant 0 : index
    %33 = vector.load %arg5[%c1, %c0_10, %c0_11] : memref<2x64x128xf32, #tpu.memory_space<vmem>>, vector<1x64x128xf32>
    %34 = vector.shape_cast %33 : vector<1x64x128xf32> to vector<64x128xf32>
    %c0_12 = arith.constant 0 : index
    %c0_13 = arith.constant 0 : index
    %c0_14 = arith.constant 0 : index
    %35 = vector.load %arg6[%c0_12, %c0_13, %c0_14] : memref<2x32x128xf32, #tpu.memory_space<vmem>>, vector<1x32x128xf32>
    %36 = vector.shape_cast %35 : vector<1x32x128xf32> to vector<32x128xf32>
    %c1_15 = arith.constant 1 : index
    %c0_16 = arith.constant 0 : index
    %c0_17 = arith.constant 0 : index
    %37 = vector.load %arg6[%c1_15, %c0_16, %c0_17] : memref<2x32x128xf32, #tpu.memory_space<vmem>>, vector<1x32x128xf32>
    %38 = vector.shape_cast %37 : vector<1x32x128xf32> to vector<32x128xf32>
    %c0_18 = arith.constant 0 : index
    %c0_19 = arith.constant 0 : index
    %c0_20 = arith.constant 0 : index
    %39 = vector.load %arg7[%c0_18, %c0_19, %c0_20] : memref<2x1x128xf32, #tpu.memory_space<vmem>>, vector<1x1x128xf32>
    %40 = vector.shape_cast %39 : vector<1x1x128xf32> to vector<1x128xf32>
    %c1_21 = arith.constant 1 : index
    %c0_22 = arith.constant 0 : index
    %c0_23 = arith.constant 0 : index
    %41 = vector.load %arg7[%c1_21, %c0_22, %c0_23] : memref<2x1x128xf32, #tpu.memory_space<vmem>>, vector<1x1x128xf32>
    %42 = vector.shape_cast %41 : vector<1x1x128xf32> to vector<1x128xf32>
    %cst_24 = arith.constant dense<0.000000e+00> : vector<2x128xf32>
    %43 = tpu.matmul %23, %32, %cst_24 {dimension_numbers = #tpu.dot_dimension_numbers<[1], [0], [0], [1], [0, 0, 1, 1], [], []>} : vector<2x64xf32>, vector<64x128xf32>, vector<2x128xf32> -> vector<2x128xf32>
    %44 = vector.broadcast %40 : vector<1x128xf32> to vector<2x128xf32>
    %45 = arith.addf %43, %44 : vector<2x128xf32>
    %46 = vector.extract_strided_slice %45 {offsets = [0, 0], sizes = [2, 32], strides = [1, 1]} : vector<2x128xf32> to vector<2x32xf32>
    %47 = arith.negf %46 : vector<2x32xf32>
    %48 = math.exp %47 : vector<2x32xf32>
    %cst_25 = arith.constant 1.000000e+00 : f32
    %49 = vector.broadcast %cst_25 : f32 to vector<2x32xf32>
    %50 = arith.addf %49, %48 : vector<2x32xf32>
    %51 = arith.divf %49, %50 : vector<2x32xf32>
    %52 = vector.extract_strided_slice %45 {offsets = [0, 64], sizes = [2, 32], strides = [1, 1]} : vector<2x128xf32> to vector<2x32xf32>
    %53 = math.tanh %52 : vector<2x32xf32>
    %54 = vector.extract_strided_slice %45 {offsets = [0, 96], sizes = [2, 32], strides = [1, 1]} : vector<2x128xf32> to vector<2x32xf32>
    %55 = arith.negf %54 : vector<2x32xf32>
    %56 = math.exp %55 : vector<2x32xf32>
    %cst_26 = arith.constant 1.000000e+00 : f32
    %57 = vector.broadcast %cst_26 : f32 to vector<2x32xf32>
    %58 = arith.addf %57, %56 : vector<2x32xf32>
    %59 = arith.divf %57, %58 : vector<2x32xf32>
    %60 = arith.mulf %51, %53 : vector<2x32xf32>
    %61 = math.tanh %60 : vector<2x32xf32>
    %62 = arith.mulf %59, %61 : vector<2x32xf32>
    %cst_27 = arith.constant dense<0.000000e+00> : vector<2x128xf32>
    %63 = tpu.matmul %30, %34, %cst_27 {dimension_numbers = #tpu.dot_dimension_numbers<[1], [0], [0], [1], [0, 0, 1, 1], [], []>} : vector<2x64xf32>, vector<64x128xf32>, vector<2x128xf32> -> vector<2x128xf32>
    %64 = vector.broadcast %42 : vector<1x128xf32> to vector<2x128xf32>
    %65 = arith.addf %63, %64 : vector<2x128xf32>
    %66 = vector.extract_strided_slice %65 {offsets = [0, 0], sizes = [2, 32], strides = [1, 1]} : vector<2x128xf32> to vector<2x32xf32>
    %67 = arith.negf %66 : vector<2x32xf32>
    %68 = math.exp %67 : vector<2x32xf32>
    %cst_28 = arith.constant 1.000000e+00 : f32
    %69 = vector.broadcast %cst_28 : f32 to vector<2x32xf32>
    %70 = arith.addf %69, %68 : vector<2x32xf32>
    %71 = arith.divf %69, %70 : vector<2x32xf32>
    %72 = vector.extract_strided_slice %65 {offsets = [0, 64], sizes = [2, 32], strides = [1, 1]} : vector<2x128xf32> to vector<2x32xf32>
    %73 = math.tanh %72 : vector<2x32xf32>
    %74 = vector.extract_strided_slice %65 {offsets = [0, 96], sizes = [2, 32], strides = [1, 1]} : vector<2x128xf32> to vector<2x32xf32>
    %75 = arith.negf %74 : vector<2x32xf32>
    %76 = math.exp %75 : vector<2x32xf32>
    %cst_29 = arith.constant 1.000000e+00 : f32
    %77 = vector.broadcast %cst_29 : f32 to vector<2x32xf32>
    %78 = arith.addf %77, %76 : vector<2x32xf32>
    %79 = arith.divf %77, %78 : vector<2x32xf32>
    %80 = arith.mulf %71, %73 : vector<2x32xf32>
    %81 = math.tanh %80 : vector<2x32xf32>
    %82 = arith.mulf %79, %81 : vector<2x32xf32>
    %cst_30 = arith.constant dense<0.000000e+00> : vector<2x128xf32>
    %83 = tpu.matmul %24, %32, %cst_30 {dimension_numbers = #tpu.dot_dimension_numbers<[1], [0], [0], [1], [0, 0, 1, 1], [], []>} : vector<2x64xf32>, vector<64x128xf32>, vector<2x128xf32> -> vector<2x128xf32>
    %84 = vector.broadcast %40 : vector<1x128xf32> to vector<2x128xf32>
    %85 = arith.addf %83, %84 : vector<2x128xf32>
    %cst_31 = arith.constant dense<0.000000e+00> : vector<2x128xf32>
    %86 = tpu.matmul %62, %36, %cst_31 {dimension_numbers = #tpu.dot_dimension_numbers<[1], [0], [0], [1], [0, 0, 1, 1], [], []>} : vector<2x32xf32>, vector<32x128xf32>, vector<2x128xf32> -> vector<2x128xf32>
    %87 = arith.addf %85, %86 : vector<2x128xf32>
    %88 = vector.extract_strided_slice %87 {offsets = [0, 0], sizes = [2, 32], strides = [1, 1]} : vector<2x128xf32> to vector<2x32xf32>
    %89 = arith.negf %88 : vector<2x32xf32>
    %90 = math.exp %89 : vector<2x32xf32>
    %cst_32 = arith.constant 1.000000e+00 : f32
    %91 = vector.broadcast %cst_32 : f32 to vector<2x32xf32>
    %92 = arith.addf %91, %90 : vector<2x32xf32>
    %93 = arith.divf %91, %92 : vector<2x32xf32>
    %94 = vector.extract_strided_slice %87 {offsets = [0, 32], sizes = [2, 32], strides = [1, 1]} : vector<2x128xf32> to vector<2x32xf32>
    %95 = arith.negf %94 : vector<2x32xf32>
    %96 = math.exp %95 : vector<2x32xf32>
    %cst_33 = arith.constant 1.000000e+00 : f32
    %97 = vector.broadcast %cst_33 : f32 to vector<2x32xf32>
    %98 = arith.addf %97, %96 : vector<2x32xf32>
    %99 = arith.divf %97, %98 : vector<2x32xf32>
    %100 = vector.extract_strided_slice %87 {offsets = [0, 64], sizes = [2, 32], strides = [1, 1]} : vector<2x128xf32> to vector<2x32xf32>
    %101 = math.tanh %100 : vector<2x32xf32>
    %102 = vector.extract_strided_slice %87 {offsets = [0, 96], sizes = [2, 32], strides = [1, 1]} : vector<2x128xf32> to vector<2x32xf32>
    %103 = arith.negf %102 : vector<2x32xf32>
    %104 = math.exp %103 : vector<2x32xf32>
    %cst_34 = arith.constant 1.000000e+00 : f32
    %105 = vector.broadcast %cst_34 : f32 to vector<2x32xf32>
    %106 = arith.addf %105, %104 : vector<2x32xf32>
    %107 = arith.divf %105, %106 : vector<2x32xf32>
    %108 = arith.mulf %99, %60 : vector<2x32xf32>
    %109 = arith.mulf %93, %101 : vector<2x32xf32>
    %110 = arith.addf %108, %109 : vector<2x32xf32>
    %111 = math.tanh %110 : vector<2x32xf32>
    %112 = arith.mulf %107, %111 : vector<2x32xf32>
    %cst_35 = arith.constant dense<0.000000e+00> : vector<2x128xf32>
    %113 = tpu.matmul %29, %34, %cst_35 {dimension_numbers = #tpu.dot_dimension_numbers<[1], [0], [0], [1], [0, 0, 1, 1], [], []>} : vector<2x64xf32>, vector<64x128xf32>, vector<2x128xf32> -> vector<2x128xf32>
    %114 = vector.broadcast %42 : vector<1x128xf32> to vector<2x128xf32>
    %115 = arith.addf %113, %114 : vector<2x128xf32>
    %cst_36 = arith.constant dense<0.000000e+00> : vector<2x128xf32>
    %116 = tpu.matmul %82, %38, %cst_36 {dimension_numbers = #tpu.dot_dimension_numbers<[1], [0], [0], [1], [0, 0, 1, 1], [], []>} : vector<2x32xf32>, vector<32x128xf32>, vector<2x128xf32> -> vector<2x128xf32>
    %117 = arith.addf %115, %116 : vector<2x128xf32>
    %118 = vector.extract_strided_slice %117 {offsets = [0, 0], sizes = [2, 32], strides = [1, 1]} : vector<2x128xf32> to vector<2x32xf32>
    %119 = arith.negf %118 : vector<2x32xf32>
    %120 = math.exp %119 : vector<2x32xf32>
    %cst_37 = arith.constant 1.000000e+00 : f32
    %121 = vector.broadcast %cst_37 : f32 to vector<2x32xf32>
    %122 = arith.addf %121, %120 : vector<2x32xf32>
    %123 = arith.divf %121, %122 : vector<2x32xf32>
    %124 = vector.extract_strided_slice %117 {offsets = [0, 32], sizes = [2, 32], strides = [1, 1]} : vector<2x128xf32> to vector<2x32xf32>
    %125 = arith.negf %124 : vector<2x32xf32>
    %126 = math.exp %125 : vector<2x32xf32>
    %cst_38 = arith.constant 1.000000e+00 : f32
    %127 = vector.broadcast %cst_38 : f32 to vector<2x32xf32>
    %128 = arith.addf %127, %126 : vector<2x32xf32>
    %129 = arith.divf %127, %128 : vector<2x32xf32>
    %130 = vector.extract_strided_slice %117 {offsets = [0, 64], sizes = [2, 32], strides = [1, 1]} : vector<2x128xf32> to vector<2x32xf32>
    %131 = math.tanh %130 : vector<2x32xf32>
    %132 = vector.extract_strided_slice %117 {offsets = [0, 96], sizes = [2, 32], strides = [1, 1]} : vector<2x128xf32> to vector<2x32xf32>
    %133 = arith.negf %132 : vector<2x32xf32>
    %134 = math.exp %133 : vector<2x32xf32>
    %cst_39 = arith.constant 1.000000e+00 : f32
    %135 = vector.broadcast %cst_39 : f32 to vector<2x32xf32>
    %136 = arith.addf %135, %134 : vector<2x32xf32>
    %137 = arith.divf %135, %136 : vector<2x32xf32>
    %138 = arith.mulf %129, %80 : vector<2x32xf32>
    %139 = arith.mulf %123, %131 : vector<2x32xf32>
    %140 = arith.addf %138, %139 : vector<2x32xf32>
    %141 = math.tanh %140 : vector<2x32xf32>
    %142 = arith.mulf %137, %141 : vector<2x32xf32>
    %cst_40 = arith.constant dense<0.000000e+00> : vector<2x128xf32>
    %143 = tpu.matmul %25, %32, %cst_40 {dimension_numbers = #tpu.dot_dimension_numbers<[1], [0], [0], [1], [0, 0, 1, 1], [], []>} : vector<2x64xf32>, vector<64x128xf32>, vector<2x128xf32> -> vector<2x128xf32>
    %144 = vector.broadcast %40 : vector<1x128xf32> to vector<2x128xf32>
    %145 = arith.addf %143, %144 : vector<2x128xf32>
    %cst_41 = arith.constant dense<0.000000e+00> : vector<2x128xf32>
    %146 = tpu.matmul %112, %36, %cst_41 {dimension_numbers = #tpu.dot_dimension_numbers<[1], [0], [0], [1], [0, 0, 1, 1], [], []>} : vector<2x32xf32>, vector<32x128xf32>, vector<2x128xf32> -> vector<2x128xf32>
    %147 = arith.addf %145, %146 : vector<2x128xf32>
    %148 = vector.extract_strided_slice %147 {offsets = [0, 0], sizes = [2, 32], strides = [1, 1]} : vector<2x128xf32> to vector<2x32xf32>
    %149 = arith.negf %148 : vector<2x32xf32>
    %150 = math.exp %149 : vector<2x32xf32>
    %cst_42 = arith.constant 1.000000e+00 : f32
    %151 = vector.broadcast %cst_42 : f32 to vector<2x32xf32>
    %152 = arith.addf %151, %150 : vector<2x32xf32>
    %153 = arith.divf %151, %152 : vector<2x32xf32>
    %154 = vector.extract_strided_slice %147 {offsets = [0, 32], sizes = [2, 32], strides = [1, 1]} : vector<2x128xf32> to vector<2x32xf32>
    %155 = arith.negf %154 : vector<2x32xf32>
    %156 = math.exp %155 : vector<2x32xf32>
    %cst_43 = arith.constant 1.000000e+00 : f32
    %157 = vector.broadcast %cst_43 : f32 to vector<2x32xf32>
    %158 = arith.addf %157, %156 : vector<2x32xf32>
    %159 = arith.divf %157, %158 : vector<2x32xf32>
    %160 = vector.extract_strided_slice %147 {offsets = [0, 64], sizes = [2, 32], strides = [1, 1]} : vector<2x128xf32> to vector<2x32xf32>
    %161 = math.tanh %160 : vector<2x32xf32>
    %162 = vector.extract_strided_slice %147 {offsets = [0, 96], sizes = [2, 32], strides = [1, 1]} : vector<2x128xf32> to vector<2x32xf32>
    %163 = arith.negf %162 : vector<2x32xf32>
    %164 = math.exp %163 : vector<2x32xf32>
    %cst_44 = arith.constant 1.000000e+00 : f32
    %165 = vector.broadcast %cst_44 : f32 to vector<2x32xf32>
    %166 = arith.addf %165, %164 : vector<2x32xf32>
    %167 = arith.divf %165, %166 : vector<2x32xf32>
    %168 = arith.mulf %159, %110 : vector<2x32xf32>
    %169 = arith.mulf %153, %161 : vector<2x32xf32>
    %170 = arith.addf %168, %169 : vector<2x32xf32>
    %171 = math.tanh %170 : vector<2x32xf32>
    %172 = arith.mulf %167, %171 : vector<2x32xf32>
    %cst_45 = arith.constant dense<0.000000e+00> : vector<2x128xf32>
    %173 = tpu.matmul %28, %34, %cst_45 {dimension_numbers = #tpu.dot_dimension_numbers<[1], [0], [0], [1], [0, 0, 1, 1], [], []>} : vector<2x64xf32>, vector<64x128xf32>, vector<2x128xf32> -> vector<2x128xf32>
    %174 = vector.broadcast %42 : vector<1x128xf32> to vector<2x128xf32>
    %175 = arith.addf %173, %174 : vector<2x128xf32>
    %cst_46 = arith.constant dense<0.000000e+00> : vector<2x128xf32>
    %176 = tpu.matmul %142, %38, %cst_46 {dimension_numbers = #tpu.dot_dimension_numbers<[1], [0], [0], [1], [0, 0, 1, 1], [], []>} : vector<2x32xf32>, vector<32x128xf32>, vector<2x128xf32> -> vector<2x128xf32>
    %177 = arith.addf %175, %176 : vector<2x128xf32>
    %178 = vector.extract_strided_slice %177 {offsets = [0, 0], sizes = [2, 32], strides = [1, 1]} : vector<2x128xf32> to vector<2x32xf32>
    %179 = arith.negf %178 : vector<2x32xf32>
    %180 = math.exp %179 : vector<2x32xf32>
    %cst_47 = arith.constant 1.000000e+00 : f32
    %181 = vector.broadcast %cst_47 : f32 to vector<2x32xf32>
    %182 = arith.addf %181, %180 : vector<2x32xf32>
    %183 = arith.divf %181, %182 : vector<2x32xf32>
    %184 = vector.extract_strided_slice %177 {offsets = [0, 32], sizes = [2, 32], strides = [1, 1]} : vector<2x128xf32> to vector<2x32xf32>
    %185 = arith.negf %184 : vector<2x32xf32>
    %186 = math.exp %185 : vector<2x32xf32>
    %cst_48 = arith.constant 1.000000e+00 : f32
    %187 = vector.broadcast %cst_48 : f32 to vector<2x32xf32>
    %188 = arith.addf %187, %186 : vector<2x32xf32>
    %189 = arith.divf %187, %188 : vector<2x32xf32>
    %190 = vector.extract_strided_slice %177 {offsets = [0, 64], sizes = [2, 32], strides = [1, 1]} : vector<2x128xf32> to vector<2x32xf32>
    %191 = math.tanh %190 : vector<2x32xf32>
    %192 = vector.extract_strided_slice %177 {offsets = [0, 96], sizes = [2, 32], strides = [1, 1]} : vector<2x128xf32> to vector<2x32xf32>
    %193 = arith.negf %192 : vector<2x32xf32>
    %194 = math.exp %193 : vector<2x32xf32>
    %cst_49 = arith.constant 1.000000e+00 : f32
    %195 = vector.broadcast %cst_49 : f32 to vector<2x32xf32>
    %196 = arith.addf %195, %194 : vector<2x32xf32>
    %197 = arith.divf %195, %196 : vector<2x32xf32>
    %198 = arith.mulf %189, %140 : vector<2x32xf32>
    %199 = arith.mulf %183, %191 : vector<2x32xf32>
    %200 = arith.addf %198, %199 : vector<2x32xf32>
    %201 = math.tanh %200 : vector<2x32xf32>
    %202 = arith.mulf %197, %201 : vector<2x32xf32>
    %cst_50 = arith.constant dense<0.000000e+00> : vector<2x128xf32>
    %203 = tpu.matmul %26, %32, %cst_50 {dimension_numbers = #tpu.dot_dimension_numbers<[1], [0], [0], [1], [0, 0, 1, 1], [], []>} : vector<2x64xf32>, vector<64x128xf32>, vector<2x128xf32> -> vector<2x128xf32>
    %204 = vector.broadcast %40 : vector<1x128xf32> to vector<2x128xf32>
    %205 = arith.addf %203, %204 : vector<2x128xf32>
    %cst_51 = arith.constant dense<0.000000e+00> : vector<2x128xf32>
    %206 = tpu.matmul %172, %36, %cst_51 {dimension_numbers = #tpu.dot_dimension_numbers<[1], [0], [0], [1], [0, 0, 1, 1], [], []>} : vector<2x32xf32>, vector<32x128xf32>, vector<2x128xf32> -> vector<2x128xf32>
    %207 = arith.addf %205, %206 : vector<2x128xf32>
    %208 = vector.extract_strided_slice %207 {offsets = [0, 0], sizes = [2, 32], strides = [1, 1]} : vector<2x128xf32> to vector<2x32xf32>
    %209 = arith.negf %208 : vector<2x32xf32>
    %210 = math.exp %209 : vector<2x32xf32>
    %cst_52 = arith.constant 1.000000e+00 : f32
    %211 = vector.broadcast %cst_52 : f32 to vector<2x32xf32>
    %212 = arith.addf %211, %210 : vector<2x32xf32>
    %213 = arith.divf %211, %212 : vector<2x32xf32>
    %214 = vector.extract_strided_slice %207 {offsets = [0, 32], sizes = [2, 32], strides = [1, 1]} : vector<2x128xf32> to vector<2x32xf32>
    %215 = arith.negf %214 : vector<2x32xf32>
    %216 = math.exp %215 : vector<2x32xf32>
    %cst_53 = arith.constant 1.000000e+00 : f32
    %217 = vector.broadcast %cst_53 : f32 to vector<2x32xf32>
    %218 = arith.addf %217, %216 : vector<2x32xf32>
    %219 = arith.divf %217, %218 : vector<2x32xf32>
    %220 = vector.extract_strided_slice %207 {offsets = [0, 64], sizes = [2, 32], strides = [1, 1]} : vector<2x128xf32> to vector<2x32xf32>
    %221 = math.tanh %220 : vector<2x32xf32>
    %222 = vector.extract_strided_slice %207 {offsets = [0, 96], sizes = [2, 32], strides = [1, 1]} : vector<2x128xf32> to vector<2x32xf32>
    %223 = arith.negf %222 : vector<2x32xf32>
    %224 = math.exp %223 : vector<2x32xf32>
    %cst_54 = arith.constant 1.000000e+00 : f32
    %225 = vector.broadcast %cst_54 : f32 to vector<2x32xf32>
    %226 = arith.addf %225, %224 : vector<2x32xf32>
    %227 = arith.divf %225, %226 : vector<2x32xf32>
    %228 = arith.mulf %219, %170 : vector<2x32xf32>
    %229 = arith.mulf %213, %221 : vector<2x32xf32>
    %230 = arith.addf %228, %229 : vector<2x32xf32>
    %231 = math.tanh %230 : vector<2x32xf32>
    %232 = arith.mulf %227, %231 : vector<2x32xf32>
    %cst_55 = arith.constant dense<0.000000e+00> : vector<2x128xf32>
    %233 = tpu.matmul %27, %34, %cst_55 {dimension_numbers = #tpu.dot_dimension_numbers<[1], [0], [0], [1], [0, 0, 1, 1], [], []>} : vector<2x64xf32>, vector<64x128xf32>, vector<2x128xf32> -> vector<2x128xf32>
    %234 = vector.broadcast %42 : vector<1x128xf32> to vector<2x128xf32>
    %235 = arith.addf %233, %234 : vector<2x128xf32>
    %cst_56 = arith.constant dense<0.000000e+00> : vector<2x128xf32>
    %236 = tpu.matmul %202, %38, %cst_56 {dimension_numbers = #tpu.dot_dimension_numbers<[1], [0], [0], [1], [0, 0, 1, 1], [], []>} : vector<2x32xf32>, vector<32x128xf32>, vector<2x128xf32> -> vector<2x128xf32>
    %237 = arith.addf %235, %236 : vector<2x128xf32>
    %238 = vector.extract_strided_slice %237 {offsets = [0, 0], sizes = [2, 32], strides = [1, 1]} : vector<2x128xf32> to vector<2x32xf32>
    %239 = arith.negf %238 : vector<2x32xf32>
    %240 = math.exp %239 : vector<2x32xf32>
    %cst_57 = arith.constant 1.000000e+00 : f32
    %241 = vector.broadcast %cst_57 : f32 to vector<2x32xf32>
    %242 = arith.addf %241, %240 : vector<2x32xf32>
    %243 = arith.divf %241, %242 : vector<2x32xf32>
    %244 = vector.extract_strided_slice %237 {offsets = [0, 32], sizes = [2, 32], strides = [1, 1]} : vector<2x128xf32> to vector<2x32xf32>
    %245 = arith.negf %244 : vector<2x32xf32>
    %246 = math.exp %245 : vector<2x32xf32>
    %cst_58 = arith.constant 1.000000e+00 : f32
    %247 = vector.broadcast %cst_58 : f32 to vector<2x32xf32>
    %248 = arith.addf %247, %246 : vector<2x32xf32>
    %249 = arith.divf %247, %248 : vector<2x32xf32>
    %250 = vector.extract_strided_slice %237 {offsets = [0, 64], sizes = [2, 32], strides = [1, 1]} : vector<2x128xf32> to vector<2x32xf32>
    %251 = math.tanh %250 : vector<2x32xf32>
    %252 = vector.extract_strided_slice %237 {offsets = [0, 96], sizes = [2, 32], strides = [1, 1]} : vector<2x128xf32> to vector<2x32xf32>
    %253 = arith.negf %252 : vector<2x32xf32>
    %254 = math.exp %253 : vector<2x32xf32>
    %cst_59 = arith.constant 1.000000e+00 : f32
    %255 = vector.broadcast %cst_59 : f32 to vector<2x32xf32>
    %256 = arith.addf %255, %254 : vector<2x32xf32>
    %257 = arith.divf %255, %256 : vector<2x32xf32>
    %258 = arith.mulf %249, %200 : vector<2x32xf32>
    %259 = arith.mulf %243, %251 : vector<2x32xf32>
    %260 = arith.addf %258, %259 : vector<2x32xf32>
    %261 = math.tanh %260 : vector<2x32xf32>
    %262 = arith.mulf %257, %261 : vector<2x32xf32>
    %cst_60 = arith.constant dense<0.000000e+00> : vector<2x128xf32>
    %263 = tpu.matmul %27, %32, %cst_60 {dimension_numbers = #tpu.dot_dimension_numbers<[1], [0], [0], [1], [0, 0, 1, 1], [], []>} : vector<2x64xf32>, vector<64x128xf32>, vector<2x128xf32> -> vector<2x128xf32>
    %264 = vector.broadcast %40 : vector<1x128xf32> to vector<2x128xf32>
    %265 = arith.addf %263, %264 : vector<2x128xf32>
    %cst_61 = arith.constant dense<0.000000e+00> : vector<2x128xf32>
    %266 = tpu.matmul %232, %36, %cst_61 {dimension_numbers = #tpu.dot_dimension_numbers<[1], [0], [0], [1], [0, 0, 1, 1], [], []>} : vector<2x32xf32>, vector<32x128xf32>, vector<2x128xf32> -> vector<2x128xf32>
    %267 = arith.addf %265, %266 : vector<2x128xf32>
    %268 = vector.extract_strided_slice %267 {offsets = [0, 0], sizes = [2, 32], strides = [1, 1]} : vector<2x128xf32> to vector<2x32xf32>
    %269 = arith.negf %268 : vector<2x32xf32>
    %270 = math.exp %269 : vector<2x32xf32>
    %cst_62 = arith.constant 1.000000e+00 : f32
    %271 = vector.broadcast %cst_62 : f32 to vector<2x32xf32>
    %272 = arith.addf %271, %270 : vector<2x32xf32>
    %273 = arith.divf %271, %272 : vector<2x32xf32>
    %274 = vector.extract_strided_slice %267 {offsets = [0, 32], sizes = [2, 32], strides = [1, 1]} : vector<2x128xf32> to vector<2x32xf32>
    %275 = arith.negf %274 : vector<2x32xf32>
    %276 = math.exp %275 : vector<2x32xf32>
    %cst_63 = arith.constant 1.000000e+00 : f32
    %277 = vector.broadcast %cst_63 : f32 to vector<2x32xf32>
    %278 = arith.addf %277, %276 : vector<2x32xf32>
    %279 = arith.divf %277, %278 : vector<2x32xf32>
    %280 = vector.extract_strided_slice %267 {offsets = [0, 64], sizes = [2, 32], strides = [1, 1]} : vector<2x128xf32> to vector<2x32xf32>
    %281 = math.tanh %280 : vector<2x32xf32>
    %282 = vector.extract_strided_slice %267 {offsets = [0, 96], sizes = [2, 32], strides = [1, 1]} : vector<2x128xf32> to vector<2x32xf32>
    %283 = arith.negf %282 : vector<2x32xf32>
    %284 = math.exp %283 : vector<2x32xf32>
    %cst_64 = arith.constant 1.000000e+00 : f32
    %285 = vector.broadcast %cst_64 : f32 to vector<2x32xf32>
    %286 = arith.addf %285, %284 : vector<2x32xf32>
    %287 = arith.divf %285, %286 : vector<2x32xf32>
    %288 = arith.mulf %279, %230 : vector<2x32xf32>
    %289 = arith.mulf %273, %281 : vector<2x32xf32>
    %290 = arith.addf %288, %289 : vector<2x32xf32>
    %291 = math.tanh %290 : vector<2x32xf32>
    %292 = arith.mulf %287, %291 : vector<2x32xf32>
    %cst_65 = arith.constant dense<0.000000e+00> : vector<2x128xf32>
    %293 = tpu.matmul %26, %34, %cst_65 {dimension_numbers = #tpu.dot_dimension_numbers<[1], [0], [0], [1], [0, 0, 1, 1], [], []>} : vector<2x64xf32>, vector<64x128xf32>, vector<2x128xf32> -> vector<2x128xf32>
    %294 = vector.broadcast %42 : vector<1x128xf32> to vector<2x128xf32>
    %295 = arith.addf %293, %294 : vector<2x128xf32>
    %cst_66 = arith.constant dense<0.000000e+00> : vector<2x128xf32>
    %296 = tpu.matmul %262, %38, %cst_66 {dimension_numbers = #tpu.dot_dimension_numbers<[1], [0], [0], [1], [0, 0, 1, 1], [], []>} : vector<2x32xf32>, vector<32x128xf32>, vector<2x128xf32> -> vector<2x128xf32>
    %297 = arith.addf %295, %296 : vector<2x128xf32>
    %298 = vector.extract_strided_slice %297 {offsets = [0, 0], sizes = [2, 32], strides = [1, 1]} : vector<2x128xf32> to vector<2x32xf32>
    %299 = arith.negf %298 : vector<2x32xf32>
    %300 = math.exp %299 : vector<2x32xf32>
    %cst_67 = arith.constant 1.000000e+00 : f32
    %301 = vector.broadcast %cst_67 : f32 to vector<2x32xf32>
    %302 = arith.addf %301, %300 : vector<2x32xf32>
    %303 = arith.divf %301, %302 : vector<2x32xf32>
    %304 = vector.extract_strided_slice %297 {offsets = [0, 32], sizes = [2, 32], strides = [1, 1]} : vector<2x128xf32> to vector<2x32xf32>
    %305 = arith.negf %304 : vector<2x32xf32>
    %306 = math.exp %305 : vector<2x32xf32>
    %cst_68 = arith.constant 1.000000e+00 : f32
    %307 = vector.broadcast %cst_68 : f32 to vector<2x32xf32>
    %308 = arith.addf %307, %306 : vector<2x32xf32>
    %309 = arith.divf %307, %308 : vector<2x32xf32>
    %310 = vector.extract_strided_slice %297 {offsets = [0, 64], sizes = [2, 32], strides = [1, 1]} : vector<2x128xf32> to vector<2x32xf32>
    %311 = math.tanh %310 : vector<2x32xf32>
    %312 = vector.extract_strided_slice %297 {offsets = [0, 96], sizes = [2, 32], strides = [1, 1]} : vector<2x128xf32> to vector<2x32xf32>
    %313 = arith.negf %312 : vector<2x32xf32>
    %314 = math.exp %313 : vector<2x32xf32>
    %cst_69 = arith.constant 1.000000e+00 : f32
    %315 = vector.broadcast %cst_69 : f32 to vector<2x32xf32>
    %316 = arith.addf %315, %314 : vector<2x32xf32>
    %317 = arith.divf %315, %316 : vector<2x32xf32>
    %318 = arith.mulf %309, %260 : vector<2x32xf32>
    %319 = arith.mulf %303, %311 : vector<2x32xf32>
    %320 = arith.addf %318, %319 : vector<2x32xf32>
    %321 = math.tanh %320 : vector<2x32xf32>
    %322 = arith.mulf %317, %321 : vector<2x32xf32>
    %cst_70 = arith.constant dense<0.000000e+00> : vector<2x128xf32>
    %323 = tpu.matmul %28, %32, %cst_70 {dimension_numbers = #tpu.dot_dimension_numbers<[1], [0], [0], [1], [0, 0, 1, 1], [], []>} : vector<2x64xf32>, vector<64x128xf32>, vector<2x128xf32> -> vector<2x128xf32>
    %324 = vector.broadcast %40 : vector<1x128xf32> to vector<2x128xf32>
    %325 = arith.addf %323, %324 : vector<2x128xf32>
    %cst_71 = arith.constant dense<0.000000e+00> : vector<2x128xf32>
    %326 = tpu.matmul %292, %36, %cst_71 {dimension_numbers = #tpu.dot_dimension_numbers<[1], [0], [0], [1], [0, 0, 1, 1], [], []>} : vector<2x32xf32>, vector<32x128xf32>, vector<2x128xf32> -> vector<2x128xf32>
    %327 = arith.addf %325, %326 : vector<2x128xf32>
    %328 = vector.extract_strided_slice %327 {offsets = [0, 0], sizes = [2, 32], strides = [1, 1]} : vector<2x128xf32> to vector<2x32xf32>
    %329 = arith.negf %328 : vector<2x32xf32>
    %330 = math.exp %329 : vector<2x32xf32>
    %cst_72 = arith.constant 1.000000e+00 : f32
    %331 = vector.broadcast %cst_72 : f32 to vector<2x32xf32>
    %332 = arith.addf %331, %330 : vector<2x32xf32>
    %333 = arith.divf %331, %332 : vector<2x32xf32>
    %334 = vector.extract_strided_slice %327 {offsets = [0, 32], sizes = [2, 32], strides = [1, 1]} : vector<2x128xf32> to vector<2x32xf32>
    %335 = arith.negf %334 : vector<2x32xf32>
    %336 = math.exp %335 : vector<2x32xf32>
    %cst_73 = arith.constant 1.000000e+00 : f32
    %337 = vector.broadcast %cst_73 : f32 to vector<2x32xf32>
    %338 = arith.addf %337, %336 : vector<2x32xf32>
    %339 = arith.divf %337, %338 : vector<2x32xf32>
    %340 = vector.extract_strided_slice %327 {offsets = [0, 64], sizes = [2, 32], strides = [1, 1]} : vector<2x128xf32> to vector<2x32xf32>
    %341 = math.tanh %340 : vector<2x32xf32>
    %342 = vector.extract_strided_slice %327 {offsets = [0, 96], sizes = [2, 32], strides = [1, 1]} : vector<2x128xf32> to vector<2x32xf32>
    %343 = arith.negf %342 : vector<2x32xf32>
    %344 = math.exp %343 : vector<2x32xf32>
    %cst_74 = arith.constant 1.000000e+00 : f32
    %345 = vector.broadcast %cst_74 : f32 to vector<2x32xf32>
    %346 = arith.addf %345, %344 : vector<2x32xf32>
    %347 = arith.divf %345, %346 : vector<2x32xf32>
    %348 = arith.mulf %339, %290 : vector<2x32xf32>
    %349 = arith.mulf %333, %341 : vector<2x32xf32>
    %350 = arith.addf %348, %349 : vector<2x32xf32>
    %351 = math.tanh %350 : vector<2x32xf32>
    %352 = arith.mulf %347, %351 : vector<2x32xf32>
    %cst_75 = arith.constant dense<0.000000e+00> : vector<2x128xf32>
    %353 = tpu.matmul %25, %34, %cst_75 {dimension_numbers = #tpu.dot_dimension_numbers<[1], [0], [0], [1], [0, 0, 1, 1], [], []>} : vector<2x64xf32>, vector<64x128xf32>, vector<2x128xf32> -> vector<2x128xf32>
    %354 = vector.broadcast %42 : vector<1x128xf32> to vector<2x128xf32>
    %355 = arith.addf %353, %354 : vector<2x128xf32>
    %cst_76 = arith.constant dense<0.000000e+00> : vector<2x128xf32>
    %356 = tpu.matmul %322, %38, %cst_76 {dimension_numbers = #tpu.dot_dimension_numbers<[1], [0], [0], [1], [0, 0, 1, 1], [], []>} : vector<2x32xf32>, vector<32x128xf32>, vector<2x128xf32> -> vector<2x128xf32>
    %357 = arith.addf %355, %356 : vector<2x128xf32>
    %358 = vector.extract_strided_slice %357 {offsets = [0, 0], sizes = [2, 32], strides = [1, 1]} : vector<2x128xf32> to vector<2x32xf32>
    %359 = arith.negf %358 : vector<2x32xf32>
    %360 = math.exp %359 : vector<2x32xf32>
    %cst_77 = arith.constant 1.000000e+00 : f32
    %361 = vector.broadcast %cst_77 : f32 to vector<2x32xf32>
    %362 = arith.addf %361, %360 : vector<2x32xf32>
    %363 = arith.divf %361, %362 : vector<2x32xf32>
    %364 = vector.extract_strided_slice %357 {offsets = [0, 32], sizes = [2, 32], strides = [1, 1]} : vector<2x128xf32> to vector<2x32xf32>
    %365 = arith.negf %364 : vector<2x32xf32>
    %366 = math.exp %365 : vector<2x32xf32>
    %cst_78 = arith.constant 1.000000e+00 : f32
    %367 = vector.broadcast %cst_78 : f32 to vector<2x32xf32>
    %368 = arith.addf %367, %366 : vector<2x32xf32>
    %369 = arith.divf %367, %368 : vector<2x32xf32>
    %370 = vector.extract_strided_slice %357 {offsets = [0, 64], sizes = [2, 32], strides = [1, 1]} : vector<2x128xf32> to vector<2x32xf32>
    %371 = math.tanh %370 : vector<2x32xf32>
    %372 = vector.extract_strided_slice %357 {offsets = [0, 96], sizes = [2, 32], strides = [1, 1]} : vector<2x128xf32> to vector<2x32xf32>
    %373 = arith.negf %372 : vector<2x32xf32>
    %374 = math.exp %373 : vector<2x32xf32>
    %cst_79 = arith.constant 1.000000e+00 : f32
    %375 = vector.broadcast %cst_79 : f32 to vector<2x32xf32>
    %376 = arith.addf %375, %374 : vector<2x32xf32>
    %377 = arith.divf %375, %376 : vector<2x32xf32>
    %378 = arith.mulf %369, %320 : vector<2x32xf32>
    %379 = arith.mulf %363, %371 : vector<2x32xf32>
    %380 = arith.addf %378, %379 : vector<2x32xf32>
    %381 = math.tanh %380 : vector<2x32xf32>
    %382 = arith.mulf %377, %381 : vector<2x32xf32>
    %cst_80 = arith.constant dense<0.000000e+00> : vector<2x128xf32>
    %383 = tpu.matmul %29, %32, %cst_80 {dimension_numbers = #tpu.dot_dimension_numbers<[1], [0], [0], [1], [0, 0, 1, 1], [], []>} : vector<2x64xf32>, vector<64x128xf32>, vector<2x128xf32> -> vector<2x128xf32>
    %384 = vector.broadcast %40 : vector<1x128xf32> to vector<2x128xf32>
    %385 = arith.addf %383, %384 : vector<2x128xf32>
    %cst_81 = arith.constant dense<0.000000e+00> : vector<2x128xf32>
    %386 = tpu.matmul %352, %36, %cst_81 {dimension_numbers = #tpu.dot_dimension_numbers<[1], [0], [0], [1], [0, 0, 1, 1], [], []>} : vector<2x32xf32>, vector<32x128xf32>, vector<2x128xf32> -> vector<2x128xf32>
    %387 = arith.addf %385, %386 : vector<2x128xf32>
    %388 = vector.extract_strided_slice %387 {offsets = [0, 0], sizes = [2, 32], strides = [1, 1]} : vector<2x128xf32> to vector<2x32xf32>
    %389 = arith.negf %388 : vector<2x32xf32>
    %390 = math.exp %389 : vector<2x32xf32>
    %cst_82 = arith.constant 1.000000e+00 : f32
    %391 = vector.broadcast %cst_82 : f32 to vector<2x32xf32>
    %392 = arith.addf %391, %390 : vector<2x32xf32>
    %393 = arith.divf %391, %392 : vector<2x32xf32>
    %394 = vector.extract_strided_slice %387 {offsets = [0, 32], sizes = [2, 32], strides = [1, 1]} : vector<2x128xf32> to vector<2x32xf32>
    %395 = arith.negf %394 : vector<2x32xf32>
    %396 = math.exp %395 : vector<2x32xf32>
    %cst_83 = arith.constant 1.000000e+00 : f32
    %397 = vector.broadcast %cst_83 : f32 to vector<2x32xf32>
    %398 = arith.addf %397, %396 : vector<2x32xf32>
    %399 = arith.divf %397, %398 : vector<2x32xf32>
    %400 = vector.extract_strided_slice %387 {offsets = [0, 64], sizes = [2, 32], strides = [1, 1]} : vector<2x128xf32> to vector<2x32xf32>
    %401 = math.tanh %400 : vector<2x32xf32>
    %402 = vector.extract_strided_slice %387 {offsets = [0, 96], sizes = [2, 32], strides = [1, 1]} : vector<2x128xf32> to vector<2x32xf32>
    %403 = arith.negf %402 : vector<2x32xf32>
    %404 = math.exp %403 : vector<2x32xf32>
    %cst_84 = arith.constant 1.000000e+00 : f32
    %405 = vector.broadcast %cst_84 : f32 to vector<2x32xf32>
    %406 = arith.addf %405, %404 : vector<2x32xf32>
    %407 = arith.divf %405, %406 : vector<2x32xf32>
    %408 = arith.mulf %399, %350 : vector<2x32xf32>
    %409 = arith.mulf %393, %401 : vector<2x32xf32>
    %410 = arith.addf %408, %409 : vector<2x32xf32>
    %411 = math.tanh %410 : vector<2x32xf32>
    %412 = arith.mulf %407, %411 : vector<2x32xf32>
    %cst_85 = arith.constant dense<0.000000e+00> : vector<2x128xf32>
    %413 = tpu.matmul %24, %34, %cst_85 {dimension_numbers = #tpu.dot_dimension_numbers<[1], [0], [0], [1], [0, 0, 1, 1], [], []>} : vector<2x64xf32>, vector<64x128xf32>, vector<2x128xf32> -> vector<2x128xf32>
    %414 = vector.broadcast %42 : vector<1x128xf32> to vector<2x128xf32>
    %415 = arith.addf %413, %414 : vector<2x128xf32>
    %cst_86 = arith.constant dense<0.000000e+00> : vector<2x128xf32>
    %416 = tpu.matmul %382, %38, %cst_86 {dimension_numbers = #tpu.dot_dimension_numbers<[1], [0], [0], [1], [0, 0, 1, 1], [], []>} : vector<2x32xf32>, vector<32x128xf32>, vector<2x128xf32> -> vector<2x128xf32>
    %417 = arith.addf %415, %416 : vector<2x128xf32>
    %418 = vector.extract_strided_slice %417 {offsets = [0, 0], sizes = [2, 32], strides = [1, 1]} : vector<2x128xf32> to vector<2x32xf32>
    %419 = arith.negf %418 : vector<2x32xf32>
    %420 = math.exp %419 : vector<2x32xf32>
    %cst_87 = arith.constant 1.000000e+00 : f32
    %421 = vector.broadcast %cst_87 : f32 to vector<2x32xf32>
    %422 = arith.addf %421, %420 : vector<2x32xf32>
    %423 = arith.divf %421, %422 : vector<2x32xf32>
    %424 = vector.extract_strided_slice %417 {offsets = [0, 32], sizes = [2, 32], strides = [1, 1]} : vector<2x128xf32> to vector<2x32xf32>
    %425 = arith.negf %424 : vector<2x32xf32>
    %426 = math.exp %425 : vector<2x32xf32>
    %cst_88 = arith.constant 1.000000e+00 : f32
    %427 = vector.broadcast %cst_88 : f32 to vector<2x32xf32>
    %428 = arith.addf %427, %426 : vector<2x32xf32>
    %429 = arith.divf %427, %428 : vector<2x32xf32>
    %430 = vector.extract_strided_slice %417 {offsets = [0, 64], sizes = [2, 32], strides = [1, 1]} : vector<2x128xf32> to vector<2x32xf32>
    %431 = math.tanh %430 : vector<2x32xf32>
    %432 = vector.extract_strided_slice %417 {offsets = [0, 96], sizes = [2, 32], strides = [1, 1]} : vector<2x128xf32> to vector<2x32xf32>
    %433 = arith.negf %432 : vector<2x32xf32>
    %434 = math.exp %433 : vector<2x32xf32>
    %cst_89 = arith.constant 1.000000e+00 : f32
    %435 = vector.broadcast %cst_89 : f32 to vector<2x32xf32>
    %436 = arith.addf %435, %434 : vector<2x32xf32>
    %437 = arith.divf %435, %436 : vector<2x32xf32>
    %438 = arith.mulf %429, %380 : vector<2x32xf32>
    %439 = arith.mulf %423, %431 : vector<2x32xf32>
    %440 = arith.addf %438, %439 : vector<2x32xf32>
    %441 = math.tanh %440 : vector<2x32xf32>
    %442 = arith.mulf %437, %441 : vector<2x32xf32>
    %cst_90 = arith.constant dense<0.000000e+00> : vector<2x128xf32>
    %443 = tpu.matmul %30, %32, %cst_90 {dimension_numbers = #tpu.dot_dimension_numbers<[1], [0], [0], [1], [0, 0, 1, 1], [], []>} : vector<2x64xf32>, vector<64x128xf32>, vector<2x128xf32> -> vector<2x128xf32>
    %444 = vector.broadcast %40 : vector<1x128xf32> to vector<2x128xf32>
    %445 = arith.addf %443, %444 : vector<2x128xf32>
    %cst_91 = arith.constant dense<0.000000e+00> : vector<2x128xf32>
    %446 = tpu.matmul %412, %36, %cst_91 {dimension_numbers = #tpu.dot_dimension_numbers<[1], [0], [0], [1], [0, 0, 1, 1], [], []>} : vector<2x32xf32>, vector<32x128xf32>, vector<2x128xf32> -> vector<2x128xf32>
    %447 = arith.addf %445, %446 : vector<2x128xf32>
    %448 = vector.extract_strided_slice %447 {offsets = [0, 0], sizes = [2, 32], strides = [1, 1]} : vector<2x128xf32> to vector<2x32xf32>
    %449 = arith.negf %448 : vector<2x32xf32>
    %450 = math.exp %449 : vector<2x32xf32>
    %cst_92 = arith.constant 1.000000e+00 : f32
    %451 = vector.broadcast %cst_92 : f32 to vector<2x32xf32>
    %452 = arith.addf %451, %450 : vector<2x32xf32>
    %453 = arith.divf %451, %452 : vector<2x32xf32>
    %454 = vector.extract_strided_slice %447 {offsets = [0, 32], sizes = [2, 32], strides = [1, 1]} : vector<2x128xf32> to vector<2x32xf32>
    %455 = arith.negf %454 : vector<2x32xf32>
    %456 = math.exp %455 : vector<2x32xf32>
    %cst_93 = arith.constant 1.000000e+00 : f32
    %457 = vector.broadcast %cst_93 : f32 to vector<2x32xf32>
    %458 = arith.addf %457, %456 : vector<2x32xf32>
    %459 = arith.divf %457, %458 : vector<2x32xf32>
    %460 = vector.extract_strided_slice %447 {offsets = [0, 64], sizes = [2, 32], strides = [1, 1]} : vector<2x128xf32> to vector<2x32xf32>
    %461 = math.tanh %460 : vector<2x32xf32>
    %462 = vector.extract_strided_slice %447 {offsets = [0, 96], sizes = [2, 32], strides = [1, 1]} : vector<2x128xf32> to vector<2x32xf32>
    %463 = arith.negf %462 : vector<2x32xf32>
    %464 = math.exp %463 : vector<2x32xf32>
    %cst_94 = arith.constant 1.000000e+00 : f32
    %465 = vector.broadcast %cst_94 : f32 to vector<2x32xf32>
    %466 = arith.addf %465, %464 : vector<2x32xf32>
    %467 = arith.divf %465, %466 : vector<2x32xf32>
    %468 = arith.mulf %459, %410 : vector<2x32xf32>
    %469 = arith.mulf %453, %461 : vector<2x32xf32>
    %470 = arith.addf %468, %469 : vector<2x32xf32>
    %471 = math.tanh %470 : vector<2x32xf32>
    %472 = arith.mulf %467, %471 : vector<2x32xf32>
    %cst_95 = arith.constant dense<0.000000e+00> : vector<2x128xf32>
    %473 = tpu.matmul %23, %34, %cst_95 {dimension_numbers = #tpu.dot_dimension_numbers<[1], [0], [0], [1], [0, 0, 1, 1], [], []>} : vector<2x64xf32>, vector<64x128xf32>, vector<2x128xf32> -> vector<2x128xf32>
    %474 = vector.broadcast %42 : vector<1x128xf32> to vector<2x128xf32>
    %475 = arith.addf %473, %474 : vector<2x128xf32>
    %cst_96 = arith.constant dense<0.000000e+00> : vector<2x128xf32>
    %476 = tpu.matmul %442, %38, %cst_96 {dimension_numbers = #tpu.dot_dimension_numbers<[1], [0], [0], [1], [0, 0, 1, 1], [], []>} : vector<2x32xf32>, vector<32x128xf32>, vector<2x128xf32> -> vector<2x128xf32>
    %477 = arith.addf %475, %476 : vector<2x128xf32>
    %478 = vector.extract_strided_slice %477 {offsets = [0, 0], sizes = [2, 32], strides = [1, 1]} : vector<2x128xf32> to vector<2x32xf32>
    %479 = arith.negf %478 : vector<2x32xf32>
    %480 = math.exp %479 : vector<2x32xf32>
    %cst_97 = arith.constant 1.000000e+00 : f32
    %481 = vector.broadcast %cst_97 : f32 to vector<2x32xf32>
    %482 = arith.addf %481, %480 : vector<2x32xf32>
    %483 = arith.divf %481, %482 : vector<2x32xf32>
    %484 = vector.extract_strided_slice %477 {offsets = [0, 32], sizes = [2, 32], strides = [1, 1]} : vector<2x128xf32> to vector<2x32xf32>
    %485 = arith.negf %484 : vector<2x32xf32>
    %486 = math.exp %485 : vector<2x32xf32>
    %cst_98 = arith.constant 1.000000e+00 : f32
    %487 = vector.broadcast %cst_98 : f32 to vector<2x32xf32>
    %488 = arith.addf %487, %486 : vector<2x32xf32>
    %489 = arith.divf %487, %488 : vector<2x32xf32>
    %490 = vector.extract_strided_slice %477 {offsets = [0, 64], sizes = [2, 32], strides = [1, 1]} : vector<2x128xf32> to vector<2x32xf32>
    %491 = math.tanh %490 : vector<2x32xf32>
    %492 = vector.extract_strided_slice %477 {offsets = [0, 96], sizes = [2, 32], strides = [1, 1]} : vector<2x128xf32> to vector<2x32xf32>
    %493 = arith.negf %492 : vector<2x32xf32>
    %494 = math.exp %493 : vector<2x32xf32>
    %cst_99 = arith.constant 1.000000e+00 : f32
    %495 = vector.broadcast %cst_99 : f32 to vector<2x32xf32>
    %496 = arith.addf %495, %494 : vector<2x32xf32>
    %497 = arith.divf %495, %496 : vector<2x32xf32>
    %498 = arith.mulf %489, %440 : vector<2x32xf32>
    %499 = arith.mulf %483, %491 : vector<2x32xf32>
    %500 = arith.addf %498, %499 : vector<2x32xf32>
    %501 = math.tanh %500 : vector<2x32xf32>
    %502 = arith.mulf %497, %501 : vector<2x32xf32>
    %503 = tpu.concatenate %62, %502 in 1 : vector<2x32xf32>, vector<2x32xf32> -> vector<2x64xf32>
    %504 = tpu.concatenate %112, %442 in 1 : vector<2x32xf32>, vector<2x32xf32> -> vector<2x64xf32>
    %505 = tpu.concatenate %172, %382 in 1 : vector<2x32xf32>, vector<2x32xf32> -> vector<2x64xf32>
    %506 = tpu.concatenate %232, %322 in 1 : vector<2x32xf32>, vector<2x32xf32> -> vector<2x64xf32>
    %507 = tpu.concatenate %292, %262 in 1 : vector<2x32xf32>, vector<2x32xf32> -> vector<2x64xf32>
    %508 = tpu.concatenate %352, %202 in 1 : vector<2x32xf32>, vector<2x32xf32> -> vector<2x64xf32>
    %509 = tpu.concatenate %412, %142 in 1 : vector<2x32xf32>, vector<2x32xf32> -> vector<2x64xf32>
    %510 = tpu.concatenate %472, %82 in 1 : vector<2x32xf32>, vector<2x32xf32> -> vector<2x64xf32>
    %c0_100 = arith.constant 0 : index
    %c0_101 = arith.constant 0 : index
    %c0_102 = arith.constant 0 : index
    %511 = vector.load %arg8[%c0_100, %c0_101, %c0_102] : memref<2x64x128xf32, #tpu.memory_space<vmem>>, vector<1x64x128xf32>
    %512 = vector.shape_cast %511 : vector<1x64x128xf32> to vector<64x128xf32>
    %c1_103 = arith.constant 1 : index
    %c0_104 = arith.constant 0 : index
    %c0_105 = arith.constant 0 : index
    %513 = vector.load %arg8[%c1_103, %c0_104, %c0_105] : memref<2x64x128xf32, #tpu.memory_space<vmem>>, vector<1x64x128xf32>
    %514 = vector.shape_cast %513 : vector<1x64x128xf32> to vector<64x128xf32>
    %c0_106 = arith.constant 0 : index
    %c0_107 = arith.constant 0 : index
    %c0_108 = arith.constant 0 : index
    %515 = vector.load %arg9[%c0_106, %c0_107, %c0_108] : memref<2x32x128xf32, #tpu.memory_space<vmem>>, vector<1x32x128xf32>
    %516 = vector.shape_cast %515 : vector<1x32x128xf32> to vector<32x128xf32>
    %c1_109 = arith.constant 1 : index
    %c0_110 = arith.constant 0 : index
    %c0_111 = arith.constant 0 : index
    %517 = vector.load %arg9[%c1_109, %c0_110, %c0_111] : memref<2x32x128xf32, #tpu.memory_space<vmem>>, vector<1x32x128xf32>
    %518 = vector.shape_cast %517 : vector<1x32x128xf32> to vector<32x128xf32>
    %c0_112 = arith.constant 0 : index
    %c0_113 = arith.constant 0 : index
    %c0_114 = arith.constant 0 : index
    %519 = vector.load %arg10[%c0_112, %c0_113, %c0_114] : memref<2x1x128xf32, #tpu.memory_space<vmem>>, vector<1x1x128xf32>
    %520 = vector.shape_cast %519 : vector<1x1x128xf32> to vector<1x128xf32>
    %c1_115 = arith.constant 1 : index
    %c0_116 = arith.constant 0 : index
    %c0_117 = arith.constant 0 : index
    %521 = vector.load %arg10[%c1_115, %c0_116, %c0_117] : memref<2x1x128xf32, #tpu.memory_space<vmem>>, vector<1x1x128xf32>
    %522 = vector.shape_cast %521 : vector<1x1x128xf32> to vector<1x128xf32>
    %cst_118 = arith.constant dense<0.000000e+00> : vector<2x128xf32>
    %523 = tpu.matmul %503, %512, %cst_118 {dimension_numbers = #tpu.dot_dimension_numbers<[1], [0], [0], [1], [0, 0, 1, 1], [], []>} : vector<2x64xf32>, vector<64x128xf32>, vector<2x128xf32> -> vector<2x128xf32>
    %524 = vector.broadcast %520 : vector<1x128xf32> to vector<2x128xf32>
    %525 = arith.addf %523, %524 : vector<2x128xf32>
    %526 = vector.extract_strided_slice %525 {offsets = [0, 0], sizes = [2, 32], strides = [1, 1]} : vector<2x128xf32> to vector<2x32xf32>
    %527 = arith.negf %526 : vector<2x32xf32>
    %528 = math.exp %527 : vector<2x32xf32>
    %cst_119 = arith.constant 1.000000e+00 : f32
    %529 = vector.broadcast %cst_119 : f32 to vector<2x32xf32>
    %530 = arith.addf %529, %528 : vector<2x32xf32>
    %531 = arith.divf %529, %530 : vector<2x32xf32>
    %532 = vector.extract_strided_slice %525 {offsets = [0, 64], sizes = [2, 32], strides = [1, 1]} : vector<2x128xf32> to vector<2x32xf32>
    %533 = math.tanh %532 : vector<2x32xf32>
    %534 = vector.extract_strided_slice %525 {offsets = [0, 96], sizes = [2, 32], strides = [1, 1]} : vector<2x128xf32> to vector<2x32xf32>
    %535 = arith.negf %534 : vector<2x32xf32>
    %536 = math.exp %535 : vector<2x32xf32>
    %cst_120 = arith.constant 1.000000e+00 : f32
    %537 = vector.broadcast %cst_120 : f32 to vector<2x32xf32>
    %538 = arith.addf %537, %536 : vector<2x32xf32>
    %539 = arith.divf %537, %538 : vector<2x32xf32>
    %540 = arith.mulf %531, %533 : vector<2x32xf32>
    %541 = math.tanh %540 : vector<2x32xf32>
    %542 = arith.mulf %539, %541 : vector<2x32xf32>
    %cst_121 = arith.constant dense<0.000000e+00> : vector<2x128xf32>
    %543 = tpu.matmul %510, %514, %cst_121 {dimension_numbers = #tpu.dot_dimension_numbers<[1], [0], [0], [1], [0, 0, 1, 1], [], []>} : vector<2x64xf32>, vector<64x128xf32>, vector<2x128xf32> -> vector<2x128xf32>
    %544 = vector.broadcast %522 : vector<1x128xf32> to vector<2x128xf32>
    %545 = arith.addf %543, %544 : vector<2x128xf32>
    %546 = vector.extract_strided_slice %545 {offsets = [0, 0], sizes = [2, 32], strides = [1, 1]} : vector<2x128xf32> to vector<2x32xf32>
    %547 = arith.negf %546 : vector<2x32xf32>
    %548 = math.exp %547 : vector<2x32xf32>
    %cst_122 = arith.constant 1.000000e+00 : f32
    %549 = vector.broadcast %cst_122 : f32 to vector<2x32xf32>
    %550 = arith.addf %549, %548 : vector<2x32xf32>
    %551 = arith.divf %549, %550 : vector<2x32xf32>
    %552 = vector.extract_strided_slice %545 {offsets = [0, 64], sizes = [2, 32], strides = [1, 1]} : vector<2x128xf32> to vector<2x32xf32>
    %553 = math.tanh %552 : vector<2x32xf32>
    %554 = vector.extract_strided_slice %545 {offsets = [0, 96], sizes = [2, 32], strides = [1, 1]} : vector<2x128xf32> to vector<2x32xf32>
    %555 = arith.negf %554 : vector<2x32xf32>
    %556 = math.exp %555 : vector<2x32xf32>
    %cst_123 = arith.constant 1.000000e+00 : f32
    %557 = vector.broadcast %cst_123 : f32 to vector<2x32xf32>
    %558 = arith.addf %557, %556 : vector<2x32xf32>
    %559 = arith.divf %557, %558 : vector<2x32xf32>
    %560 = arith.mulf %551, %553 : vector<2x32xf32>
    %561 = math.tanh %560 : vector<2x32xf32>
    %562 = arith.mulf %559, %561 : vector<2x32xf32>
    %cst_124 = arith.constant dense<0.000000e+00> : vector<2x128xf32>
    %563 = tpu.matmul %504, %512, %cst_124 {dimension_numbers = #tpu.dot_dimension_numbers<[1], [0], [0], [1], [0, 0, 1, 1], [], []>} : vector<2x64xf32>, vector<64x128xf32>, vector<2x128xf32> -> vector<2x128xf32>
    %564 = vector.broadcast %520 : vector<1x128xf32> to vector<2x128xf32>
    %565 = arith.addf %563, %564 : vector<2x128xf32>
    %cst_125 = arith.constant dense<0.000000e+00> : vector<2x128xf32>
    %566 = tpu.matmul %542, %516, %cst_125 {dimension_numbers = #tpu.dot_dimension_numbers<[1], [0], [0], [1], [0, 0, 1, 1], [], []>} : vector<2x32xf32>, vector<32x128xf32>, vector<2x128xf32> -> vector<2x128xf32>
    %567 = arith.addf %565, %566 : vector<2x128xf32>
    %568 = vector.extract_strided_slice %567 {offsets = [0, 0], sizes = [2, 32], strides = [1, 1]} : vector<2x128xf32> to vector<2x32xf32>
    %569 = arith.negf %568 : vector<2x32xf32>
    %570 = math.exp %569 : vector<2x32xf32>
    %cst_126 = arith.constant 1.000000e+00 : f32
    %571 = vector.broadcast %cst_126 : f32 to vector<2x32xf32>
    %572 = arith.addf %571, %570 : vector<2x32xf32>
    %573 = arith.divf %571, %572 : vector<2x32xf32>
    %574 = vector.extract_strided_slice %567 {offsets = [0, 32], sizes = [2, 32], strides = [1, 1]} : vector<2x128xf32> to vector<2x32xf32>
    %575 = arith.negf %574 : vector<2x32xf32>
    %576 = math.exp %575 : vector<2x32xf32>
    %cst_127 = arith.constant 1.000000e+00 : f32
    %577 = vector.broadcast %cst_127 : f32 to vector<2x32xf32>
    %578 = arith.addf %577, %576 : vector<2x32xf32>
    %579 = arith.divf %577, %578 : vector<2x32xf32>
    %580 = vector.extract_strided_slice %567 {offsets = [0, 64], sizes = [2, 32], strides = [1, 1]} : vector<2x128xf32> to vector<2x32xf32>
    %581 = math.tanh %580 : vector<2x32xf32>
    %582 = vector.extract_strided_slice %567 {offsets = [0, 96], sizes = [2, 32], strides = [1, 1]} : vector<2x128xf32> to vector<2x32xf32>
    %583 = arith.negf %582 : vector<2x32xf32>
    %584 = math.exp %583 : vector<2x32xf32>
    %cst_128 = arith.constant 1.000000e+00 : f32
    %585 = vector.broadcast %cst_128 : f32 to vector<2x32xf32>
    %586 = arith.addf %585, %584 : vector<2x32xf32>
    %587 = arith.divf %585, %586 : vector<2x32xf32>
    %588 = arith.mulf %579, %540 : vector<2x32xf32>
    %589 = arith.mulf %573, %581 : vector<2x32xf32>
    %590 = arith.addf %588, %589 : vector<2x32xf32>
    %591 = math.tanh %590 : vector<2x32xf32>
    %592 = arith.mulf %587, %591 : vector<2x32xf32>
    %cst_129 = arith.constant dense<0.000000e+00> : vector<2x128xf32>
    %593 = tpu.matmul %509, %514, %cst_129 {dimension_numbers = #tpu.dot_dimension_numbers<[1], [0], [0], [1], [0, 0, 1, 1], [], []>} : vector<2x64xf32>, vector<64x128xf32>, vector<2x128xf32> -> vector<2x128xf32>
    %594 = vector.broadcast %522 : vector<1x128xf32> to vector<2x128xf32>
    %595 = arith.addf %593, %594 : vector<2x128xf32>
    %cst_130 = arith.constant dense<0.000000e+00> : vector<2x128xf32>
    %596 = tpu.matmul %562, %518, %cst_130 {dimension_numbers = #tpu.dot_dimension_numbers<[1], [0], [0], [1], [0, 0, 1, 1], [], []>} : vector<2x32xf32>, vector<32x128xf32>, vector<2x128xf32> -> vector<2x128xf32>
    %597 = arith.addf %595, %596 : vector<2x128xf32>
    %598 = vector.extract_strided_slice %597 {offsets = [0, 0], sizes = [2, 32], strides = [1, 1]} : vector<2x128xf32> to vector<2x32xf32>
    %599 = arith.negf %598 : vector<2x32xf32>
    %600 = math.exp %599 : vector<2x32xf32>
    %cst_131 = arith.constant 1.000000e+00 : f32
    %601 = vector.broadcast %cst_131 : f32 to vector<2x32xf32>
    %602 = arith.addf %601, %600 : vector<2x32xf32>
    %603 = arith.divf %601, %602 : vector<2x32xf32>
    %604 = vector.extract_strided_slice %597 {offsets = [0, 32], sizes = [2, 32], strides = [1, 1]} : vector<2x128xf32> to vector<2x32xf32>
    %605 = arith.negf %604 : vector<2x32xf32>
    %606 = math.exp %605 : vector<2x32xf32>
    %cst_132 = arith.constant 1.000000e+00 : f32
    %607 = vector.broadcast %cst_132 : f32 to vector<2x32xf32>
    %608 = arith.addf %607, %606 : vector<2x32xf32>
    %609 = arith.divf %607, %608 : vector<2x32xf32>
    %610 = vector.extract_strided_slice %597 {offsets = [0, 64], sizes = [2, 32], strides = [1, 1]} : vector<2x128xf32> to vector<2x32xf32>
    %611 = math.tanh %610 : vector<2x32xf32>
    %612 = vector.extract_strided_slice %597 {offsets = [0, 96], sizes = [2, 32], strides = [1, 1]} : vector<2x128xf32> to vector<2x32xf32>
    %613 = arith.negf %612 : vector<2x32xf32>
    %614 = math.exp %613 : vector<2x32xf32>
    %cst_133 = arith.constant 1.000000e+00 : f32
    %615 = vector.broadcast %cst_133 : f32 to vector<2x32xf32>
    %616 = arith.addf %615, %614 : vector<2x32xf32>
    %617 = arith.divf %615, %616 : vector<2x32xf32>
    %618 = arith.mulf %609, %560 : vector<2x32xf32>
    %619 = arith.mulf %603, %611 : vector<2x32xf32>
    %620 = arith.addf %618, %619 : vector<2x32xf32>
    %621 = math.tanh %620 : vector<2x32xf32>
    %622 = arith.mulf %617, %621 : vector<2x32xf32>
    %cst_134 = arith.constant dense<0.000000e+00> : vector<2x128xf32>
    %623 = tpu.matmul %505, %512, %cst_134 {dimension_numbers = #tpu.dot_dimension_numbers<[1], [0], [0], [1], [0, 0, 1, 1], [], []>} : vector<2x64xf32>, vector<64x128xf32>, vector<2x128xf32> -> vector<2x128xf32>
    %624 = vector.broadcast %520 : vector<1x128xf32> to vector<2x128xf32>
    %625 = arith.addf %623, %624 : vector<2x128xf32>
    %cst_135 = arith.constant dense<0.000000e+00> : vector<2x128xf32>
    %626 = tpu.matmul %592, %516, %cst_135 {dimension_numbers = #tpu.dot_dimension_numbers<[1], [0], [0], [1], [0, 0, 1, 1], [], []>} : vector<2x32xf32>, vector<32x128xf32>, vector<2x128xf32> -> vector<2x128xf32>
    %627 = arith.addf %625, %626 : vector<2x128xf32>
    %628 = vector.extract_strided_slice %627 {offsets = [0, 0], sizes = [2, 32], strides = [1, 1]} : vector<2x128xf32> to vector<2x32xf32>
    %629 = arith.negf %628 : vector<2x32xf32>
    %630 = math.exp %629 : vector<2x32xf32>
    %cst_136 = arith.constant 1.000000e+00 : f32
    %631 = vector.broadcast %cst_136 : f32 to vector<2x32xf32>
    %632 = arith.addf %631, %630 : vector<2x32xf32>
    %633 = arith.divf %631, %632 : vector<2x32xf32>
    %634 = vector.extract_strided_slice %627 {offsets = [0, 32], sizes = [2, 32], strides = [1, 1]} : vector<2x128xf32> to vector<2x32xf32>
    %635 = arith.negf %634 : vector<2x32xf32>
    %636 = math.exp %635 : vector<2x32xf32>
    %cst_137 = arith.constant 1.000000e+00 : f32
    %637 = vector.broadcast %cst_137 : f32 to vector<2x32xf32>
    %638 = arith.addf %637, %636 : vector<2x32xf32>
    %639 = arith.divf %637, %638 : vector<2x32xf32>
    %640 = vector.extract_strided_slice %627 {offsets = [0, 64], sizes = [2, 32], strides = [1, 1]} : vector<2x128xf32> to vector<2x32xf32>
    %641 = math.tanh %640 : vector<2x32xf32>
    %642 = vector.extract_strided_slice %627 {offsets = [0, 96], sizes = [2, 32], strides = [1, 1]} : vector<2x128xf32> to vector<2x32xf32>
    %643 = arith.negf %642 : vector<2x32xf32>
    %644 = math.exp %643 : vector<2x32xf32>
    %cst_138 = arith.constant 1.000000e+00 : f32
    %645 = vector.broadcast %cst_138 : f32 to vector<2x32xf32>
    %646 = arith.addf %645, %644 : vector<2x32xf32>
    %647 = arith.divf %645, %646 : vector<2x32xf32>
    %648 = arith.mulf %639, %590 : vector<2x32xf32>
    %649 = arith.mulf %633, %641 : vector<2x32xf32>
    %650 = arith.addf %648, %649 : vector<2x32xf32>
    %651 = math.tanh %650 : vector<2x32xf32>
    %652 = arith.mulf %647, %651 : vector<2x32xf32>
    %cst_139 = arith.constant dense<0.000000e+00> : vector<2x128xf32>
    %653 = tpu.matmul %508, %514, %cst_139 {dimension_numbers = #tpu.dot_dimension_numbers<[1], [0], [0], [1], [0, 0, 1, 1], [], []>} : vector<2x64xf32>, vector<64x128xf32>, vector<2x128xf32> -> vector<2x128xf32>
    %654 = vector.broadcast %522 : vector<1x128xf32> to vector<2x128xf32>
    %655 = arith.addf %653, %654 : vector<2x128xf32>
    %cst_140 = arith.constant dense<0.000000e+00> : vector<2x128xf32>
    %656 = tpu.matmul %622, %518, %cst_140 {dimension_numbers = #tpu.dot_dimension_numbers<[1], [0], [0], [1], [0, 0, 1, 1], [], []>} : vector<2x32xf32>, vector<32x128xf32>, vector<2x128xf32> -> vector<2x128xf32>
    %657 = arith.addf %655, %656 : vector<2x128xf32>
    %658 = vector.extract_strided_slice %657 {offsets = [0, 0], sizes = [2, 32], strides = [1, 1]} : vector<2x128xf32> to vector<2x32xf32>
    %659 = arith.negf %658 : vector<2x32xf32>
    %660 = math.exp %659 : vector<2x32xf32>
    %cst_141 = arith.constant 1.000000e+00 : f32
    %661 = vector.broadcast %cst_141 : f32 to vector<2x32xf32>
    %662 = arith.addf %661, %660 : vector<2x32xf32>
    %663 = arith.divf %661, %662 : vector<2x32xf32>
    %664 = vector.extract_strided_slice %657 {offsets = [0, 32], sizes = [2, 32], strides = [1, 1]} : vector<2x128xf32> to vector<2x32xf32>
    %665 = arith.negf %664 : vector<2x32xf32>
    %666 = math.exp %665 : vector<2x32xf32>
    %cst_142 = arith.constant 1.000000e+00 : f32
    %667 = vector.broadcast %cst_142 : f32 to vector<2x32xf32>
    %668 = arith.addf %667, %666 : vector<2x32xf32>
    %669 = arith.divf %667, %668 : vector<2x32xf32>
    %670 = vector.extract_strided_slice %657 {offsets = [0, 64], sizes = [2, 32], strides = [1, 1]} : vector<2x128xf32> to vector<2x32xf32>
    %671 = math.tanh %670 : vector<2x32xf32>
    %672 = vector.extract_strided_slice %657 {offsets = [0, 96], sizes = [2, 32], strides = [1, 1]} : vector<2x128xf32> to vector<2x32xf32>
    %673 = arith.negf %672 : vector<2x32xf32>
    %674 = math.exp %673 : vector<2x32xf32>
    %cst_143 = arith.constant 1.000000e+00 : f32
    %675 = vector.broadcast %cst_143 : f32 to vector<2x32xf32>
    %676 = arith.addf %675, %674 : vector<2x32xf32>
    %677 = arith.divf %675, %676 : vector<2x32xf32>
    %678 = arith.mulf %669, %620 : vector<2x32xf32>
    %679 = arith.mulf %663, %671 : vector<2x32xf32>
    %680 = arith.addf %678, %679 : vector<2x32xf32>
    %681 = math.tanh %680 : vector<2x32xf32>
    %682 = arith.mulf %677, %681 : vector<2x32xf32>
    %cst_144 = arith.constant dense<0.000000e+00> : vector<2x128xf32>
    %683 = tpu.matmul %506, %512, %cst_144 {dimension_numbers = #tpu.dot_dimension_numbers<[1], [0], [0], [1], [0, 0, 1, 1], [], []>} : vector<2x64xf32>, vector<64x128xf32>, vector<2x128xf32> -> vector<2x128xf32>
    %684 = vector.broadcast %520 : vector<1x128xf32> to vector<2x128xf32>
    %685 = arith.addf %683, %684 : vector<2x128xf32>
    %cst_145 = arith.constant dense<0.000000e+00> : vector<2x128xf32>
    %686 = tpu.matmul %652, %516, %cst_145 {dimension_numbers = #tpu.dot_dimension_numbers<[1], [0], [0], [1], [0, 0, 1, 1], [], []>} : vector<2x32xf32>, vector<32x128xf32>, vector<2x128xf32> -> vector<2x128xf32>
    %687 = arith.addf %685, %686 : vector<2x128xf32>
    %688 = vector.extract_strided_slice %687 {offsets = [0, 0], sizes = [2, 32], strides = [1, 1]} : vector<2x128xf32> to vector<2x32xf32>
    %689 = arith.negf %688 : vector<2x32xf32>
    %690 = math.exp %689 : vector<2x32xf32>
    %cst_146 = arith.constant 1.000000e+00 : f32
    %691 = vector.broadcast %cst_146 : f32 to vector<2x32xf32>
    %692 = arith.addf %691, %690 : vector<2x32xf32>
    %693 = arith.divf %691, %692 : vector<2x32xf32>
    %694 = vector.extract_strided_slice %687 {offsets = [0, 32], sizes = [2, 32], strides = [1, 1]} : vector<2x128xf32> to vector<2x32xf32>
    %695 = arith.negf %694 : vector<2x32xf32>
    %696 = math.exp %695 : vector<2x32xf32>
    %cst_147 = arith.constant 1.000000e+00 : f32
    %697 = vector.broadcast %cst_147 : f32 to vector<2x32xf32>
    %698 = arith.addf %697, %696 : vector<2x32xf32>
    %699 = arith.divf %697, %698 : vector<2x32xf32>
    %700 = vector.extract_strided_slice %687 {offsets = [0, 64], sizes = [2, 32], strides = [1, 1]} : vector<2x128xf32> to vector<2x32xf32>
    %701 = math.tanh %700 : vector<2x32xf32>
    %702 = vector.extract_strided_slice %687 {offsets = [0, 96], sizes = [2, 32], strides = [1, 1]} : vector<2x128xf32> to vector<2x32xf32>
    %703 = arith.negf %702 : vector<2x32xf32>
    %704 = math.exp %703 : vector<2x32xf32>
    %cst_148 = arith.constant 1.000000e+00 : f32
    %705 = vector.broadcast %cst_148 : f32 to vector<2x32xf32>
    %706 = arith.addf %705, %704 : vector<2x32xf32>
    %707 = arith.divf %705, %706 : vector<2x32xf32>
    %708 = arith.mulf %699, %650 : vector<2x32xf32>
    %709 = arith.mulf %693, %701 : vector<2x32xf32>
    %710 = arith.addf %708, %709 : vector<2x32xf32>
    %711 = math.tanh %710 : vector<2x32xf32>
    %712 = arith.mulf %707, %711 : vector<2x32xf32>
    %cst_149 = arith.constant dense<0.000000e+00> : vector<2x128xf32>
    %713 = tpu.matmul %507, %514, %cst_149 {dimension_numbers = #tpu.dot_dimension_numbers<[1], [0], [0], [1], [0, 0, 1, 1], [], []>} : vector<2x64xf32>, vector<64x128xf32>, vector<2x128xf32> -> vector<2x128xf32>
    %714 = vector.broadcast %522 : vector<1x128xf32> to vector<2x128xf32>
    %715 = arith.addf %713, %714 : vector<2x128xf32>
    %cst_150 = arith.constant dense<0.000000e+00> : vector<2x128xf32>
    %716 = tpu.matmul %682, %518, %cst_150 {dimension_numbers = #tpu.dot_dimension_numbers<[1], [0], [0], [1], [0, 0, 1, 1], [], []>} : vector<2x32xf32>, vector<32x128xf32>, vector<2x128xf32> -> vector<2x128xf32>
    %717 = arith.addf %715, %716 : vector<2x128xf32>
    %718 = vector.extract_strided_slice %717 {offsets = [0, 0], sizes = [2, 32], strides = [1, 1]} : vector<2x128xf32> to vector<2x32xf32>
    %719 = arith.negf %718 : vector<2x32xf32>
    %720 = math.exp %719 : vector<2x32xf32>
    %cst_151 = arith.constant 1.000000e+00 : f32
    %721 = vector.broadcast %cst_151 : f32 to vector<2x32xf32>
    %722 = arith.addf %721, %720 : vector<2x32xf32>
    %723 = arith.divf %721, %722 : vector<2x32xf32>
    %724 = vector.extract_strided_slice %717 {offsets = [0, 32], sizes = [2, 32], strides = [1, 1]} : vector<2x128xf32> to vector<2x32xf32>
    %725 = arith.negf %724 : vector<2x32xf32>
    %726 = math.exp %725 : vector<2x32xf32>
    %cst_152 = arith.constant 1.000000e+00 : f32
    %727 = vector.broadcast %cst_152 : f32 to vector<2x32xf32>
    %728 = arith.addf %727, %726 : vector<2x32xf32>
    %729 = arith.divf %727, %728 : vector<2x32xf32>
    %730 = vector.extract_strided_slice %717 {offsets = [0, 64], sizes = [2, 32], strides = [1, 1]} : vector<2x128xf32> to vector<2x32xf32>
    %731 = math.tanh %730 : vector<2x32xf32>
    %732 = vector.extract_strided_slice %717 {offsets = [0, 96], sizes = [2, 32], strides = [1, 1]} : vector<2x128xf32> to vector<2x32xf32>
    %733 = arith.negf %732 : vector<2x32xf32>
    %734 = math.exp %733 : vector<2x32xf32>
    %cst_153 = arith.constant 1.000000e+00 : f32
    %735 = vector.broadcast %cst_153 : f32 to vector<2x32xf32>
    %736 = arith.addf %735, %734 : vector<2x32xf32>
    %737 = arith.divf %735, %736 : vector<2x32xf32>
    %738 = arith.mulf %729, %680 : vector<2x32xf32>
    %739 = arith.mulf %723, %731 : vector<2x32xf32>
    %740 = arith.addf %738, %739 : vector<2x32xf32>
    %741 = math.tanh %740 : vector<2x32xf32>
    %742 = arith.mulf %737, %741 : vector<2x32xf32>
    %cst_154 = arith.constant dense<0.000000e+00> : vector<2x128xf32>
    %743 = tpu.matmul %507, %512, %cst_154 {dimension_numbers = #tpu.dot_dimension_numbers<[1], [0], [0], [1], [0, 0, 1, 1], [], []>} : vector<2x64xf32>, vector<64x128xf32>, vector<2x128xf32> -> vector<2x128xf32>
    %744 = vector.broadcast %520 : vector<1x128xf32> to vector<2x128xf32>
    %745 = arith.addf %743, %744 : vector<2x128xf32>
    %cst_155 = arith.constant dense<0.000000e+00> : vector<2x128xf32>
    %746 = tpu.matmul %712, %516, %cst_155 {dimension_numbers = #tpu.dot_dimension_numbers<[1], [0], [0], [1], [0, 0, 1, 1], [], []>} : vector<2x32xf32>, vector<32x128xf32>, vector<2x128xf32> -> vector<2x128xf32>
    %747 = arith.addf %745, %746 : vector<2x128xf32>
    %748 = vector.extract_strided_slice %747 {offsets = [0, 0], sizes = [2, 32], strides = [1, 1]} : vector<2x128xf32> to vector<2x32xf32>
    %749 = arith.negf %748 : vector<2x32xf32>
    %750 = math.exp %749 : vector<2x32xf32>
    %cst_156 = arith.constant 1.000000e+00 : f32
    %751 = vector.broadcast %cst_156 : f32 to vector<2x32xf32>
    %752 = arith.addf %751, %750 : vector<2x32xf32>
    %753 = arith.divf %751, %752 : vector<2x32xf32>
    %754 = vector.extract_strided_slice %747 {offsets = [0, 32], sizes = [2, 32], strides = [1, 1]} : vector<2x128xf32> to vector<2x32xf32>
    %755 = arith.negf %754 : vector<2x32xf32>
    %756 = math.exp %755 : vector<2x32xf32>
    %cst_157 = arith.constant 1.000000e+00 : f32
    %757 = vector.broadcast %cst_157 : f32 to vector<2x32xf32>
    %758 = arith.addf %757, %756 : vector<2x32xf32>
    %759 = arith.divf %757, %758 : vector<2x32xf32>
    %760 = vector.extract_strided_slice %747 {offsets = [0, 64], sizes = [2, 32], strides = [1, 1]} : vector<2x128xf32> to vector<2x32xf32>
    %761 = math.tanh %760 : vector<2x32xf32>
    %762 = vector.extract_strided_slice %747 {offsets = [0, 96], sizes = [2, 32], strides = [1, 1]} : vector<2x128xf32> to vector<2x32xf32>
    %763 = arith.negf %762 : vector<2x32xf32>
    %764 = math.exp %763 : vector<2x32xf32>
    %cst_158 = arith.constant 1.000000e+00 : f32
    %765 = vector.broadcast %cst_158 : f32 to vector<2x32xf32>
    %766 = arith.addf %765, %764 : vector<2x32xf32>
    %767 = arith.divf %765, %766 : vector<2x32xf32>
    %768 = arith.mulf %759, %710 : vector<2x32xf32>
    %769 = arith.mulf %753, %761 : vector<2x32xf32>
    %770 = arith.addf %768, %769 : vector<2x32xf32>
    %771 = math.tanh %770 : vector<2x32xf32>
    %772 = arith.mulf %767, %771 : vector<2x32xf32>
    %cst_159 = arith.constant dense<0.000000e+00> : vector<2x128xf32>
    %773 = tpu.matmul %506, %514, %cst_159 {dimension_numbers = #tpu.dot_dimension_numbers<[1], [0], [0], [1], [0, 0, 1, 1], [], []>} : vector<2x64xf32>, vector<64x128xf32>, vector<2x128xf32> -> vector<2x128xf32>
    %774 = vector.broadcast %522 : vector<1x128xf32> to vector<2x128xf32>
    %775 = arith.addf %773, %774 : vector<2x128xf32>
    %cst_160 = arith.constant dense<0.000000e+00> : vector<2x128xf32>
    %776 = tpu.matmul %742, %518, %cst_160 {dimension_numbers = #tpu.dot_dimension_numbers<[1], [0], [0], [1], [0, 0, 1, 1], [], []>} : vector<2x32xf32>, vector<32x128xf32>, vector<2x128xf32> -> vector<2x128xf32>
    %777 = arith.addf %775, %776 : vector<2x128xf32>
    %778 = vector.extract_strided_slice %777 {offsets = [0, 0], sizes = [2, 32], strides = [1, 1]} : vector<2x128xf32> to vector<2x32xf32>
    %779 = arith.negf %778 : vector<2x32xf32>
    %780 = math.exp %779 : vector<2x32xf32>
    %cst_161 = arith.constant 1.000000e+00 : f32
    %781 = vector.broadcast %cst_161 : f32 to vector<2x32xf32>
    %782 = arith.addf %781, %780 : vector<2x32xf32>
    %783 = arith.divf %781, %782 : vector<2x32xf32>
    %784 = vector.extract_strided_slice %777 {offsets = [0, 32], sizes = [2, 32], strides = [1, 1]} : vector<2x128xf32> to vector<2x32xf32>
    %785 = arith.negf %784 : vector<2x32xf32>
    %786 = math.exp %785 : vector<2x32xf32>
    %cst_162 = arith.constant 1.000000e+00 : f32
    %787 = vector.broadcast %cst_162 : f32 to vector<2x32xf32>
    %788 = arith.addf %787, %786 : vector<2x32xf32>
    %789 = arith.divf %787, %788 : vector<2x32xf32>
    %790 = vector.extract_strided_slice %777 {offsets = [0, 64], sizes = [2, 32], strides = [1, 1]} : vector<2x128xf32> to vector<2x32xf32>
    %791 = math.tanh %790 : vector<2x32xf32>
    %792 = vector.extract_strided_slice %777 {offsets = [0, 96], sizes = [2, 32], strides = [1, 1]} : vector<2x128xf32> to vector<2x32xf32>
    %793 = arith.negf %792 : vector<2x32xf32>
    %794 = math.exp %793 : vector<2x32xf32>
    %cst_163 = arith.constant 1.000000e+00 : f32
    %795 = vector.broadcast %cst_163 : f32 to vector<2x32xf32>
    %796 = arith.addf %795, %794 : vector<2x32xf32>
    %797 = arith.divf %795, %796 : vector<2x32xf32>
    %798 = arith.mulf %789, %740 : vector<2x32xf32>
    %799 = arith.mulf %783, %791 : vector<2x32xf32>
    %800 = arith.addf %798, %799 : vector<2x32xf32>
    %801 = math.tanh %800 : vector<2x32xf32>
    %802 = arith.mulf %797, %801 : vector<2x32xf32>
    %cst_164 = arith.constant dense<0.000000e+00> : vector<2x128xf32>
    %803 = tpu.matmul %508, %512, %cst_164 {dimension_numbers = #tpu.dot_dimension_numbers<[1], [0], [0], [1], [0, 0, 1, 1], [], []>} : vector<2x64xf32>, vector<64x128xf32>, vector<2x128xf32> -> vector<2x128xf32>
    %804 = vector.broadcast %520 : vector<1x128xf32> to vector<2x128xf32>
    %805 = arith.addf %803, %804 : vector<2x128xf32>
    %cst_165 = arith.constant dense<0.000000e+00> : vector<2x128xf32>
    %806 = tpu.matmul %772, %516, %cst_165 {dimension_numbers = #tpu.dot_dimension_numbers<[1], [0], [0], [1], [0, 0, 1, 1], [], []>} : vector<2x32xf32>, vector<32x128xf32>, vector<2x128xf32> -> vector<2x128xf32>
    %807 = arith.addf %805, %806 : vector<2x128xf32>
    %808 = vector.extract_strided_slice %807 {offsets = [0, 0], sizes = [2, 32], strides = [1, 1]} : vector<2x128xf32> to vector<2x32xf32>
    %809 = arith.negf %808 : vector<2x32xf32>
    %810 = math.exp %809 : vector<2x32xf32>
    %cst_166 = arith.constant 1.000000e+00 : f32
    %811 = vector.broadcast %cst_166 : f32 to vector<2x32xf32>
    %812 = arith.addf %811, %810 : vector<2x32xf32>
    %813 = arith.divf %811, %812 : vector<2x32xf32>
    %814 = vector.extract_strided_slice %807 {offsets = [0, 32], sizes = [2, 32], strides = [1, 1]} : vector<2x128xf32> to vector<2x32xf32>
    %815 = arith.negf %814 : vector<2x32xf32>
    %816 = math.exp %815 : vector<2x32xf32>
    %cst_167 = arith.constant 1.000000e+00 : f32
    %817 = vector.broadcast %cst_167 : f32 to vector<2x32xf32>
    %818 = arith.addf %817, %816 : vector<2x32xf32>
    %819 = arith.divf %817, %818 : vector<2x32xf32>
    %820 = vector.extract_strided_slice %807 {offsets = [0, 64], sizes = [2, 32], strides = [1, 1]} : vector<2x128xf32> to vector<2x32xf32>
    %821 = math.tanh %820 : vector<2x32xf32>
    %822 = vector.extract_strided_slice %807 {offsets = [0, 96], sizes = [2, 32], strides = [1, 1]} : vector<2x128xf32> to vector<2x32xf32>
    %823 = arith.negf %822 : vector<2x32xf32>
    %824 = math.exp %823 : vector<2x32xf32>
    %cst_168 = arith.constant 1.000000e+00 : f32
    %825 = vector.broadcast %cst_168 : f32 to vector<2x32xf32>
    %826 = arith.addf %825, %824 : vector<2x32xf32>
    %827 = arith.divf %825, %826 : vector<2x32xf32>
    %828 = arith.mulf %819, %770 : vector<2x32xf32>
    %829 = arith.mulf %813, %821 : vector<2x32xf32>
    %830 = arith.addf %828, %829 : vector<2x32xf32>
    %831 = math.tanh %830 : vector<2x32xf32>
    %832 = arith.mulf %827, %831 : vector<2x32xf32>
    %cst_169 = arith.constant dense<0.000000e+00> : vector<2x128xf32>
    %833 = tpu.matmul %505, %514, %cst_169 {dimension_numbers = #tpu.dot_dimension_numbers<[1], [0], [0], [1], [0, 0, 1, 1], [], []>} : vector<2x64xf32>, vector<64x128xf32>, vector<2x128xf32> -> vector<2x128xf32>
    %834 = vector.broadcast %522 : vector<1x128xf32> to vector<2x128xf32>
    %835 = arith.addf %833, %834 : vector<2x128xf32>
    %cst_170 = arith.constant dense<0.000000e+00> : vector<2x128xf32>
    %836 = tpu.matmul %802, %518, %cst_170 {dimension_numbers = #tpu.dot_dimension_numbers<[1], [0], [0], [1], [0, 0, 1, 1], [], []>} : vector<2x32xf32>, vector<32x128xf32>, vector<2x128xf32> -> vector<2x128xf32>
    %837 = arith.addf %835, %836 : vector<2x128xf32>
    %838 = vector.extract_strided_slice %837 {offsets = [0, 0], sizes = [2, 32], strides = [1, 1]} : vector<2x128xf32> to vector<2x32xf32>
    %839 = arith.negf %838 : vector<2x32xf32>
    %840 = math.exp %839 : vector<2x32xf32>
    %cst_171 = arith.constant 1.000000e+00 : f32
    %841 = vector.broadcast %cst_171 : f32 to vector<2x32xf32>
    %842 = arith.addf %841, %840 : vector<2x32xf32>
    %843 = arith.divf %841, %842 : vector<2x32xf32>
    %844 = vector.extract_strided_slice %837 {offsets = [0, 32], sizes = [2, 32], strides = [1, 1]} : vector<2x128xf32> to vector<2x32xf32>
    %845 = arith.negf %844 : vector<2x32xf32>
    %846 = math.exp %845 : vector<2x32xf32>
    %cst_172 = arith.constant 1.000000e+00 : f32
    %847 = vector.broadcast %cst_172 : f32 to vector<2x32xf32>
    %848 = arith.addf %847, %846 : vector<2x32xf32>
    %849 = arith.divf %847, %848 : vector<2x32xf32>
    %850 = vector.extract_strided_slice %837 {offsets = [0, 64], sizes = [2, 32], strides = [1, 1]} : vector<2x128xf32> to vector<2x32xf32>
    %851 = math.tanh %850 : vector<2x32xf32>
    %852 = vector.extract_strided_slice %837 {offsets = [0, 96], sizes = [2, 32], strides = [1, 1]} : vector<2x128xf32> to vector<2x32xf32>
    %853 = arith.negf %852 : vector<2x32xf32>
    %854 = math.exp %853 : vector<2x32xf32>
    %cst_173 = arith.constant 1.000000e+00 : f32
    %855 = vector.broadcast %cst_173 : f32 to vector<2x32xf32>
    %856 = arith.addf %855, %854 : vector<2x32xf32>
    %857 = arith.divf %855, %856 : vector<2x32xf32>
    %858 = arith.mulf %849, %800 : vector<2x32xf32>
    %859 = arith.mulf %843, %851 : vector<2x32xf32>
    %860 = arith.addf %858, %859 : vector<2x32xf32>
    %861 = math.tanh %860 : vector<2x32xf32>
    %862 = arith.mulf %857, %861 : vector<2x32xf32>
    %cst_174 = arith.constant dense<0.000000e+00> : vector<2x128xf32>
    %863 = tpu.matmul %509, %512, %cst_174 {dimension_numbers = #tpu.dot_dimension_numbers<[1], [0], [0], [1], [0, 0, 1, 1], [], []>} : vector<2x64xf32>, vector<64x128xf32>, vector<2x128xf32> -> vector<2x128xf32>
    %864 = vector.broadcast %520 : vector<1x128xf32> to vector<2x128xf32>
    %865 = arith.addf %863, %864 : vector<2x128xf32>
    %cst_175 = arith.constant dense<0.000000e+00> : vector<2x128xf32>
    %866 = tpu.matmul %832, %516, %cst_175 {dimension_numbers = #tpu.dot_dimension_numbers<[1], [0], [0], [1], [0, 0, 1, 1], [], []>} : vector<2x32xf32>, vector<32x128xf32>, vector<2x128xf32> -> vector<2x128xf32>
    %867 = arith.addf %865, %866 : vector<2x128xf32>
    %868 = vector.extract_strided_slice %867 {offsets = [0, 0], sizes = [2, 32], strides = [1, 1]} : vector<2x128xf32> to vector<2x32xf32>
    %869 = arith.negf %868 : vector<2x32xf32>
    %870 = math.exp %869 : vector<2x32xf32>
    %cst_176 = arith.constant 1.000000e+00 : f32
    %871 = vector.broadcast %cst_176 : f32 to vector<2x32xf32>
    %872 = arith.addf %871, %870 : vector<2x32xf32>
    %873 = arith.divf %871, %872 : vector<2x32xf32>
    %874 = vector.extract_strided_slice %867 {offsets = [0, 32], sizes = [2, 32], strides = [1, 1]} : vector<2x128xf32> to vector<2x32xf32>
    %875 = arith.negf %874 : vector<2x32xf32>
    %876 = math.exp %875 : vector<2x32xf32>
    %cst_177 = arith.constant 1.000000e+00 : f32
    %877 = vector.broadcast %cst_177 : f32 to vector<2x32xf32>
    %878 = arith.addf %877, %876 : vector<2x32xf32>
    %879 = arith.divf %877, %878 : vector<2x32xf32>
    %880 = vector.extract_strided_slice %867 {offsets = [0, 64], sizes = [2, 32], strides = [1, 1]} : vector<2x128xf32> to vector<2x32xf32>
    %881 = math.tanh %880 : vector<2x32xf32>
    %882 = vector.extract_strided_slice %867 {offsets = [0, 96], sizes = [2, 32], strides = [1, 1]} : vector<2x128xf32> to vector<2x32xf32>
    %883 = arith.negf %882 : vector<2x32xf32>
    %884 = math.exp %883 : vector<2x32xf32>
    %cst_178 = arith.constant 1.000000e+00 : f32
    %885 = vector.broadcast %cst_178 : f32 to vector<2x32xf32>
    %886 = arith.addf %885, %884 : vector<2x32xf32>
    %887 = arith.divf %885, %886 : vector<2x32xf32>
    %888 = arith.mulf %879, %830 : vector<2x32xf32>
    %889 = arith.mulf %873, %881 : vector<2x32xf32>
    %890 = arith.addf %888, %889 : vector<2x32xf32>
    %891 = math.tanh %890 : vector<2x32xf32>
    %892 = arith.mulf %887, %891 : vector<2x32xf32>
    %cst_179 = arith.constant dense<0.000000e+00> : vector<2x128xf32>
    %893 = tpu.matmul %504, %514, %cst_179 {dimension_numbers = #tpu.dot_dimension_numbers<[1], [0], [0], [1], [0, 0, 1, 1], [], []>} : vector<2x64xf32>, vector<64x128xf32>, vector<2x128xf32> -> vector<2x128xf32>
    %894 = vector.broadcast %522 : vector<1x128xf32> to vector<2x128xf32>
    %895 = arith.addf %893, %894 : vector<2x128xf32>
    %cst_180 = arith.constant dense<0.000000e+00> : vector<2x128xf32>
    %896 = tpu.matmul %862, %518, %cst_180 {dimension_numbers = #tpu.dot_dimension_numbers<[1], [0], [0], [1], [0, 0, 1, 1], [], []>} : vector<2x32xf32>, vector<32x128xf32>, vector<2x128xf32> -> vector<2x128xf32>
    %897 = arith.addf %895, %896 : vector<2x128xf32>
    %898 = vector.extract_strided_slice %897 {offsets = [0, 0], sizes = [2, 32], strides = [1, 1]} : vector<2x128xf32> to vector<2x32xf32>
    %899 = arith.negf %898 : vector<2x32xf32>
    %900 = math.exp %899 : vector<2x32xf32>
    %cst_181 = arith.constant 1.000000e+00 : f32
    %901 = vector.broadcast %cst_181 : f32 to vector<2x32xf32>
    %902 = arith.addf %901, %900 : vector<2x32xf32>
    %903 = arith.divf %901, %902 : vector<2x32xf32>
    %904 = vector.extract_strided_slice %897 {offsets = [0, 32], sizes = [2, 32], strides = [1, 1]} : vector<2x128xf32> to vector<2x32xf32>
    %905 = arith.negf %904 : vector<2x32xf32>
    %906 = math.exp %905 : vector<2x32xf32>
    %cst_182 = arith.constant 1.000000e+00 : f32
    %907 = vector.broadcast %cst_182 : f32 to vector<2x32xf32>
    %908 = arith.addf %907, %906 : vector<2x32xf32>
    %909 = arith.divf %907, %908 : vector<2x32xf32>
    %910 = vector.extract_strided_slice %897 {offsets = [0, 64], sizes = [2, 32], strides = [1, 1]} : vector<2x128xf32> to vector<2x32xf32>
    %911 = math.tanh %910 : vector<2x32xf32>
    %912 = vector.extract_strided_slice %897 {offsets = [0, 96], sizes = [2, 32], strides = [1, 1]} : vector<2x128xf32> to vector<2x32xf32>
    %913 = arith.negf %912 : vector<2x32xf32>
    %914 = math.exp %913 : vector<2x32xf32>
    %cst_183 = arith.constant 1.000000e+00 : f32
    %915 = vector.broadcast %cst_183 : f32 to vector<2x32xf32>
    %916 = arith.addf %915, %914 : vector<2x32xf32>
    %917 = arith.divf %915, %916 : vector<2x32xf32>
    %918 = arith.mulf %909, %860 : vector<2x32xf32>
    %919 = arith.mulf %903, %911 : vector<2x32xf32>
    %920 = arith.addf %918, %919 : vector<2x32xf32>
    %921 = math.tanh %920 : vector<2x32xf32>
    %922 = arith.mulf %917, %921 : vector<2x32xf32>
    %cst_184 = arith.constant dense<0.000000e+00> : vector<2x128xf32>
    %923 = tpu.matmul %510, %512, %cst_184 {dimension_numbers = #tpu.dot_dimension_numbers<[1], [0], [0], [1], [0, 0, 1, 1], [], []>} : vector<2x64xf32>, vector<64x128xf32>, vector<2x128xf32> -> vector<2x128xf32>
    %924 = vector.broadcast %520 : vector<1x128xf32> to vector<2x128xf32>
    %925 = arith.addf %923, %924 : vector<2x128xf32>
    %cst_185 = arith.constant dense<0.000000e+00> : vector<2x128xf32>
    %926 = tpu.matmul %892, %516, %cst_185 {dimension_numbers = #tpu.dot_dimension_numbers<[1], [0], [0], [1], [0, 0, 1, 1], [], []>} : vector<2x32xf32>, vector<32x128xf32>, vector<2x128xf32> -> vector<2x128xf32>
    %927 = arith.addf %925, %926 : vector<2x128xf32>
    %928 = vector.extract_strided_slice %927 {offsets = [0, 0], sizes = [2, 32], strides = [1, 1]} : vector<2x128xf32> to vector<2x32xf32>
    %929 = arith.negf %928 : vector<2x32xf32>
    %930 = math.exp %929 : vector<2x32xf32>
    %cst_186 = arith.constant 1.000000e+00 : f32
    %931 = vector.broadcast %cst_186 : f32 to vector<2x32xf32>
    %932 = arith.addf %931, %930 : vector<2x32xf32>
    %933 = arith.divf %931, %932 : vector<2x32xf32>
    %934 = vector.extract_strided_slice %927 {offsets = [0, 32], sizes = [2, 32], strides = [1, 1]} : vector<2x128xf32> to vector<2x32xf32>
    %935 = arith.negf %934 : vector<2x32xf32>
    %936 = math.exp %935 : vector<2x32xf32>
    %cst_187 = arith.constant 1.000000e+00 : f32
    %937 = vector.broadcast %cst_187 : f32 to vector<2x32xf32>
    %938 = arith.addf %937, %936 : vector<2x32xf32>
    %939 = arith.divf %937, %938 : vector<2x32xf32>
    %940 = vector.extract_strided_slice %927 {offsets = [0, 64], sizes = [2, 32], strides = [1, 1]} : vector<2x128xf32> to vector<2x32xf32>
    %941 = math.tanh %940 : vector<2x32xf32>
    %942 = vector.extract_strided_slice %927 {offsets = [0, 96], sizes = [2, 32], strides = [1, 1]} : vector<2x128xf32> to vector<2x32xf32>
    %943 = arith.negf %942 : vector<2x32xf32>
    %944 = math.exp %943 : vector<2x32xf32>
    %cst_188 = arith.constant 1.000000e+00 : f32
    %945 = vector.broadcast %cst_188 : f32 to vector<2x32xf32>
    %946 = arith.addf %945, %944 : vector<2x32xf32>
    %947 = arith.divf %945, %946 : vector<2x32xf32>
    %948 = arith.mulf %939, %890 : vector<2x32xf32>
    %949 = arith.mulf %933, %941 : vector<2x32xf32>
    %950 = arith.addf %948, %949 : vector<2x32xf32>
    %951 = math.tanh %950 : vector<2x32xf32>
    %952 = arith.mulf %947, %951 : vector<2x32xf32>
    %cst_189 = arith.constant dense<0.000000e+00> : vector<2x128xf32>
    %953 = tpu.matmul %503, %514, %cst_189 {dimension_numbers = #tpu.dot_dimension_numbers<[1], [0], [0], [1], [0, 0, 1, 1], [], []>} : vector<2x64xf32>, vector<64x128xf32>, vector<2x128xf32> -> vector<2x128xf32>
    %954 = vector.broadcast %522 : vector<1x128xf32> to vector<2x128xf32>
    %955 = arith.addf %953, %954 : vector<2x128xf32>
    %cst_190 = arith.constant dense<0.000000e+00> : vector<2x128xf32>
    %956 = tpu.matmul %922, %518, %cst_190 {dimension_numbers = #tpu.dot_dimension_numbers<[1], [0], [0], [1], [0, 0, 1, 1], [], []>} : vector<2x32xf32>, vector<32x128xf32>, vector<2x128xf32> -> vector<2x128xf32>
    %957 = arith.addf %955, %956 : vector<2x128xf32>
    %958 = vector.extract_strided_slice %957 {offsets = [0, 0], sizes = [2, 32], strides = [1, 1]} : vector<2x128xf32> to vector<2x32xf32>
    %959 = arith.negf %958 : vector<2x32xf32>
    %960 = math.exp %959 : vector<2x32xf32>
    %cst_191 = arith.constant 1.000000e+00 : f32
    %961 = vector.broadcast %cst_191 : f32 to vector<2x32xf32>
    %962 = arith.addf %961, %960 : vector<2x32xf32>
    %963 = arith.divf %961, %962 : vector<2x32xf32>
    %964 = vector.extract_strided_slice %957 {offsets = [0, 32], sizes = [2, 32], strides = [1, 1]} : vector<2x128xf32> to vector<2x32xf32>
    %965 = arith.negf %964 : vector<2x32xf32>
    %966 = math.exp %965 : vector<2x32xf32>
    %cst_192 = arith.constant 1.000000e+00 : f32
    %967 = vector.broadcast %cst_192 : f32 to vector<2x32xf32>
    %968 = arith.addf %967, %966 : vector<2x32xf32>
    %969 = arith.divf %967, %968 : vector<2x32xf32>
    %970 = vector.extract_strided_slice %957 {offsets = [0, 64], sizes = [2, 32], strides = [1, 1]} : vector<2x128xf32> to vector<2x32xf32>
    %971 = math.tanh %970 : vector<2x32xf32>
    %972 = vector.extract_strided_slice %957 {offsets = [0, 96], sizes = [2, 32], strides = [1, 1]} : vector<2x128xf32> to vector<2x32xf32>
    %973 = arith.negf %972 : vector<2x32xf32>
    %974 = math.exp %973 : vector<2x32xf32>
    %cst_193 = arith.constant 1.000000e+00 : f32
    %975 = vector.broadcast %cst_193 : f32 to vector<2x32xf32>
    %976 = arith.addf %975, %974 : vector<2x32xf32>
    %977 = arith.divf %975, %976 : vector<2x32xf32>
    %978 = arith.mulf %969, %920 : vector<2x32xf32>
    %979 = arith.mulf %963, %971 : vector<2x32xf32>
    %980 = arith.addf %978, %979 : vector<2x32xf32>
    %981 = math.tanh %980 : vector<2x32xf32>
    %982 = arith.mulf %977, %981 : vector<2x32xf32>
    %983 = tpu.concatenate %542, %982 in 1 : vector<2x32xf32>, vector<2x32xf32> -> vector<2x64xf32>
    %984 = tpu.concatenate %592, %922 in 1 : vector<2x32xf32>, vector<2x32xf32> -> vector<2x64xf32>
    %985 = tpu.concatenate %652, %862 in 1 : vector<2x32xf32>, vector<2x32xf32> -> vector<2x64xf32>
    %986 = tpu.concatenate %712, %802 in 1 : vector<2x32xf32>, vector<2x32xf32> -> vector<2x64xf32>
    %987 = tpu.concatenate %772, %742 in 1 : vector<2x32xf32>, vector<2x32xf32> -> vector<2x64xf32>
    %988 = tpu.concatenate %832, %682 in 1 : vector<2x32xf32>, vector<2x32xf32> -> vector<2x64xf32>
    %989 = tpu.concatenate %892, %622 in 1 : vector<2x32xf32>, vector<2x32xf32> -> vector<2x64xf32>
    %990 = tpu.concatenate %952, %562 in 1 : vector<2x32xf32>, vector<2x32xf32> -> vector<2x64xf32>
    %991 = tpu.concatenate %983, %984, %985, %986, %987, %988, %989, %990 in 0 : vector<2x64xf32>, vector<2x64xf32>, vector<2x64xf32>, vector<2x64xf32>, vector<2x64xf32>, vector<2x64xf32>, vector<2x64xf32>, vector<2x64xf32> -> vector<16x64xf32>
    %c0_194 = arith.constant 0 : index
    %c0_195 = arith.constant 0 : index
    %992 = vector.load %arg11[%c0_194, %c0_195] : memref<64x16xf32, #tpu.memory_space<vmem>>, vector<64x16xf32>
    %cst_196 = arith.constant dense<0.000000e+00> : vector<16x16xf32>
    %993 = tpu.matmul %991, %992, %cst_196 {dimension_numbers = #tpu.dot_dimension_numbers<[1], [0], [0], [1], [0, 0, 1, 1], [], []>} : vector<16x64xf32>, vector<64x16xf32>, vector<16x16xf32> -> vector<16x16xf32>
    %c0_197 = arith.constant 0 : index
    %c0_198 = arith.constant 0 : index
    %994 = vector.load %arg12[%c0_197, %c0_198] : memref<1x16xf32, #tpu.memory_space<vmem>>, vector<1x16xf32>
    %995 = vector.broadcast %994 : vector<1x16xf32> to vector<16x16xf32>
    %996 = arith.addf %993, %995 : vector<16x16xf32>
    %c0_199 = arith.constant 0 : index
    %c0_200 = arith.constant 0 : index
    %997 = vector.load %arg13[%c0_199, %c0_200] : memref<16x16xf32, #tpu.memory_space<vmem>>, vector<16x16xf32>
    tpu.vector_store %arg13[%c0_199, %c0_200], %996 {strides = array<i32>} : memref<16x16xf32, #tpu.memory_space<vmem>>, vector<16x16xf32>,
    return
  }
  func.func @transform_0(%arg0: i32) -> (i32, i32) {
    %c0_i32 = arith.constant 0 : i32
    %c0_i32_0 = arith.constant 0 : i32
    %c0_i32_1 = arith.constant 0 : i32
    return %c0_i32, %c0_i32_0 : i32, i32
  }
  func.func @transform_1(%arg0: i32) -> (i32, i32) {
    %c0_i32 = arith.constant 0 : i32
    %c0_i32_0 = arith.constant 0 : i32
    %c0_i32_1 = arith.constant 0 : i32
    return %c0_i32, %c0_i32_0 : i32, i32
  }
  func.func @transform_2(%arg0: i32) -> (i32, i32) {
    %c0_i32 = arith.constant 0 : i32
    %c0_i32_0 = arith.constant 0 : i32
    %c0_i32_1 = arith.constant 0 : i32
    return %c0_i32, %c0_i32_0 : i32, i32
  }
  func.func @transform_3(%arg0: i32) -> (i32, i32) {
    %c0_i32 = arith.constant 0 : i32
    %c0_i32_0 = arith.constant 0 : i32
    %c0_i32_1 = arith.constant 0 : i32
    return %c0_i32, %c0_i32_0 : i32, i32
  }
  func.func @transform_4(%arg0: i32) -> (i32, i32, i32) {
    %c0_i32 = arith.constant 0 : i32
    %c0_i32_0 = arith.constant 0 : i32
    %c0_i32_1 = arith.constant 0 : i32
    %c0_i32_2 = arith.constant 0 : i32
    return %c0_i32, %c0_i32_0, %c0_i32_1 : i32, i32, i32
  }
  func.func @transform_5(%arg0: i32) -> (i32, i32, i32) {
    %c0_i32 = arith.constant 0 : i32
    %c0_i32_0 = arith.constant 0 : i32
    %c0_i32_1 = arith.constant 0 : i32
    %c0_i32_2 = arith.constant 0 : i32
    return %c0_i32, %c0_i32_0, %c0_i32_1 : i32, i32, i32
  }
  func.func @transform_6(%arg0: i32) -> (i32, i32, i32) {
    %c0_i32 = arith.constant 0 : i32
    %c0_i32_0 = arith.constant 0 : i32
    %c0_i32_1 = arith.constant 0 : i32
    %c0_i32_2 = arith.constant 0 : i32
    return %c0_i32, %c0_i32_0, %c0_i32_1 : i32, i32, i32
  }
  func.func @transform_7(%arg0: i32) -> (i32, i32, i32) {
    %c0_i32 = arith.constant 0 : i32
    %c0_i32_0 = arith.constant 0 : i32
    %c0_i32_1 = arith.constant 0 : i32
    %c0_i32_2 = arith.constant 0 : i32
    return %c0_i32, %c0_i32_0, %c0_i32_1 : i32, i32, i32
  }
  func.func @transform_8(%arg0: i32) -> (i32, i32, i32) {
    %c0_i32 = arith.constant 0 : i32
    %c0_i32_0 = arith.constant 0 : i32
    %c0_i32_1 = arith.constant 0 : i32
    %c0_i32_2 = arith.constant 0 : i32
    return %c0_i32, %c0_i32_0, %c0_i32_1 : i32, i32, i32
  }
  func.func @transform_9(%arg0: i32) -> (i32, i32, i32) {
    %c0_i32 = arith.constant 0 : i32
    %c0_i32_0 = arith.constant 0 : i32
    %c0_i32_1 = arith.constant 0 : i32
    %c0_i32_2 = arith.constant 0 : i32
    return %c0_i32, %c0_i32_0, %c0_i32_1 : i32, i32, i32
  }
  func.func @transform_10(%arg0: i32) -> (i32, i32) {
    %c0_i32 = arith.constant 0 : i32
    %c0_i32_0 = arith.constant 0 : i32
    %c0_i32_1 = arith.constant 0 : i32
    return %c0_i32, %c0_i32_0 : i32, i32
  }
  func.func @transform_11(%arg0: i32) -> (i32, i32) {
    %c0_i32 = arith.constant 0 : i32
    %c0_i32_0 = arith.constant 0 : i32
    %c0_i32_1 = arith.constant 0 : i32
    return %c0_i32, %c0_i32_0 : i32, i32
  }
  func.func @transform_12(%arg0: i32) -> (i32, i32) {
    %c0_i32 = arith.constant 0 : i32
    %c0_i32_0 = arith.constant 0 : i32
    %c0_i32_1 = arith.constant 0 : i32
    return %c0_i32, %c0_i32_0 : i32, i32
  }
}

</mosaic_0001>

<bundles_post_ra>
// kernel: _lambda_.1
= control target key start
LH: loop header
LB: loop body
LE: loop exit
PB: predicated region body
PF: predicated region fallthrough
CT: control target
= control target key end

     0   :  { %vm64_vm0 = vcmask 392192   ;;  %s9823_s0 = inlined_call_operand.vmem [shape: f32[16,32], index: 0, kind: input, shape index: {}]   ;;  %s9824_s1 = inlined_call_operand.vmem [shape: f32[128,48], index: 1, kind: input, shape index: {}]   ;;  %s9825_s2 = inlined_call_operand.vmem [shape: f32[48,32], index: 2, kind: input, shape index: {}]   ;;  %s9826_s3 = inlined_call_operand.vmem [shape: f32[1,32], index: 3, kind: input, shape index: {}]   ;;  %s9827_s4 = inlined_call_operand.vmem [shape: f32[2,64,128], index: 4, kind: input, shape index: {}]   ;;  %s9828_s5 = inlined_call_operand.vmem [shape: f32[2,32,128], index: 5, kind: input, shape index: {}]   ;;  %s9829_s6 = inlined_call_operand.vmem [shape: f32[2,1,128], index: 6, kind: input, shape index: {}]   ;;  %s9830_s7 = inlined_call_operand.vmem [shape: f32[2,64,128], index: 7, kind: input, shape index: {}]   ;;  %s9831_s8 = inlined_call_operand.vmem [shape: f32[2,32,128], index: 8, kind: input, shape index: {}]   ;;  %s9832_s9 = inlined_call_operand.vmem [shape: f32[2,1,128], index: 9, kind: input, shape index: {}]   ;;  %s9833_s10 = inlined_call_operand.vmem [shape: f32[64,16], index: 10, kind: input, shape index: {}]   ;;  %s9834_s11 = inlined_call_operand.vmem [shape: f32[1,16], index: 11, kind: input, shape index: {}]   ;;  %s9835_s12 = inlined_call_operand.hbm [shape: f32[16,16], index: 12, kind: output, shape index: {}]  }
   0x1   :  { %v63_v0 = vld [vmem:[%s9825_s2 + $0x28] sm:$0xff]  ;;  %v62_v1 = vld [vmem:[%s9825_s2 + $0x20] sm:$0xff]  ;;  %v61_v2 = vld [vmem:[%s9825_s2 + $0x18] sm:$0xff] }
   0x2   :  { %6385 = vmatprep.subr.mxu0 %v63_v0  ;;  %v42_v3 = vld [vmem:[%s9824_s1] sm:$0xff]  ;;  %v60_v4 = vld [vmem:[%s9825_s2 + $0x10] sm:$0xff]  ;;  %v59_v5 = vld [vmem:[%s9825_s2 + $0x8] sm:$0xff] }
   0x3   :  { %6386 = vmatpush3.msra.mxu0 %v63_v0  ;;  %6397 = vmatprep.mubr.msk.f32.mxu0 %vm64_vm0, %v42_v3 }
   0x4   :  { %6387 = vmatprep.subr.mxu0 %v62_v1 }
   0x5   :  { %6388 = vmatpush3.msra.mxu0 %v62_v1 }
   0x6   :  { %6389 = vmatprep.subr.mxu0 %v61_v2 }
   0x7   :  { %6390 = vmatpush3.msra.mxu0 %v61_v2 }
   0x8   :  { %6391 = vmatprep.subr.mxu0 %v60_v4 }
   0x9   :  { %17 = vsyncpa [#allocation3], 0  ;;  %6392 = vmatpush3.msra.mxu0 %v60_v4  ;;  %v58_v6 = vld [vmem:[%s9825_s2] sm:$0xff]  ;;  %v43_v7 = vld [vmem:[%s9824_s1 + $0x8] sm:$0xff]  ;;  %v7694_v23 = vmov 0.0   ;;  %vm7695_vm1 = vmmov 0  }
   0xa   :  { %6393 = vmatprep.subr.mxu0 %v59_v5  ;;  %v44_v8 = vld [vmem:[%s9824_s1 + $0x10] sm:$0xff]  ;;  %v45_v9 = vld [vmem:[%s9824_s1 + $0x18] sm:$0xff]  ;;  %v46_v10 = vld [vmem:[%s9824_s1 + $0x20] sm:$0xff]  ;;  %6421 = vmatprep.subr.mxu1 %v7694_v23  ;;  %s7696_s25 = smov 32   ;;  %vm291_vm2 = vcmask 261120   ;;  %vm329_vm3 = vcmask 523264  }
   0xb   :  { %6394 = vmatpush3.msra.mxu0 %v59_v5  ;;  %v47_v11 = vld [vmem:[%s9824_s1 + $0x28] sm:$0xff]  ;;  %v48_v12 = vld [vmem:[%s9824_s1 + $0x30] sm:$0xff]  ;;  %v49_v13 = vld [vmem:[%s9824_s1 + $0x38] sm:$0xff]  ;;  %6437 = vmatprep.mubr.msk.f32.mxu1 %vm7695_vm1, %v7694_v23  ;;  %s7697_s29 = smov 64   ;;  %vm5659_vm4 = vcmask 1041408   ;;  %vm5661_vm5 = vcmask 1043456  }
   0xc   :  { %6395 = vmatprep.subr.mxu0 %v58_v6  ;;  %v50_v14 = vld [vmem:[%s9824_s1 + $0x40] sm:$0xff]  ;;  %v51_v15 = vld [vmem:[%s9824_s1 + $0x48] sm:$0xff]  ;;  %v52_v16 = vld [vmem:[%s9824_s1 + $0x50] sm:$0xff]  ;;  %vm5663_vm6 = vcmask 1045504   ;;  %vm5764_vm7 = vcmask 130048  }
   0xd   :  { %6396 = vmatpush3.msra.mxu0 %v58_v6  ;;  %v53_v17 = vld [vmem:[%s9824_s1 + $0x58] sm:$0xff]  ;;  %v54_v18 = vld [vmem:[%s9824_s1 + $0x60] sm:$0xff]  ;;  %v55_v19 = vld [vmem:[%s9824_s1 + $0x68] sm:$0xff] }
   0xe   :  { %6398 = vmatmul.mubr.msk.f32.vlgmr.msra.gmra.mxu0 %vm64_vm0, %v43_v7  ;;  %v56_v20 = vld [vmem:[%s9824_s1 + $0x70] sm:$0xff]  ;;  %v57_v21 = vld [vmem:[%s9824_s1 + $0x78] sm:$0xff]  ;;  %6459 = vmatprep.subr.mxu0 %v7694_v23  ;;  %v7868_v25 = vld [vmem:[%s9827_s4 + $0x28] sm:$0xff] }
   0xf   :  { %6400 = vmatprep.mubr.msk.f32.mxu0 %vm64_vm0, %v44_v8  ;;  %v7852_v22 = vld [vmem:[%s9827_s4 + $0x38] sm:$0xff]  ;;  %v7859_v24 = vld [vmem:[%s9827_s4 + $0x30] sm:$0xff]  ;;  %v7877_v26 = vld [vmem:[%s9827_s4 + $0x20] sm:$0xff] }
  0x10   :  { %6422 = vmatpush3.msra.mxu1 %v7852_v22  ;;  %6460 = vmatpush3.msra.mxu0 %v7852_v22  ;;  %v7886_v27 = vld [vmem:[%s9827_s4 + $0x18] sm:$0xff]  ;;  %v7895_v28 = vld [vmem:[%s9827_s4 + $0x10] sm:$0xff]  ;;  %v7904_v29 = vld [vmem:[%s9827_s4 + $0x8] sm:$0xff] }
  0x11   :  { %6423 = vmatprep.subr.mxu1 %v7694_v23  ;;  %6461 = vmatprep.subr.mxu0 %v7694_v23  ;;  %v7913_v30 = vld [vmem:[%s9827_s4] sm:$0xff]  ;;  %v7938_v2 = vld [vmem:[%s9827_s4 + $0x78] sm:$0xff]  ;;  %v7949_v5 = vld [vmem:[%s9827_s4 + $0x70] sm:$0xff] }
  0x12   :  { %6401 = vmatmul.mubr.msk.f32.gmra.mxu0 %vm64_vm0, %v45_v9  ;;  %6424 = vmatpush3.msra.mxu1 %v7859_v24  ;;  %v5799_v60 = vld [vmem:[%s9826_s3] ss:$0 sm:$0xff]  ;;  %v7961_v6 = vld [vmem:[%s9827_s4 + $0x68] sm:$0xff]  ;;  %v7979_v8 = vld [vmem:[%s9827_s4 + $0x58] sm:$0xff]  ;;  %s7698_s3 = smov 96  }
  0x13   :  { %6403 = vmatprep.mubr.msk.f32.mxu0 %vm64_vm0, %v46_v10  ;;  %6462 = vmatpush3.msra.mxu0 %v7859_v24  ;;  %v281_v0 = vld [vmem:[%s9823_s0] sm:$0xff]  ;;  %v282_v9 = vld [vmem:[%s9823_s0 + $0x8] sm:$0xff] }
  0x14   :  { %6425 = vmatprep.subr.mxu1 %v7694_v23  ;;  %6463 = vmatprep.subr.mxu0 %v7694_v23  ;;  %v7970_v7 = vld [vmem:[%s9827_s4 + $0x60] sm:$0xff] }
  0x15   :  { %6426 = vmatpush3.msra.mxu1 %v7868_v25  ;;  %6464 = vmatpush3.msra.mxu0 %v7868_v25 }
  0x16   :  { %6404 = vmatmul.mubr.msk.f32.gmra.mxu0 %vm64_vm0, %v47_v11  ;;  %6427 = vmatprep.subr.mxu1 %v7694_v23  ;;  %v7991_v11 = vld [vmem:[%s9827_s4 + $0x50] sm:$0xff] }
  0x17   :  { %6406 = vmatprep.mubr.msk.f32.mxu0 %vm64_vm0, %v48_v12  ;;  %6465 = vmatprep.subr.mxu0 %v7694_v23  ;;  %v8000_v12 = vld [vmem:[%s9827_s4 + $0x48] sm:$0xff] }
  0x18   :  { %6428 = vmatpush3.msra.mxu1 %v7877_v26  ;;  %6466 = vmatpush3.msra.mxu0 %v7877_v26 }
  0x19   :  { %6429 = vmatprep.subr.mxu1 %v7694_v23  ;;  %6467 = vmatprep.subr.mxu0 %v7694_v23 }
  0x1a   :  { %6407 = vmatmul.mubr.msk.f32.gmra.mxu0 %vm64_vm0, %v49_v13  ;;  %6430 = vmatpush3.msra.mxu1 %v7886_v27 }
  0x1b   :  { %6409 = vmatprep.mubr.msk.f32.mxu0 %vm64_vm0, %v50_v14  ;;  %6468 = vmatpush3.msra.mxu0 %v7886_v27  ;;  %v8012_v14 = vld [vmem:[%s9827_s4 + $0x40] sm:$0xff] }
  0x1c   :  { %6431 = vmatprep.subr.mxu1 %v7694_v23  ;;  %6469 = vmatprep.subr.mxu0 %v7694_v23 }
  0x1d   :  { %6432 = vmatpush3.msra.mxu1 %v7895_v28  ;;  %6470 = vmatpush3.msra.mxu0 %v7895_v28 }
  0x1e   :  { %6410 = vmatmul.mubr.msk.f32.gmra.mxu0 %vm64_vm0, %v51_v15  ;;  %6433 = vmatprep.subr.mxu1 %v7694_v23 }
  0x1f   :  { %6412 = vmatprep.mubr.msk.f32.mxu0 %vm64_vm0, %v52_v16  ;;  %6471 = vmatprep.subr.mxu0 %v7694_v23 }
  0x20   :  { %6434 = vmatpush3.msra.mxu1 %v7904_v29  ;;  %6472 = vmatpush3.msra.mxu0 %v7904_v29 }
  0x21   :  { %6435 = vmatprep.subr.mxu1 %v7694_v23  ;;  %6473 = vmatprep.subr.mxu0 %v7694_v23 }
  0x22   :  { %6413 = vmatmul.mubr.msk.f32.gmra.mxu0 %vm64_vm0, %v53_v17  ;;  %6436 = vmatpush3.msra.mxu1 %v7913_v30  ;;  %v8041_v17 = vld [vmem:[%s9829_s6] ss:$0 sm:$0xff] }
  0x23   :  { %6415 = vmatprep.mubr.msk.f32.mxu0 %vm64_vm0, %v54_v18  ;;  %6474 = vmatpush3.msra.mxu0 %v7913_v30 }
  0x24   :  { %6440 = vmatprep.subr.mxu1 %v7694_v23  ;;  %6519 = vmatprep.subr.mxu0 %v7694_v23 }
  0x26   :  { %6416 = vmatmul.mubr.msk.f32.gmra.mxu0 %vm64_vm0, %v55_v19 }
  0x27   :  { %6418 = vmatprep.mubr.msk.f32.mxu0 %vm64_vm0, %v56_v20 }
  0x2a   :  { %6419 = vmatmul.mubr.msk.f32.gmra.mxu0 %vm64_vm0, %v57_v21 }
  0x2b   :  { %6475 = vmatprep.mubr.msk.f32.mxu0 %vm7695_vm1, %v7694_v23 }
  0xce   :  { %v6399_v31 = vpop.f32.mrf.mxu0 }
  0xd0   :  { %v179_v32 = vpop.f32.mrf.mxu0 }
  0xd2   :  { %v6402_v33 = vpop.f32.mrf.mxu0 }
  0xd3   :  { %v259_v43 = vmax.f32 %v6399_v31, %v6402_v33 }
  0xd4   :  { %v189_v34 = vpop.f32.mrf.mxu0 }
  0xd5   :  { %v258_v41 = vmax.f32 %v179_v32, %v189_v34  ;;  %v8049_v32 = vld [vmem:[%s9829_s6 + $0x1] ss:$0 sm:$0xff] }
  0xd6   :  { %v6405_v35 = vpop.f32.mrf.mxu0 }
  0xd7   :  { %v261_v46 = vmax.f32 %v259_v43, %v6405_v35 }
  0xd8   :  { %v199_v36 = vpop.f32.mrf.mxu0 }
  0xd9   :  { %v260_v44 = vmax.f32 %v258_v41, %v199_v36 }
  0xda   :  { %v6408_v37 = vpop.f32.mrf.mxu0 }
  0xdb   :  { %v263_v49 = vmax.f32 %v261_v46, %v6408_v37 }
  0xdc   :  { %v209_v38 = vpop.f32.mrf.mxu0 }
  0xdd   :  { %v262_v47 = vmax.f32 %v260_v44, %v209_v38 }
  0xde   :  { %v6411_v39 = vpop.f32.mrf.mxu0 }
  0xdf   :  { %v265_v52 = vmax.f32 %v263_v49, %v6411_v39 }
  0xe0   :  { %v219_v40 = vpop.f32.mrf.mxu0 }
  0xe1   :  { %v264_v50 = vmax.f32 %v262_v47, %v219_v40 }
  0xe2   :  { %v6414_v42 = vpop.f32.mrf.mxu0 }
  0xe3   :  { %v267_v55 = vmax.f32 %v265_v52, %v6414_v42 }
  0xe4   :  { %v229_v45 = vpop.f32.mrf.mxu0 }
  0xe5   :  { %v266_v53 = vmax.f32 %v264_v50, %v229_v45 }
  0xe6   :  { %v6417_v48 = vpop.f32.mrf.mxu0 }
  0xe7   :  { %v269_v58 = vmax.f32 %v267_v55, %v6417_v48  ;;  %v8078_v55 = vld [vmem:[%s9828_s5 + $0x8] sm:$0xff] }
  0xe8   :  { %v239_v51 = vpop.f32.mrf.mxu0 }
  0xe9   :  { %v268_v56 = vmax.f32 %v266_v53, %v239_v51  ;;  %v8066_v53 = vld [vmem:[%s9828_s5 + $0x18] sm:$0xff] }
  0xea   :  { %v6420_v54 = vpop.f32.mrf.mxu0 }
  0xeb   :  { %v271_v61 = vmax.f32 %v269_v58, %v6420_v54  ;;  %v8071_v54 = vld [vmem:[%s9828_s5 + $0x10] sm:$0xff] }
  0xec   :  { %v249_v57 = vpop.f32.mrf.mxu0 }
  0xed   :  { %v270_v59 = vmax.f32 %v268_v56, %v249_v57  ;;  %v280_v63 = vadd.f32 %v5799_v60, %v271_v61  ;;  %v8085_v56 = vld [vmem:[%s9828_s5] sm:$0xff]  ;;  %v8102_v61 = vld [vmem:[%s9828_s5 + $0x30] sm:$0xff] }
  0xef   :  { %v279_v62 = vadd.f32 %v5799_v60, %v270_v59  ;;  %v8096_v60 = vld [vmem:[%s9828_s5 + $0x38] sm:$0xff] }
  0xf1   :  { %285 = vrot.lane.b32.xlu0 %v279_v62, %s7696_s25  ;;  %v8109_v62 = vld [vmem:[%s9828_s5 + $0x28] sm:$0xff] }
  0xf5   :  { %287 = vrot.lane.b32.xlu0 %v280_v63, %s7696_s25  ;;  %v8116_v63 = vld [vmem:[%s9828_s5 + $0x20] sm:$0xff] }
 0x163   :  { %v286_v1 = vpop.permute.xlu0 %285 }
 0x164   :  { %v7941_v3 = vsel %vm291_vm2, %v281_v0, %v286_v1 }
 0x165   :  { %v519_v4 = vrot.slane %v7941_v3, 2  ;;  %6438 = vmatmul.mubr.msk.f32.vlgmr.msra.gmra.mxu1 %vm329_vm3, %v7941_v3  ;;  %v873_v16 = vrot.slane %v7941_v3, 4 }
 0x166   :  { %6441 = vmatpush3.msra.mxu1 %v7938_v2  ;;  %6456 = vmatprep.mubr.msk.f32.mxu1 %vm7695_vm1, %v7694_v23 }
 0x167   :  { %6442 = vmatprep.subr.mxu1 %v7694_v23  ;;  %6476 = vmatmul.mubr.msk.f32.vlgmr.msra.gmra.mxu0 %vm329_vm3, %v519_v4  ;;  %v288_v10 = vpop.permute.xlu0 %287 }
 0x168   :  { %6443 = vmatpush3.msra.mxu1 %v7949_v5  ;;  %6520 = vmatpush3.msra.mxu0 %v7852_v22  ;;  %v8003_v13 = vsel %vm291_vm2, %v282_v9, %v288_v10 }
 0x169   :  { %6444 = vmatprep.subr.mxu1 %v7694_v23  ;;  %6521 = vmatprep.subr.mxu0 %v7694_v23  ;;  %v428_v15 = vrot.slane %v8003_v13, 6  ;;  %v696_v10 = vrot.slane %v8003_v13, 4 }
 0x16a   :  { %6445 = vmatpush3.msra.mxu1 %v7961_v6  ;;  %6522 = vmatpush3.msra.mxu0 %v7859_v24 }
 0x16b   :  { %6446 = vmatprep.subr.mxu1 %v7694_v23  ;;  %6523 = vmatprep.subr.mxu0 %v7694_v23 }
 0x16c   :  { %6447 = vmatpush3.msra.mxu1 %v7970_v7  ;;  %6524 = vmatpush3.msra.mxu0 %v7868_v25 }
 0x16d   :  { %6448 = vmatprep.subr.mxu1 %v7694_v23  ;;  %6525 = vmatprep.subr.mxu0 %v7694_v23 }
 0x16e   :  { %6449 = vmatpush3.msra.mxu1 %v7979_v8  ;;  %6526 = vmatpush3.msra.mxu0 %v7877_v26 }
 0x16f   :  { %6450 = vmatprep.subr.mxu1 %v7694_v23  ;;  %6527 = vmatprep.subr.mxu0 %v7694_v23 }
 0x170   :  { %6451 = vmatpush3.msra.mxu1 %v7991_v11  ;;  %6528 = vmatpush3.msra.mxu0 %v7886_v27 }
 0x171   :  { %6452 = vmatprep.subr.mxu1 %v7694_v23  ;;  %6529 = vmatprep.subr.mxu0 %v7694_v23 }
 0x172   :  { %6453 = vmatpush3.msra.mxu1 %v8000_v12  ;;  %6530 = vmatpush3.msra.mxu0 %v7895_v28 }
 0x173   :  { %6454 = vmatprep.subr.mxu1 %v7694_v23  ;;  %6531 = vmatprep.subr.mxu0 %v7694_v23 }
 0x174   :  { %6455 = vmatpush3.msra.mxu1 %v8012_v14  ;;  %6532 = vmatpush3.msra.mxu0 %v7904_v29 }
 0x175   :  { %6457 = vmatmul.mubr.msk.f32.vlgmr.msra.gmra.mxu1 %vm329_vm3, %v428_v15  ;;  %6533 = vmatprep.subr.mxu0 %v7694_v23 }
 0x176   :  { %6534 = vmatpush3.msra.mxu0 %v7913_v30  ;;  %6535 = vmatprep.mubr.msk.f32.mxu0 %vm7695_vm1, %v7694_v23 }
 0x177   :  { %6536 = vmatmul.mubr.msk.f32.vlgmr.msra.gmra.mxu0 %vm329_vm3, %v873_v16  ;;  %6478 = vmatprep.subr.mxu1 %v7694_v23 }
 0x178   :  { %6486 = vmatprep.mubr.msk.f32.mxu1 %vm7695_vm1, %v7694_v23  ;;  %6568 = vmatprep.subr.mxu0 %v7694_v23 }
 0x179   :  { %6576 = vmatprep.mubr.msk.f32.mxu0 %vm7695_vm1, %v7694_v23  ;;  %6479 = vmatpush3.msra.mxu1 %v8066_v53 }
 0x17a   :  { %6480 = vmatprep.subr.mxu1 %v7694_v23  ;;  %6569 = vmatpush3.msra.mxu0 %v8096_v60 }
 0x17b   :  { %6481 = vmatpush3.msra.mxu1 %v8071_v54  ;;  %6570 = vmatprep.subr.mxu0 %v7694_v23 }
 0x17c   :  { %6482 = vmatprep.subr.mxu1 %v7694_v23  ;;  %6571 = vmatpush3.msra.mxu0 %v8102_v61 }
 0x17d   :  { %6483 = vmatpush3.msra.mxu1 %v8078_v55  ;;  %6572 = vmatprep.subr.mxu0 %v7694_v23 }
 0x17e   :  { %6484 = vmatprep.subr.mxu1 %v7694_v23  ;;  %6573 = vmatpush3.msra.mxu0 %v8109_v62 }
 0x17f   :  { %6485 = vmatpush3.msra.mxu1 %v8085_v56  ;;  %6574 = vmatprep.subr.mxu0 %v7694_v23 }
 0x180   :  { %6489 = vmatprep.subr.mxu1 %v7694_v23  ;;  %6575 = vmatpush3.msra.mxu0 %v8116_v63 }
 0x181   :  { %6579 = vmatprep.subr.mxu0 %v7694_v23 }
 0x225   :  { %v399_v18 = vpop.f32.mrf.mxu1 }
 0x226   :  { %v400_v19 = vadd.f32 %v8041_v17, %v399_v18 }
 0x227   :  { %v6439_v20 = vpop.f32.mrf.mxu1  ;;  %v8044_v21 = vpop.f32.mrf.mxu0 }
 0x228   :  { %7364 = vtanh.f32 %v400_v19  ;;  %v5815_v40 = vmul.f32 -1.442695, %v400_v19  ;;  %v589_v19 = vadd.f32 %v8041_v17, %v8044_v21 }
 0x229   :  { %v6477_v31 = vpop.f32.mrf.mxu0 }
 0x235   :  { %v7365_v33 = vpop.eup %7364  ;;  %v497_v34 = vpop.f32.mrf.mxu1 }
 0x236   :  { %v498_v35 = vadd.f32 %v8049_v32, %v497_v34  ;;  %411 = vrot.lane.b32.xlu1 %v7365_v33, %s7697_s29 }
 0x237   :  { %v8053_v36 = vpop.f32.mrf.mxu0  ;;  %v6458_v37 = vpop.f32.mrf.mxu1 }
 0x238   :  { %7366 = vtanh.f32 %v498_v35  ;;  %v5818_v41 = vmul.f32 -1.442695, %v498_v35 }
 0x239   :  { %v6537_v38 = vpop.f32.mrf.mxu0  ;;  %7368 = vpow2.f32 %v5815_v40 }
 0x23a   :  { %7370 = vpow2.f32 %v5818_v41 }
 0x245   :  { %v7367_v39 = vpop.eup %7366 }
 0x246   :  { %509 = vrot.lane.b32.xlu1 %v7367_v39, %s7697_s29  ;;  %v7369_v42 = vpop.eup %7368 }
 0x247   :  { %v406_v43 = vadd.f32 1.0, %v7369_v42  ;;  %v7371_v44 = vpop.eup %7370 }
 0x248   :  { %v504_v45 = vadd.f32 1.0, %v7371_v44 }
 0x249   :  { %7372 = vrcp.f32 %v406_v43 }
 0x24a   :  { %7374 = vrcp.f32 %v504_v45 }
 0x256   :  { %v7373_v46 = vpop.eup %7372 }
 0x257   :  { %v7375_v49 = vpop.eup %7374 }
 0x2a8   :  { %v412_v47 = vpop.permute.xlu1 %411 }
 0x2a9   :  { %v8056_v48 = vmul.f32 %v7373_v46, %v412_v47 }
 0x2ab   :  { %7376 = vtanh.f32 %v8056_v48 }
 0x2b8   :  { %v7377_v50 = vpop.eup %7376  ;;  %v510_v51 = vpop.permute.xlu1 %509 }
 0x2b9   :  { %v8059_v52 = vmul.f32 %v7375_v49, %v510_v51  ;;  %417 = vrot.lane.b32.xlu0 %v7377_v50, %s7698_s3 }
 0x2bb   :  { %7378 = vtanh.f32 %v8059_v52 }
 0x2c8   :  { %v7379_v57 = vpop.eup %7378 }
 0x2c9   :  { %515 = vrot.lane.b32.xlu1 %v7379_v57, %s7698_s3 }
 0x32b   :  { %v418_v58 = vpop.permute.xlu0 %417 }
 0x32c   :  { %v420_v59 = vmul.f32 %v7373_v46, %v418_v58 }
 0x32e   :  { %593 = vrot.lane.b32.xlu0 %v420_v59, %s7696_s25 }
 0x33b   :  { %v516_v0 = vpop.permute.xlu1 %515 }
 0x33c   :  { %v8121_v1 = vmul.f32 %v7375_v49, %v516_v0 }
 0x33e   :  { %770 = vrot.lane.b32.xlu1 %v8121_v1, %s7696_s25 }
 0x3a0   :  { %v8125_v9 = vpop.permute.xlu0 %593 }
 0x3a1   :  { %6487 = vmatmul.mubr.msk.f32.vlgmr.msra.gmra.mxu1 %vm291_vm2, %v8125_v9 }
 0x3a2   :  { %6490 = vmatpush3.msra.mxu1 %v7938_v2  ;;  %6505 = vmatprep.mubr.msk.f32.mxu1 %vm7695_vm1, %v7694_v23 }
 0x3a3   :  { %6491 = vmatprep.subr.mxu1 %v7694_v23 }
 0x3a4   :  { %6492 = vmatpush3.msra.mxu1 %v7949_v5 }
 0x3a5   :  { %6493 = vmatprep.subr.mxu1 %v7694_v23 }
 0x3a6   :  { %6494 = vmatpush3.msra.mxu1 %v7961_v6 }
 0x3a7   :  { %6495 = vmatprep.subr.mxu1 %v7694_v23 }
 0x3a8   :  { %6496 = vmatpush3.msra.mxu1 %v7970_v7 }
 0x3a9   :  { %6497 = vmatprep.subr.mxu1 %v7694_v23 }
 0x3aa   :  { %6498 = vmatpush3.msra.mxu1 %v7979_v8 }
 0x3ab   :  { %6499 = vmatprep.subr.mxu1 %v7694_v23 }
 0x3ac   :  { %6500 = vmatpush3.msra.mxu1 %v7991_v11 }
 0x3ad   :  { %6501 = vmatprep.subr.mxu1 %v7694_v23 }
 0x3ae   :  { %6502 = vmatpush3.msra.mxu1 %v8000_v12 }
 0x3af   :  { %6503 = vmatprep.subr.mxu1 %v7694_v23 }
 0x3b0   :  { %6504 = vmatpush3.msra.mxu1 %v8012_v14  ;;  %v771_v18 = vpop.permute.xlu1 %770 }
 0x3b1   :  { %6506 = vmatmul.mubr.msk.f32.vlgmr.msra.gmra.mxu1 %vm329_vm3, %v696_v10  ;;  %6508 = vmatprep.subr.mxu1 %v7694_v23 }
 0x3b2   :  { %6509 = vmatpush3.msra.mxu1 %v8096_v60  ;;  %6516 = vmatprep.mubr.msk.f32.mxu1 %vm7695_vm1, %v7694_v23 }
 0x3b3   :  { %6510 = vmatprep.subr.mxu1 %v7694_v23 }
 0x3b4   :  { %6511 = vmatpush3.msra.mxu1 %v8102_v61 }
 0x3b5   :  { %6512 = vmatprep.subr.mxu1 %v7694_v23 }
 0x3b6   :  { %6513 = vmatpush3.msra.mxu1 %v8109_v62 }
 0x3b7   :  { %6514 = vmatprep.subr.mxu1 %v7694_v23 }
 0x3b8   :  { %6515 = vmatpush3.msra.mxu1 %v8116_v63 }
 0x3b9   :  { %6517 = vmatmul.mubr.msk.f32.vlgmr.msra.gmra.mxu1 %vm291_vm2, %v771_v18  ;;  %6538 = vmatprep.subr.mxu1 %v7694_v23 }
 0x3ba   :  { %6539 = vmatpush3.msra.mxu1 %v8066_v53  ;;  %6546 = vmatprep.mubr.msk.f32.mxu1 %vm7695_vm1, %v7694_v23 }
 0x3bb   :  { %6540 = vmatprep.subr.mxu1 %v7694_v23 }
 0x3bc   :  { %6541 = vmatpush3.msra.mxu1 %v8071_v54 }
 0x3bd   :  { %6542 = vmatprep.subr.mxu1 %v7694_v23 }
 0x3be   :  { %6543 = vmatpush3.msra.mxu1 %v8078_v55 }
 0x3bf   :  { %6544 = vmatprep.subr.mxu1 %v7694_v23 }
 0x3c0   :  { %6545 = vmatpush3.msra.mxu1 %v8085_v56 }
 0x3c1   :  { %6549 = vmatprep.subr.mxu1 %v7694_v23 }
 0x461   :  { %v663_v20 = vpop.f32.mrf.mxu1 }
 0x462   :  { %v667_v31 = vadd.f32 %v663_v20, %v589_v19 }
 0x463   :  { %v6488_v33 = vpop.f32.mrf.mxu1 }
 0x464   :  { %7380 = vtanh.f32 %v667_v31  ;;  %v5821_v42 = vmul.f32 -1.442695, %v667_v31 }
 0x471   :  { %v7381_v34 = vpop.eup %7380  ;;  %v765_v35 = vpop.f32.mrf.mxu1 }
 0x472   :  { %681 = vrot.lane.b32.xlu0 %v7381_v34, %s7697_s29  ;;  %v766_v38 = vadd.f32 %v8049_v32, %v765_v35 }
 0x473   :  { %v6507_v37 = vpop.f32.mrf.mxu1 }
 0x476   :  { %676 = vrot.lane.b32.xlu0 %v8056_v48, %s7696_s25 }
 0x479   :  { %v840_v39 = vpop.f32.mrf.mxu1 }
 0x47a   :  { %v844_v40 = vadd.f32 %v840_v39, %v766_v38  ;;  %853 = vrot.lane.b32.xlu0 %v8059_v52, %s7696_s25 }
 0x47b   :  { %v6518_v21 = vpop.f32.mrf.mxu1 }
 0x47c   :  { %7382 = vtanh.f32 %v844_v40  ;;  %v5824_v45 = vmul.f32 -1.442695, %v844_v40 }
 0x47d   :  { %7384 = vpow2.f32 %v5821_v42 }
 0x489   :  { %v7383_v41 = vpop.eup %7382 }
 0x48a   :  { %858 = vrot.lane.b32.xlu1 %v7383_v41, %s7697_s29  ;;  %v7385_v43 = vpop.eup %7384  ;;  %v1046_v41 = vrot.slane %v8003_v13, 2 }
 0x48b   :  { %v671_v44 = vadd.f32 1.0, %v7385_v43  ;;  %v1219_v43 = vrot.slane %v7941_v3, 6 }
 0x48d   :  { %7386 = vrcp.f32 %v671_v44  ;;  %v943_v44 = vadd.f32 %v8041_v17, %v8053_v36 }
 0x48e   :  { %7388 = vpow2.f32 %v5824_v45 }
 0x49a   :  { %v7387_v46 = vpop.eup %7386 }
 0x49b   :  { %v7389_v49 = vpop.eup %7388 }
 0x49c   :  { %v848_v50 = vadd.f32 1.0, %v7389_v49 }
 0x49e   :  { %7390 = vrcp.f32 %v848_v50 }
 0x4ab   :  { %v7391_v51 = vpop.eup %7390 }
 0x4e4   :  { %v682_v47 = vpop.permute.xlu0 %681 }
 0x4e5   :  { %v684_v48 = vmul.f32 %v7387_v46, %v682_v47 }
 0x4e7   :  { %686 = vrot.lane.b32.xlu1 %v684_v48, %s7696_s25 }
 0x4e8   :  { %v677_v58 = vpop.permute.xlu0 %676 }
 0x4e9   :  { %v679_v59 = vmul.f32 %v7387_v46, %v677_v58 }
 0x4ec   :  { %v854_v20 = vpop.permute.xlu0 %853 }
 0x4ed   :  { %v856_v31 = vmul.f32 %v7391_v51, %v854_v20 }
 0x4fc   :  { %v859_v52 = vpop.permute.xlu1 %858 }
 0x4fd   :  { %v861_v57 = vmul.f32 %v7391_v51, %v859_v52 }
 0x4ff   :  { %863 = vrot.lane.b32.xlu1 %v861_v57, %s7696_s25 }
 0x559   :  { %v687_v0 = vpop.permute.xlu1 %686 }
 0x55a   :  { %v8183_v18 = vadd.f32 %v687_v0, %v679_v59 }
 0x55c   :  { %7392 = vtanh.f32 %v8183_v18 }
 0x569   :  { %v7393_v19 = vpop.eup %7392 }
 0x56a   :  { %692 = vrot.lane.b32.xlu0 %v7393_v19, %s7697_s29 }
 0x571   :  { %v864_v33 = vpop.permute.xlu1 %863 }
 0x572   :  { %v8187_v34 = vadd.f32 %v864_v33, %v856_v31 }
 0x574   :  { %7394 = vtanh.f32 %v8187_v34 }
 0x581   :  { %v7395_v35 = vpop.eup %7394 }
 0x582   :  { %869 = vrot.lane.b32.xlu1 %v7395_v35, %s7697_s29 }
 0x5dc   :  { %v693_v37 = vpop.permute.xlu0 %692 }
 0x5dd   :  { %v695_v38 = vmul.f32 %v7387_v46, %v693_v37 }
 0x5df   :  { %947 = vrot.lane.b32.xlu0 %v695_v38, %s7696_s25 }
 0x5f4   :  { %v870_v39 = vpop.permute.xlu1 %869 }
 0x5f5   :  { %v8192_v40 = vmul.f32 %v7391_v51, %v870_v39 }
 0x5f7   :  { %1120 = vrot.lane.b32.xlu1 %v8192_v40, %s7696_s25 }
 0x651   :  { %v8196_v21 = vpop.permute.xlu0 %947 }
 0x652   :  { %6547 = vmatmul.mubr.msk.f32.vlgmr.msra.gmra.mxu1 %vm291_vm2, %v8196_v21 }
 0x653   :  { %6550 = vmatpush3.msra.mxu1 %v7938_v2  ;;  %6565 = vmatprep.mubr.msk.f32.mxu1 %vm7695_vm1, %v7694_v23 }
 0x654   :  { %6551 = vmatprep.subr.mxu1 %v7694_v23 }
 0x655   :  { %6552 = vmatpush3.msra.mxu1 %v7949_v5 }
 0x656   :  { %6553 = vmatprep.subr.mxu1 %v7694_v23 }
 0x657   :  { %6554 = vmatpush3.msra.mxu1 %v7961_v6 }
 0x658   :  { %6555 = vmatprep.subr.mxu1 %v7694_v23 }
 0x659   :  { %6556 = vmatpush3.msra.mxu1 %v7970_v7 }
 0x65a   :  { %6557 = vmatprep.subr.mxu1 %v7694_v23 }
 0x65b   :  { %6558 = vmatpush3.msra.mxu1 %v7979_v8 }
 0x65c   :  { %6559 = vmatprep.subr.mxu1 %v7694_v23 }
 0x65d   :  { %6560 = vmatpush3.msra.mxu1 %v7991_v11 }
 0x65e   :  { %6561 = vmatprep.subr.mxu1 %v7694_v23 }
 0x65f   :  { %6562 = vmatpush3.msra.mxu1 %v8000_v12 }
 0x660   :  { %6563 = vmatprep.subr.mxu1 %v7694_v23 }
 0x661   :  { %6564 = vmatpush3.msra.mxu1 %v8012_v14 }
 0x662   :  { %6566 = vmatmul.mubr.msk.f32.vlgmr.msra.gmra.mxu1 %vm329_vm3, %v1046_v41  ;;  %6598 = vmatprep.subr.mxu1 %v7694_v23 }
 0x663   :  { %6599 = vmatpush3.msra.mxu1 %v8066_v53  ;;  %6606 = vmatprep.mubr.msk.f32.mxu1 %vm7695_vm1, %v7694_v23 }
 0x664   :  { %6600 = vmatprep.subr.mxu1 %v7694_v23 }
 0x665   :  { %6601 = vmatpush3.msra.mxu1 %v8071_v54 }
 0x666   :  { %6602 = vmatprep.subr.mxu1 %v7694_v23 }
 0x667   :  { %6603 = vmatpush3.msra.mxu1 %v8078_v55 }
 0x668   :  { %6604 = vmatprep.subr.mxu1 %v7694_v23 }
 0x669   :  { %v1121_v42 = vpop.permute.xlu1 %1120  ;;  %6605 = vmatpush3.msra.mxu1 %v8085_v56 }
 0x66a   :  { %6577 = vmatmul.mubr.msk.f32.vlgmr.msra.gmra.mxu0 %vm291_vm2, %v1121_v42  ;;  %6609 = vmatprep.subr.mxu1 %v7694_v23 }
 0x66b   :  { %6580 = vmatpush3.msra.mxu0 %v7852_v22  ;;  %6595 = vmatprep.mubr.msk.f32.mxu0 %vm7695_vm1, %v7694_v23 }
 0x66c   :  { %6581 = vmatprep.subr.mxu0 %v7694_v23 }
 0x66d   :  { %6582 = vmatpush3.msra.mxu0 %v7859_v24 }
 0x66e   :  { %6583 = vmatprep.subr.mxu0 %v7694_v23 }
 0x66f   :  { %6584 = vmatpush3.msra.mxu0 %v7868_v25 }
 0x670   :  { %6585 = vmatprep.subr.mxu0 %v7694_v23 }
 0x671   :  { %6586 = vmatpush3.msra.mxu0 %v7877_v26 }
 0x672   :  { %6587 = vmatprep.subr.mxu0 %v7694_v23 }
 0x673   :  { %6588 = vmatpush3.msra.mxu0 %v7886_v27 }
 0x674   :  { %6589 = vmatprep.subr.mxu0 %v7694_v23 }
 0x675   :  { %6590 = vmatpush3.msra.mxu0 %v7895_v28 }
 0x676   :  { %6591 = vmatprep.subr.mxu0 %v7694_v23 }
 0x677   :  { %6592 = vmatpush3.msra.mxu0 %v7904_v29 }
 0x678   :  { %6593 = vmatprep.subr.mxu0 %v7694_v23 }
 0x679   :  { %6594 = vmatpush3.msra.mxu0 %v7913_v30 }
 0x67a   :  { %6596 = vmatmul.mubr.msk.f32.vlgmr.msra.gmra.mxu0 %vm329_vm3, %v1219_v43  ;;  %6628 = vmatprep.subr.mxu0 %v7694_v23 }
 0x67b   :  { %6629 = vmatpush3.msra.mxu0 %v8096_v60  ;;  %6636 = vmatprep.mubr.msk.f32.mxu0 %vm7695_vm1, %v7694_v23 }
 0x67c   :  { %6630 = vmatprep.subr.mxu0 %v7694_v23 }
 0x67d   :  { %6631 = vmatpush3.msra.mxu0 %v8102_v61 }
 0x67e   :  { %6632 = vmatprep.subr.mxu0 %v7694_v23 }
 0x67f   :  { %6633 = vmatpush3.msra.mxu0 %v8109_v62 }
 0x680   :  { %6634 = vmatprep.subr.mxu0 %v7694_v23 }
 0x681   :  { %6635 = vmatpush3.msra.mxu0 %v8116_v63 }
 0x682   :  { %6639 = vmatprep.subr.mxu0 %v7694_v23 }
 0x712   :  { %v1017_v45 = vpop.f32.mrf.mxu1 }
 0x713   :  { %v1021_v46 = vadd.f32 %v1017_v45, %v943_v44 }
 0x714   :  { %v6548_v47 = vpop.f32.mrf.mxu1 }
 0x715   :  { %7396 = vtanh.f32 %v1021_v46  ;;  %v5827_v19 = vmul.f32 -1.442695, %v1021_v46 }
 0x722   :  { %v7397_v48 = vpop.eup %7396  ;;  %v1115_v49 = vpop.f32.mrf.mxu1 }
 0x723   :  { %1031 = vrot.lane.b32.xlu0 %v7397_v48, %s7697_s29  ;;  %v1116_v51 = vadd.f32 %v8049_v32, %v1115_v49 }
 0x724   :  { %v6567_v50 = vpop.f32.mrf.mxu1 }
 0x72a   :  { %v1190_v52 = vpop.f32.mrf.mxu0 }
 0x72b   :  { %v1194_v57 = vadd.f32 %v1190_v52, %v1116_v51 }
 0x72c   :  { %v6578_v58 = vpop.f32.mrf.mxu0 }
 0x72d   :  { %7398 = vtanh.f32 %v1194_v57  ;;  %v5830_v33 = vmul.f32 -1.442695, %v1194_v57 }
 0x72e   :  { %7400 = vpow2.f32 %v5827_v19 }
 0x73a   :  { %v7399_v59 = vpop.eup %7398  ;;  %v8269_v0 = vpop.f32.mrf.mxu0 }
 0x73b   :  { %1204 = vrot.lane.b32.xlu1 %v7399_v59, %s7697_s29  ;;  %v7401_v20 = vpop.eup %7400 }
 0x73c   :  { %v6597_v36 = vpop.f32.mrf.mxu0  ;;  %v1025_v31 = vadd.f32 1.0, %v7401_v20 }
 0x73e   :  { %7402 = vrcp.f32 %v1025_v31 }
 0x73f   :  { %7404 = vpow2.f32 %v5830_v33 }
 0x74b   :  { %v7403_v35 = vpop.eup %7402 }
 0x74c   :  { %v7405_v39 = vpop.eup %7404  ;;  %v1029_v46 = vmul.f32 %v7403_v35, %v8183_v18 }
 0x74d   :  { %v1198_v42 = vadd.f32 1.0, %v7405_v39 }
 0x74f   :  { %7406 = vrcp.f32 %v1198_v42 }
 0x75c   :  { %v7407_v44 = vpop.eup %7406 }
 0x75d   :  { %v1202_v51 = vmul.f32 %v7407_v44, %v8187_v34 }
 0x795   :  { %v1032_v37 = vpop.permute.xlu0 %1031 }
 0x796   :  { %v1034_v38 = vmul.f32 %v7403_v35, %v1032_v37 }
 0x798   :  { %1036 = vrot.lane.b32.xlu0 %v1034_v38, %s7696_s25 }
 0x7ad   :  { %v1205_v45 = vpop.permute.xlu1 %1204 }
 0x7ae   :  { %v1207_v47 = vmul.f32 %v7407_v44, %v1205_v45 }
 0x7b0   :  { %1209 = vrot.lane.b32.xlu1 %v1207_v47, %s7696_s25 }
 0x80a   :  { %v1037_v48 = vpop.permute.xlu0 %1036 }
 0x80b   :  { %v8275_v49 = vadd.f32 %v1037_v48, %v1029_v46 }
 0x80d   :  { %7408 = vtanh.f32 %v8275_v49 }
 0x81a   :  { %v7409_v50 = vpop.eup %7408 }
 0x81b   :  { %1042 = vrot.lane.b32.xlu0 %v7409_v50, %s7697_s29 }
 0x822   :  { %v1210_v52 = vpop.permute.xlu1 %1209 }
 0x823   :  { %v8280_v57 = vadd.f32 %v1210_v52, %v1202_v51 }
 0x825   :  { %7410 = vtanh.f32 %v8280_v57 }
 0x832   :  { %v7411_v58 = vpop.eup %7410 }
 0x833   :  { %1215 = vrot.lane.b32.xlu1 %v7411_v58, %s7697_s29 }
 0x88d   :  { %v1043_v59 = vpop.permute.xlu0 %1042 }
 0x88e   :  { %v1045_v18 = vmul.f32 %v7403_v35, %v1043_v59 }
 0x890   :  { %1293 = vrot.lane.b32.xlu0 %v1045_v18, %s7696_s25 }
 0x8a5   :  { %v1216_v36 = vpop.permute.xlu1 %1215 }
 0x8a6   :  { %v8285_v19 = vmul.f32 %v7407_v44, %v1216_v36 }
 0x8a8   :  { %1465 = vrot.lane.b32.xlu1 %v8285_v19, %s7696_s25 }
 0x902   :  { %v8289_v20 = vpop.permute.xlu0 %1293 }
 0x903   :  { %6607 = vmatmul.mubr.msk.f32.vlgmr.msra.gmra.mxu1 %vm291_vm2, %v8289_v20 }
 0x904   :  { %6610 = vmatpush3.msra.mxu1 %v7938_v2  ;;  %6625 = vmatprep.mubr.msk.f32.mxu1 %vm7695_vm1, %v7694_v23 }
 0x905   :  { %6611 = vmatprep.subr.mxu1 %v7694_v23 }
 0x906   :  { %6612 = vmatpush3.msra.mxu1 %v7949_v5 }
 0x907   :  { %6613 = vmatprep.subr.mxu1 %v7694_v23 }
 0x908   :  { %6614 = vmatpush3.msra.mxu1 %v7961_v6 }
 0x909   :  { %6615 = vmatprep.subr.mxu1 %v7694_v23 }
 0x90a   :  { %6616 = vmatpush3.msra.mxu1 %v7970_v7 }
 0x90b   :  { %6617 = vmatprep.subr.mxu1 %v7694_v23 }
 0x90c   :  { %6618 = vmatpush3.msra.mxu1 %v7979_v8 }
 0x90d   :  { %6619 = vmatprep.subr.mxu1 %v7694_v23 }
 0x90e   :  { %6620 = vmatpush3.msra.mxu1 %v7991_v11 }
 0x90f   :  { %6621 = vmatprep.subr.mxu1 %v7694_v23 }
 0x910   :  { %6622 = vmatpush3.msra.mxu1 %v8000_v12 }
 0x911   :  { %6623 = vmatprep.subr.mxu1 %v7694_v23 }
 0x912   :  { %6624 = vmatpush3.msra.mxu1 %v8012_v14 }
 0x913   :  { %6626 = vmatmul.mubr.msk.f32.vlgmr.msra.gmra.mxu1 %vm329_vm3, %v8003_v13  ;;  %6658 = vmatprep.subr.mxu1 %v7694_v23 }
 0x914   :  { %6659 = vmatpush3.msra.mxu1 %v8066_v53  ;;  %6666 = vmatprep.mubr.msk.f32.mxu1 %vm7695_vm1, %v7694_v23 }
 0x915   :  { %6660 = vmatprep.subr.mxu1 %v7694_v23 }
 0x916   :  { %6661 = vmatpush3.msra.mxu1 %v8071_v54 }
 0x917   :  { %6662 = vmatprep.subr.mxu1 %v7694_v23 }
 0x918   :  { %6663 = vmatpush3.msra.mxu1 %v8078_v55 }
 0x919   :  { %6664 = vmatprep.subr.mxu1 %v7694_v23 }
 0x91a   :  { %v1466_v34 = vpop.permute.xlu1 %1465  ;;  %6665 = vmatpush3.msra.mxu1 %v8085_v56 }
 0x91b   :  { %6637 = vmatmul.mubr.msk.f32.vlgmr.msra.gmra.mxu0 %vm291_vm2, %v1466_v34  ;;  %6669 = vmatprep.subr.mxu1 %v7694_v23 }
 0x91c   :  { %6640 = vmatpush3.msra.mxu0 %v7852_v22  ;;  %6655 = vmatprep.mubr.msk.f32.mxu0 %vm7695_vm1, %v7694_v23  ;;  %v1289_v22 = vadd.f32 %v8041_v17, %v8269_v0 }
 0x91d   :  { %6641 = vmatprep.subr.mxu0 %v7694_v23 }
 0x91e   :  { %6642 = vmatpush3.msra.mxu0 %v7859_v24 }
 0x91f   :  { %6643 = vmatprep.subr.mxu0 %v7694_v23 }
 0x920   :  { %6644 = vmatpush3.msra.mxu0 %v7868_v25 }
 0x921   :  { %6645 = vmatprep.subr.mxu0 %v7694_v23 }
 0x922   :  { %6646 = vmatpush3.msra.mxu0 %v7877_v26 }
 0x923   :  { %6647 = vmatprep.subr.mxu0 %v7694_v23 }
 0x924   :  { %6648 = vmatpush3.msra.mxu0 %v7886_v27 }
 0x925   :  { %6649 = vmatprep.subr.mxu0 %v7694_v23 }
 0x926   :  { %6650 = vmatpush3.msra.mxu0 %v7895_v28 }
 0x927   :  { %6651 = vmatprep.subr.mxu0 %v7694_v23 }
 0x928   :  { %6652 = vmatpush3.msra.mxu0 %v7904_v29 }
 0x929   :  { %6653 = vmatprep.subr.mxu0 %v7694_v23 }
 0x92a   :  { %6654 = vmatpush3.msra.mxu0 %v7913_v30 }
 0x92b   :  { %6656 = vmatmul.mubr.msk.f32.vlgmr.msra.gmra.mxu0 %vm329_vm3, %v8003_v13  ;;  %6688 = vmatprep.subr.mxu0 %v7694_v23  ;;  %v7644_v13 = vld [vmem:[%s9828_s5 + $0x28] sm:$0xff] }
 0x92c   :  { %6689 = vmatpush3.msra.mxu0 %v8096_v60  ;;  %6696 = vmatprep.mubr.msk.f32.mxu0 %vm7695_vm1, %v7694_v23 }
 0x92d   :  { %6690 = vmatprep.subr.mxu0 %v7694_v23 }
 0x92e   :  { %6691 = vmatpush3.msra.mxu0 %v8102_v61 }
 0x92f   :  { %6692 = vmatprep.subr.mxu0 %v7694_v23 }
 0x930   :  { %6693 = vmatpush3.msra.mxu0 %v8109_v62 }
 0x931   :  { %6694 = vmatprep.subr.mxu0 %v7694_v23 }
 0x932   :  { %6695 = vmatpush3.msra.mxu0 %v8116_v63 }
 0x933   :  { %6699 = vmatprep.subr.mxu0 %v7694_v23 }
 0x9c3   :  { %v1363_v24 = vpop.f32.mrf.mxu1 }
 0x9c4   :  { %v1367_v25 = vadd.f32 %v1363_v24, %v1289_v22 }
 0x9c5   :  { %v6608_v26 = vpop.f32.mrf.mxu1 }
 0x9c6   :  { %7412 = vtanh.f32 %v1367_v25  ;;  %v5833_v39 = vmul.f32 -1.442695, %v1367_v25 }
 0x9d3   :  { %v7413_v27 = vpop.eup %7412  ;;  %v1460_v28 = vpop.f32.mrf.mxu1 }
 0x9d4   :  { %1377 = vrot.lane.b32.xlu0 %v7413_v27, %s7697_s29  ;;  %v1461_v30 = vadd.f32 %v8049_v32, %v1460_v28 }
 0x9d5   :  { %v6627_v29 = vpop.f32.mrf.mxu1 }
 0x9db   :  { %v1535_v31 = vpop.f32.mrf.mxu0 }
 0x9dc   :  { %v1539_v33 = vadd.f32 %v1535_v31, %v1461_v30 }
 0x9dd   :  { %v6638_v35 = vpop.f32.mrf.mxu0 }
 0x9de   :  { %7414 = vtanh.f32 %v1539_v33  ;;  %v5836_v45 = vmul.f32 -1.442695, %v1539_v33 }
 0x9df   :  { %7416 = vpow2.f32 %v5833_v39 }
 0x9eb   :  { %v7415_v37 = vpop.eup %7414  ;;  %v8358_v38 = vpop.f32.mrf.mxu0 }
 0x9ec   :  { %1549 = vrot.lane.b32.xlu1 %v7415_v37, %s7697_s29  ;;  %v7417_v42 = vpop.eup %7416 }
 0x9ed   :  { %v6657_v0 = vpop.f32.mrf.mxu0  ;;  %v1371_v44 = vadd.f32 1.0, %v7417_v42 }
 0x9ef   :  { %7418 = vrcp.f32 %v1371_v44 }
 0x9f0   :  { %7420 = vpow2.f32 %v5836_v45 }
 0x9fc   :  { %v7419_v47 = vpop.eup %7418 }
 0x9fd   :  { %v7421_v50 = vpop.eup %7420  ;;  %v1375_v18 = vmul.f32 %v7419_v47, %v8275_v49 }
 0x9fe   :  { %v1543_v51 = vadd.f32 1.0, %v7421_v50 }
 0xa00   :  { %7422 = vrcp.f32 %v1543_v51 }
 0xa0d   :  { %v7423_v52 = vpop.eup %7422 }
 0xa0e   :  { %v1547_v24 = vmul.f32 %v7423_v52, %v8280_v57 }
 0xa46   :  { %v1378_v46 = vpop.permute.xlu0 %1377 }
 0xa47   :  { %v1380_v48 = vmul.f32 %v7419_v47, %v1378_v46 }
 0xa49   :  { %1382 = vrot.lane.b32.xlu0 %v1380_v48, %s7696_s25 }
 0xa5e   :  { %v1550_v58 = vpop.permute.xlu1 %1549 }
 0xa5f   :  { %v1552_v59 = vmul.f32 %v7423_v52, %v1550_v58 }
 0xa61   :  { %1554 = vrot.lane.b32.xlu1 %v1552_v59, %s7696_s25 }
 0xabb   :  { %v1383_v36 = vpop.permute.xlu0 %1382 }
 0xabc   :  { %v8364_v34 = vadd.f32 %v1383_v36, %v1375_v18 }
 0xabe   :  { %7424 = vtanh.f32 %v8364_v34 }
 0xacb   :  { %v7425_v22 = vpop.eup %7424 }
 0xacc   :  { %1388 = vrot.lane.b32.xlu0 %v7425_v22, %s7697_s29 }
 0xad3   :  { %v1555_v25 = vpop.permute.xlu1 %1554 }
 0xad4   :  { %v8369_v26 = vadd.f32 %v1555_v25, %v1547_v24 }
 0xad6   :  { %7426 = vtanh.f32 %v8369_v26 }
 0xae3   :  { %v7427_v27 = vpop.eup %7426 }
 0xae4   :  { %1560 = vrot.lane.b32.xlu1 %v7427_v27, %s7697_s29 }
 0xb3e   :  { %v1389_v28 = vpop.permute.xlu0 %1388 }
 0xb3f   :  { %v1391_v49 = vmul.f32 %v7419_v47, %v1389_v28 }
 0xb41   :  { %1635 = vrot.lane.b32.xlu0 %v1391_v49, %s7696_s25 }
 0xb56   :  { %v1561_v29 = vpop.permute.xlu1 %1560 }
 0xb57   :  { %v8374_v30 = vmul.f32 %v7423_v52, %v1561_v29 }
 0xb59   :  { %1805 = vrot.lane.b32.xlu1 %v8374_v30, %s7696_s25 }
 0xbb3   :  { %v8378_v31 = vpop.permute.xlu0 %1635 }
 0xbb4   :  { %6667 = vmatmul.mubr.msk.f32.vlgmr.msra.gmra.mxu1 %vm291_vm2, %v8378_v31 }
 0xbb5   :  { %6670 = vmatpush3.msra.mxu1 %v7938_v2  ;;  %6685 = vmatprep.mubr.msk.f32.mxu1 %vm7695_vm1, %v7694_v23 }
 0xbb6   :  { %6671 = vmatprep.subr.mxu1 %v7694_v23 }
 0xbb7   :  { %6672 = vmatpush3.msra.mxu1 %v7949_v5  ;;  %v8417_v5 = vld [vmem:[%s9827_s4 + $0x38] sm:$0xff] }
 0xbb8   :  { %6673 = vmatprep.subr.mxu1 %v7694_v23 }
 0xbb9   :  { %6674 = vmatpush3.msra.mxu1 %v7961_v6  ;;  %v8426_v6 = vld [vmem:[%s9827_s4 + $0x30] sm:$0xff] }
 0xbba   :  { %6675 = vmatprep.subr.mxu1 %v7694_v23 }
 0xbbb   :  { %6676 = vmatpush3.msra.mxu1 %v7970_v7  ;;  %v8433_v7 = vld [vmem:[%s9827_s4 + $0x28] sm:$0xff] }
 0xbbc   :  { %6677 = vmatprep.subr.mxu1 %v7694_v23 }
 0xbbd   :  { %6678 = vmatpush3.msra.mxu1 %v7979_v8  ;;  %v8440_v8 = vld [vmem:[%s9827_s4 + $0x20] sm:$0xff] }
 0xbbe   :  { %6679 = vmatprep.subr.mxu1 %v7694_v23 }
 0xbbf   :  { %6680 = vmatpush3.msra.mxu1 %v7991_v11  ;;  %v8447_v11 = vld [vmem:[%s9827_s4 + $0x18] sm:$0xff] }
 0xbc0   :  { %6681 = vmatprep.subr.mxu1 %v7694_v23 }
 0xbc1   :  { %6682 = vmatpush3.msra.mxu1 %v8000_v12  ;;  %v8454_v12 = vld [vmem:[%s9827_s4 + $0x10] sm:$0xff] }
 0xbc2   :  { %6683 = vmatprep.subr.mxu1 %v7694_v23 }
 0xbc3   :  { %6684 = vmatpush3.msra.mxu1 %v8012_v14  ;;  %v8461_v14 = vld [vmem:[%s9827_s4 + $0x8] sm:$0xff] }
 0xbc4   :  { %6686 = vmatmul.mubr.msk.f32.vlgmr.msra.gmra.mxu1 %vm329_vm3, %v1219_v43  ;;  %6718 = vmatprep.subr.mxu1 %v7694_v23  ;;  %v8468_v43 = vld [vmem:[%s9827_s4] sm:$0xff] }
 0xbc5   :  { %6719 = vmatpush3.msra.mxu1 %v8066_v53  ;;  %6726 = vmatprep.mubr.msk.f32.mxu1 %vm7695_vm1, %v7694_v23 }
 0xbc6   :  { %6720 = vmatprep.subr.mxu1 %v7694_v23 }
 0xbc7   :  { %6721 = vmatpush3.msra.mxu1 %v8071_v54 }
 0xbc8   :  { %6722 = vmatprep.subr.mxu1 %v7694_v23 }
 0xbc9   :  { %6723 = vmatpush3.msra.mxu1 %v8078_v55 }
 0xbca   :  { %6724 = vmatprep.subr.mxu1 %v7694_v23 }
 0xbcb   :  { %v1806_v2 = vpop.permute.xlu1 %1805  ;;  %6725 = vmatpush3.msra.mxu1 %v8085_v56 }
 0xbcc   :  { %6697 = vmatmul.mubr.msk.f32.vlgmr.msra.gmra.mxu0 %vm291_vm2, %v1806_v2  ;;  %6729 = vmatprep.subr.mxu1 %v7694_v23 }
 0xbcd   :  { %6700 = vmatpush3.msra.mxu0 %v8417_v5  ;;  %6715 = vmatprep.mubr.msk.f32.mxu0 %vm7695_vm1, %v7694_v23 }
 0xbce   :  { %6701 = vmatprep.subr.mxu0 %v7694_v23 }
 0xbcf   :  { %6702 = vmatpush3.msra.mxu0 %v8426_v6 }
 0xbd0   :  { %6703 = vmatprep.subr.mxu0 %v7694_v23 }
 0xbd1   :  { %6704 = vmatpush3.msra.mxu0 %v8433_v7 }
 0xbd2   :  { %6705 = vmatprep.subr.mxu0 %v7694_v23 }
 0xbd3   :  { %6706 = vmatpush3.msra.mxu0 %v8440_v8 }
 0xbd4   :  { %6707 = vmatprep.subr.mxu0 %v7694_v23 }
 0xbd5   :  { %6708 = vmatpush3.msra.mxu0 %v8447_v11 }
 0xbd6   :  { %6709 = vmatprep.subr.mxu0 %v7694_v23 }
 0xbd7   :  { %6710 = vmatpush3.msra.mxu0 %v8454_v12 }
 0xbd8   :  { %6711 = vmatprep.subr.mxu0 %v7694_v23 }
 0xbd9   :  { %6712 = vmatpush3.msra.mxu0 %v8461_v14 }
 0xbda   :  { %6713 = vmatprep.subr.mxu0 %v7694_v23 }
 0xbdb   :  { %6714 = vmatpush3.msra.mxu0 %v8468_v43 }
 0xbdc   :  { %6716 = vmatmul.mubr.msk.f32.vlgmr.msra.gmra.mxu0 %vm329_vm3, %v1046_v41  ;;  %6748 = vmatprep.subr.mxu0 %v7694_v23  ;;  %v1631_v41 = vadd.f32 %v8041_v17, %v8358_v38 }
 0xbdd   :  { %6749 = vmatpush3.msra.mxu0 %v8096_v60  ;;  %6756 = vmatprep.mubr.msk.f32.mxu0 %vm7695_vm1, %v7694_v23 }
 0xbde   :  { %6750 = vmatprep.subr.mxu0 %v7694_v23 }
 0xbdf   :  { %6751 = vmatpush3.msra.mxu0 %v8102_v61 }
 0xbe0   :  { %6752 = vmatprep.subr.mxu0 %v7694_v23 }
 0xbe1   :  { %6753 = vmatpush3.msra.mxu0 %v8109_v62 }
 0xbe2   :  { %6754 = vmatprep.subr.mxu0 %v7694_v23 }
 0xbe3   :  { %6755 = vmatpush3.msra.mxu0 %v8116_v63 }
 0xbe4   :  { %6759 = vmatprep.subr.mxu0 %v7694_v23 }
 0xc74   :  { %v1705_v57 = vpop.f32.mrf.mxu1 }
 0xc75   :  { %v1709_v33 = vadd.f32 %v1705_v57, %v1631_v41 }
 0xc76   :  { %v6668_v35 = vpop.f32.mrf.mxu1 }
 0xc77   :  { %7428 = vtanh.f32 %v1709_v33  ;;  %v5839_v38 = vmul.f32 -1.442695, %v1709_v33 }
 0xc84   :  { %v7429_v37 = vpop.eup %7428  ;;  %v1800_v0 = vpop.f32.mrf.mxu1 }
 0xc85   :  { %1719 = vrot.lane.b32.xlu0 %v7429_v37, %s7697_s29  ;;  %v1801_v42 = vadd.f32 %v8049_v32, %v1800_v0 }
 0xc86   :  { %v6687_v39 = vpop.f32.mrf.mxu1 }
 0xc8c   :  { %v1875_v44 = vpop.f32.mrf.mxu0 }
 0xc8d   :  { %v1879_v45 = vadd.f32 %v1875_v44, %v1801_v42  ;;  %v8525_v42 = vld [vmem:[%s9827_s4 + $0x70] sm:$0xff]  ;;  %v8532_v44 = vld [vmem:[%s9827_s4 + $0x68] sm:$0xff] }
 0xc8e   :  { %v6698_v47 = vpop.f32.mrf.mxu0 }
 0xc8f   :  { %7430 = vtanh.f32 %v1879_v45  ;;  %v5842_v52 = vmul.f32 -1.442695, %v1879_v45  ;;  %v8539_v45 = vld [vmem:[%s9827_s4 + $0x60] sm:$0xff]  ;;  %v8546_v47 = vld [vmem:[%s9827_s4 + $0x58] sm:$0xff] }
 0xc90   :  { %7432 = vpow2.f32 %v5839_v38  ;;  %v8567_v38 = vld [vmem:[%s9827_s4 + $0x40] sm:$0xff] }
 0xc9c   :  { %v7431_v46 = vpop.eup %7430  ;;  %v8489_v48 = vpop.f32.mrf.mxu0 }
 0xc9d   :  { %1889 = vrot.lane.b32.xlu1 %v7431_v46, %s7697_s29  ;;  %v7433_v50 = vpop.eup %7432  ;;  %v8553_v46 = vld [vmem:[%s9827_s4 + $0x50] sm:$0xff] }
 0xc9e   :  { %v6717_v17 = vpop.f32.mrf.mxu0  ;;  %v1713_v51 = vadd.f32 1.0, %v7433_v50 }
 0xc9f   :  { %v8560_v17 = vld [vmem:[%s9827_s4 + $0x48] sm:$0xff] }
 0xca0   :  { %7434 = vrcp.f32 %v1713_v51 }
 0xca1   :  { %7436 = vpow2.f32 %v5842_v52 }
 0xcad   :  { %v7435_v58 = vpop.eup %7434 }
 0xcae   :  { %v7437_v18 = vpop.eup %7436  ;;  %v1717_v27 = vmul.f32 %v7435_v58, %v8364_v34 }
 0xcaf   :  { %v1883_v36 = vadd.f32 1.0, %v7437_v18 }
 0xcb1   :  { %7438 = vrcp.f32 %v1883_v36 }
 0xcbe   :  { %v7439_v22 = vpop.eup %7438 }
 0xcbf   :  { %v1887_v2 = vmul.f32 %v7439_v22, %v8369_v26  ;;  %v8516_v26 = vld [vmem:[%s9827_s4 + $0x78] sm:$0xff] }
 0xcf7   :  { %v1720_v59 = vpop.permute.xlu0 %1719 }
 0xcf8   :  { %v1722_v32 = vmul.f32 %v7435_v58, %v1720_v59 }
 0xcfa   :  { %1724 = vrot.lane.b32.xlu0 %v1722_v32, %s7696_s25 }
 0xd0f   :  { %v1890_v24 = vpop.permute.xlu1 %1889 }
 0xd10   :  { %v1892_v25 = vmul.f32 %v7439_v22, %v1890_v24 }
 0xd12   :  { %1894 = vrot.lane.b32.xlu1 %v1892_v25, %s7696_s25 }
 0xd6c   :  { %v1725_v28 = vpop.permute.xlu0 %1724 }
 0xd6d   :  { %v8495_v49 = vadd.f32 %v1725_v28, %v1717_v27 }
 0xd6f   :  { %7440 = vtanh.f32 %v8495_v49 }
 0xd7c   :  { %v7441_v29 = vpop.eup %7440 }
 0xd7d   :  { %1730 = vrot.lane.b32.xlu0 %v7441_v29, %s7697_s29 }
 0xd84   :  { %v1895_v41 = vpop.permute.xlu1 %1894 }
 0xd85   :  { %v8500_v57 = vadd.f32 %v1895_v41, %v1887_v2 }
 0xd87   :  { %7442 = vtanh.f32 %v8500_v57 }
 0xd94   :  { %v7443_v33 = vpop.eup %7442 }
 0xd95   :  { %1900 = vrot.lane.b32.xlu1 %v7443_v33, %s7697_s29 }
 0xdef   :  { %v1731_v35 = vpop.permute.xlu0 %1730 }
 0xdf0   :  { %v1733_v34 = vmul.f32 %v7435_v58, %v1731_v35 }
 0xdf2   :  { %1975 = vrot.lane.b32.xlu0 %v1733_v34, %s7696_s25 }
 0xe07   :  { %v1901_v37 = vpop.permute.xlu1 %1900 }
 0xe08   :  { %v8505_v0 = vmul.f32 %v7439_v22, %v1901_v37 }
 0xe0a   :  { %2145 = vrot.lane.b32.xlu1 %v8505_v0, %s7696_s25 }
 0xe64   :  { %v8509_v39 = vpop.permute.xlu0 %1975 }
 0xe65   :  { %6727 = vmatmul.mubr.msk.f32.vlgmr.msra.gmra.mxu1 %vm291_vm2, %v8509_v39 }
 0xe66   :  { %6730 = vmatpush3.msra.mxu1 %v8516_v26  ;;  %6745 = vmatprep.mubr.msk.f32.mxu1 %vm7695_vm1, %v7694_v23 }
 0xe67   :  { %6731 = vmatprep.subr.mxu1 %v7694_v23 }
 0xe68   :  { %6732 = vmatpush3.msra.mxu1 %v8525_v42 }
 0xe69   :  { %6733 = vmatprep.subr.mxu1 %v7694_v23 }
 0xe6a   :  { %6734 = vmatpush3.msra.mxu1 %v8532_v44 }
 0xe6b   :  { %6735 = vmatprep.subr.mxu1 %v7694_v23 }
 0xe6c   :  { %6736 = vmatpush3.msra.mxu1 %v8539_v45 }
 0xe6d   :  { %6737 = vmatprep.subr.mxu1 %v7694_v23 }
 0xe6e   :  { %6738 = vmatpush3.msra.mxu1 %v8546_v47 }
 0xe6f   :  { %6739 = vmatprep.subr.mxu1 %v7694_v23 }
 0xe70   :  { %6740 = vmatpush3.msra.mxu1 %v8553_v46 }
 0xe71   :  { %6741 = vmatprep.subr.mxu1 %v7694_v23 }
 0xe72   :  { %6742 = vmatpush3.msra.mxu1 %v8560_v17 }
 0xe73   :  { %6743 = vmatprep.subr.mxu1 %v7694_v23 }
 0xe74   :  { %6744 = vmatpush3.msra.mxu1 %v8567_v38 }
 0xe75   :  { %6746 = vmatmul.mubr.msk.f32.vlgmr.msra.gmra.mxu1 %vm329_vm3, %v873_v16  ;;  %6778 = vmatprep.subr.mxu1 %v7694_v23  ;;  %v8619_v16 = vld [vmem:[%s9829_s6] ss:$0 sm:$0xff] }
 0xe76   :  { %6779 = vmatpush3.msra.mxu1 %v8066_v53  ;;  %6786 = vmatprep.mubr.msk.f32.mxu1 %vm7695_vm1, %v7694_v23  ;;  %v1971_v53 = vadd.f32 %v8619_v16, %v8489_v48 }
 0xe77   :  { %6780 = vmatprep.subr.mxu1 %v7694_v23 }
 0xe78   :  { %6781 = vmatpush3.msra.mxu1 %v8071_v54 }
 0xe79   :  { %6782 = vmatprep.subr.mxu1 %v7694_v23 }
 0xe7a   :  { %6783 = vmatpush3.msra.mxu1 %v8078_v55 }
 0xe7b   :  { %6784 = vmatprep.subr.mxu1 %v7694_v23 }
 0xe7c   :  { %v2146_v50 = vpop.permute.xlu1 %2145  ;;  %6785 = vmatpush3.msra.mxu1 %v8085_v56 }
 0xe7d   :  { %6757 = vmatmul.mubr.msk.f32.vlgmr.msra.gmra.mxu0 %vm291_vm2, %v2146_v50  ;;  %6789 = vmatprep.subr.mxu1 %v7694_v23 }
 0xe7e   :  { %6760 = vmatpush3.msra.mxu0 %v8417_v5  ;;  %6775 = vmatprep.mubr.msk.f32.mxu0 %vm7695_vm1, %v7694_v23 }
 0xe7f   :  { %6761 = vmatprep.subr.mxu0 %v7694_v23 }
 0xe80   :  { %6762 = vmatpush3.msra.mxu0 %v8426_v6 }
 0xe81   :  { %6763 = vmatprep.subr.mxu0 %v7694_v23 }
 0xe82   :  { %6764 = vmatpush3.msra.mxu0 %v8433_v7 }
 0xe83   :  { %6765 = vmatprep.subr.mxu0 %v7694_v23 }
 0xe84   :  { %6766 = vmatpush3.msra.mxu0 %v8440_v8 }
 0xe85   :  { %6767 = vmatprep.subr.mxu0 %v7694_v23 }
 0xe86   :  { %6768 = vmatpush3.msra.mxu0 %v8447_v11 }
 0xe87   :  { %6769 = vmatprep.subr.mxu0 %v7694_v23 }
 0xe88   :  { %6770 = vmatpush3.msra.mxu0 %v8454_v12 }
 0xe89   :  { %6771 = vmatprep.subr.mxu0 %v7694_v23 }
 0xe8a   :  { %6772 = vmatpush3.msra.mxu0 %v8461_v14 }
 0xe8b   :  { %6773 = vmatprep.subr.mxu0 %v7694_v23 }
 0xe8c   :  { %6774 = vmatpush3.msra.mxu0 %v8468_v43 }
 0xe8d   :  { %6776 = vmatmul.mubr.msk.f32.vlgmr.msra.gmra.mxu0 %vm329_vm3, %v696_v10  ;;  %6808 = vmatprep.subr.mxu0 %v7694_v23 }
 0xe8e   :  { %6809 = vmatpush3.msra.mxu0 %v8096_v60  ;;  %6816 = vmatprep.mubr.msk.f32.mxu0 %vm7695_vm1, %v7694_v23 }
 0xe8f   :  { %6810 = vmatprep.subr.mxu0 %v7694_v23 }
 0xe90   :  { %6811 = vmatpush3.msra.mxu0 %v8102_v61 }
 0xe91   :  { %6812 = vmatprep.subr.mxu0 %v7694_v23 }
 0xe92   :  { %6813 = vmatpush3.msra.mxu0 %v8109_v62 }
 0xe93   :  { %6814 = vmatprep.subr.mxu0 %v7694_v23 }
 0xe94   :  { %6815 = vmatpush3.msra.mxu0 %v8116_v63  ;;  %v8627_v63 = vld [vmem:[%s9829_s6 + $0x1] ss:$0 sm:$0xff] }
 0xe95   :  { %6819 = vmatprep.subr.mxu0 %v7694_v23 }
 0xf25   :  { %v2045_v54 = vpop.f32.mrf.mxu1 }
 0xf26   :  { %v2049_v55 = vadd.f32 %v2045_v54, %v1971_v53 }
 0xf27   :  { %v6728_v56 = vpop.f32.mrf.mxu1 }
 0xf28   :  { %7444 = vtanh.f32 %v2049_v55  ;;  %v5845_v18 = vmul.f32 -1.442695, %v2049_v55 }
 0xf35   :  { %v7445_v60 = vpop.eup %7444  ;;  %v2140_v61 = vpop.f32.mrf.mxu1 }
 0xf36   :  { %2059 = vrot.lane.b32.xlu0 %v7445_v60, %s7697_s29  ;;  %v2141_v10 = vadd.f32 %v8627_v63, %v2140_v61 }
 0xf37   :  { %v6747_v62 = vpop.f32.mrf.mxu1 }
 0xf3d   :  { %v2215_v51 = vpop.f32.mrf.mxu0 }
 0xf3e   :  { %v2219_v52 = vadd.f32 %v2215_v51, %v2141_v10 }
 0xf3f   :  { %v6758_v58 = vpop.f32.mrf.mxu0 }
 0xf40   :  { %7446 = vtanh.f32 %v2219_v52  ;;  %v5848_v24 = vmul.f32 -1.442695, %v2219_v52  ;;  %v7639_v52 = vld [vmem:[%s9828_s5 + $0x10] sm:$0xff] }
 0xf41   :  { %7448 = vpow2.f32 %v5845_v18 }
 0xf4d   :  { %v7447_v48 = vpop.eup %7446  ;;  %v8630_v59 = vpop.f32.mrf.mxu0 }
 0xf4e   :  { %2229 = vrot.lane.b32.xlu1 %v7447_v48, %s7697_s29  ;;  %v7449_v36 = vpop.eup %7448  ;;  %v7641_v48 = vld [vmem:[%s9828_s5] sm:$0xff] }
 0xf4f   :  { %v6777_v32 = vpop.f32.mrf.mxu0  ;;  %v2053_v22 = vadd.f32 1.0, %v7449_v36 }
 0xf51   :  { %7450 = vrcp.f32 %v2053_v22 }
 0xf52   :  { %7452 = vpow2.f32 %v5848_v24 }
 0xf5e   :  { %v7451_v25 = vpop.eup %7450 }
 0xf5f   :  { %v7453_v29 = vpop.eup %7452  ;;  %v2057_v34 = vmul.f32 %v7451_v25, %v8495_v49 }
 0xf60   :  { %v2223_v2 = vadd.f32 1.0, %v7453_v29 }
 0xf62   :  { %7454 = vrcp.f32 %v2223_v2 }
 0xf6f   :  { %v7455_v41 = vpop.eup %7454 }
 0xf70   :  { %v2227_v54 = vmul.f32 %v7455_v41, %v8500_v57  ;;  %v7638_v57 = vld [vmem:[%s9828_s5 + $0x18] sm:$0xff] }
 0xfa8   :  { %v2060_v27 = vpop.permute.xlu0 %2059 }
 0xfa9   :  { %v2062_v28 = vmul.f32 %v7451_v25, %v2060_v27 }
 0xfab   :  { %2064 = vrot.lane.b32.xlu0 %v2062_v28, %s7696_s25 }
 0xfc0   :  { %v2230_v33 = vpop.permute.xlu1 %2229 }
 0xfc1   :  { %v2232_v35 = vmul.f32 %v7455_v41, %v2230_v33 }
 0xfc3   :  { %2234 = vrot.lane.b32.xlu1 %v2232_v35, %s7696_s25 }
0x101d   :  { %v2065_v37 = vpop.permute.xlu0 %2064 }
0x101e   :  { %v8636_v50 = vadd.f32 %v2065_v37, %v2057_v34 }
0x1020   :  { %7456 = vtanh.f32 %v8636_v50 }
0x102d   :  { %v7457_v53 = vpop.eup %7456 }
0x102e   :  { %2070 = vrot.lane.b32.xlu0 %v7457_v53, %s7697_s29 }
0x1035   :  { %v2235_v55 = vpop.permute.xlu1 %2234 }
0x1036   :  { %v8641_v56 = vadd.f32 %v2235_v55, %v2227_v54 }
0x1038   :  { %7458 = vtanh.f32 %v8641_v56 }
0x1045   :  { %v7459_v60 = vpop.eup %7458 }
0x1046   :  { %2240 = vrot.lane.b32.xlu1 %v7459_v60, %s7697_s29 }
0x10a0   :  { %v2071_v61 = vpop.permute.xlu0 %2070 }
0x10a1   :  { %v2073_v49 = vmul.f32 %v7451_v25, %v2071_v61 }
0x10a3   :  { %2315 = vrot.lane.b32.xlu0 %v2073_v49, %s7696_s25 }
0x10b8   :  { %v2241_v62 = vpop.permute.xlu1 %2240 }
0x10b9   :  { %v8646_v10 = vmul.f32 %v7455_v41, %v2241_v62 }
0x10bb   :  { %2485 = vrot.lane.b32.xlu1 %v8646_v10, %s7696_s25 }
0x1115   :  { %v8650_v51 = vpop.permute.xlu0 %2315 }
0x1116   :  { %6787 = vmatmul.mubr.msk.f32.vlgmr.msra.gmra.mxu1 %vm291_vm2, %v8650_v51 }
0x1117   :  { %6790 = vmatpush3.msra.mxu1 %v8516_v26  ;;  %6805 = vmatprep.mubr.msk.f32.mxu1 %vm7695_vm1, %v7694_v23 }
0x1118   :  { %6791 = vmatprep.subr.mxu1 %v7694_v23 }
0x1119   :  { %6792 = vmatpush3.msra.mxu1 %v8525_v42 }
0x111a   :  { %6793 = vmatprep.subr.mxu1 %v7694_v23 }
0x111b   :  { %6794 = vmatpush3.msra.mxu1 %v8532_v44 }
0x111c   :  { %6795 = vmatprep.subr.mxu1 %v7694_v23 }
0x111d   :  { %6796 = vmatpush3.msra.mxu1 %v8539_v45 }
0x111e   :  { %6797 = vmatprep.subr.mxu1 %v7694_v23 }
0x111f   :  { %6798 = vmatpush3.msra.mxu1 %v8546_v47 }
0x1120   :  { %6799 = vmatprep.subr.mxu1 %v7694_v23 }
0x1121   :  { %6800 = vmatpush3.msra.mxu1 %v8553_v46 }
0x1122   :  { %6801 = vmatprep.subr.mxu1 %v7694_v23 }
0x1123   :  { %6802 = vmatpush3.msra.mxu1 %v8560_v17 }
0x1124   :  { %6803 = vmatprep.subr.mxu1 %v7694_v23 }
0x1125   :  { %6804 = vmatpush3.msra.mxu1 %v8567_v38 }
0x1126   :  { %6806 = vmatmul.mubr.msk.f32.vlgmr.msra.gmra.mxu1 %vm329_vm3, %v519_v4  ;;  %6838 = vmatprep.subr.mxu1 %v7694_v23  ;;  %v7640_v4 = vld [vmem:[%s9828_s5 + $0x8] sm:$0xff] }
0x1127   :  { %6839 = vmatpush3.msra.mxu1 %v7638_v57  ;;  %6846 = vmatprep.mubr.msk.f32.mxu1 %vm7695_vm1, %v7694_v23 }
0x1128   :  { %6840 = vmatprep.subr.mxu1 %v7694_v23 }
0x1129   :  { %6841 = vmatpush3.msra.mxu1 %v7639_v52 }
0x112a   :  { %6842 = vmatprep.subr.mxu1 %v7694_v23 }
0x112b   :  { %6843 = vmatpush3.msra.mxu1 %v7640_v4 }
0x112c   :  { %6844 = vmatprep.subr.mxu1 %v7694_v23 }
0x112d   :  { %v2486_v58 = vpop.permute.xlu1 %2485  ;;  %6845 = vmatpush3.msra.mxu1 %v7641_v48 }
0x112e   :  { %6817 = vmatmul.mubr.msk.f32.vlgmr.msra.gmra.mxu0 %vm291_vm2, %v2486_v58  ;;  %6849 = vmatprep.subr.mxu1 %v7694_v23 }
0x112f   :  { %6820 = vmatpush3.msra.mxu0 %v8417_v5  ;;  %6835 = vmatprep.mubr.msk.f32.mxu0 %vm7695_vm1, %v7694_v23  ;;  %v7642_v5 = vld [vmem:[%s9828_s5 + $0x38] sm:$0xff] }
0x1130   :  { %6821 = vmatprep.subr.mxu0 %v7694_v23 }
0x1131   :  { %6822 = vmatpush3.msra.mxu0 %v8426_v6  ;;  %v7643_v6 = vld [vmem:[%s9828_s5 + $0x30] sm:$0xff] }
0x1132   :  { %6823 = vmatprep.subr.mxu0 %v7694_v23 }
0x1133   :  { %6824 = vmatpush3.msra.mxu0 %v8433_v7  ;;  %v2311_v7 = vadd.f32 %v8619_v16, %v8630_v59 }
0x1134   :  { %6825 = vmatprep.subr.mxu0 %v7694_v23 }
0x1135   :  { %6826 = vmatpush3.msra.mxu0 %v8440_v8 }
0x1136   :  { %6827 = vmatprep.subr.mxu0 %v7694_v23 }
0x1137   :  { %6828 = vmatpush3.msra.mxu0 %v8447_v11 }
0x1138   :  { %6829 = vmatprep.subr.mxu0 %v7694_v23 }
0x1139   :  { %6830 = vmatpush3.msra.mxu0 %v8454_v12 }
0x113a   :  { %6831 = vmatprep.subr.mxu0 %v7694_v23 }
0x113b   :  { %6832 = vmatpush3.msra.mxu0 %v8461_v14 }
0x113c   :  { %6833 = vmatprep.subr.mxu0 %v7694_v23 }
0x113d   :  { %6834 = vmatpush3.msra.mxu0 %v8468_v43 }
0x113e   :  { %6836 = vmatmul.mubr.msk.f32.vlgmr.msra.gmra.mxu0 %vm329_vm3, %v428_v15  ;;  %6868 = vmatprep.subr.mxu0 %v7694_v23  ;;  %v7645_v15 = vld [vmem:[%s9828_s5 + $0x20] sm:$0xff] }
0x113f   :  { %6869 = vmatpush3.msra.mxu0 %v7642_v5  ;;  %6876 = vmatprep.mubr.msk.f32.mxu0 %vm7695_vm1, %v7694_v23 }
0x1140   :  { %6870 = vmatprep.subr.mxu0 %v7694_v23 }
0x1141   :  { %6871 = vmatpush3.msra.mxu0 %v7643_v6 }
0x1142   :  { %6872 = vmatprep.subr.mxu0 %v7694_v23 }
0x1143   :  { %6873 = vmatpush3.msra.mxu0 %v7644_v13 }
0x1144   :  { %6874 = vmatprep.subr.mxu0 %v7694_v23 }
0x1145   :  { %6875 = vmatpush3.msra.mxu0 %v7645_v15 }
0x1146   :  { %6879 = vmatprep.subr.mxu0 %v7694_v23 }
0x11d6   :  { %v2385_v8 = vpop.f32.mrf.mxu1 }
0x11d7   :  { %v2389_v11 = vadd.f32 %v2385_v8, %v2311_v7 }
0x11d8   :  { %v6788_v12 = vpop.f32.mrf.mxu1 }
0x11d9   :  { %7460 = vtanh.f32 %v2389_v11  ;;  %v5851_v28 = vmul.f32 -1.442695, %v2389_v11 }
0x11e6   :  { %v7461_v14 = vpop.eup %7460  ;;  %v2480_v43 = vpop.f32.mrf.mxu1 }
0x11e7   :  { %2399 = vrot.lane.b32.xlu0 %v7461_v14, %s7697_s29  ;;  %v2481_v18 = vadd.f32 %v8627_v63, %v2480_v43 }
0x11e8   :  { %v6807_v32 = vpop.f32.mrf.mxu1 }
0x11ee   :  { %v2555_v36 = vpop.f32.mrf.mxu0 }
0x11ef   :  { %v2559_v22 = vadd.f32 %v2555_v36, %v2481_v18 }
0x11f0   :  { %v6818_v24 = vpop.f32.mrf.mxu0 }
0x11f1   :  { %7462 = vtanh.f32 %v2559_v22  ;;  %v5854_v41 = vmul.f32 -1.442695, %v2559_v22 }
0x11f2   :  { %7464 = vpow2.f32 %v5851_v28 }
0x11fe   :  { %v7463_v25 = vpop.eup %7462  ;;  %v8737_v27 = vpop.f32.mrf.mxu0 }
0x11ff   :  { %2569 = vrot.lane.b32.xlu1 %v7463_v25, %s7697_s29  ;;  %v7465_v29 = vpop.eup %7464 }
0x1200   :  { %v6837_v59 = vpop.f32.mrf.mxu0  ;;  %v2393_v2 = vadd.f32 1.0, %v7465_v29 }
0x1202   :  { %7466 = vrcp.f32 %v2393_v2 }
0x1203   :  { %7468 = vpow2.f32 %v5854_v41 }
0x120f   :  { %v7467_v33 = vpop.eup %7466 }
0x1210   :  { %v7469_v37 = vpop.eup %7468  ;;  %v2397_v61 = vmul.f32 %v7467_v33, %v8636_v50 }
0x1211   :  { %v2563_v53 = vadd.f32 1.0, %v7469_v37  ;;  %v8804_v37 = vld [vmem:[%s9830_s7 + $0x38] sm:$0xff] }
0x1213   :  { %7470 = vrcp.f32 %v2563_v53  ;;  %v8809_v53 = vld [vmem:[%s9830_s7 + $0x30] sm:$0xff] }
0x1220   :  { %v7471_v54 = vpop.eup %7470 }
0x1221   :  { %v2567_v52 = vmul.f32 %v7471_v54, %v8641_v56 }
0x1259   :  { %v2400_v35 = vpop.permute.xlu0 %2399 }
0x125a   :  { %v2402_v34 = vmul.f32 %v7467_v33, %v2400_v35 }
0x125c   :  { %2404 = vrot.lane.b32.xlu0 %v2402_v34, %s7696_s25 }
0x1271   :  { %v2570_v55 = vpop.permute.xlu1 %2569 }
0x1272   :  { %v2572_v60 = vmul.f32 %v7471_v54, %v2570_v55  ;;  %v8820_v55 = vld [vmem:[%s9830_s7 + $0x70] sm:$0xff] }
0x1274   :  { %2574 = vrot.lane.b32.xlu1 %v2572_v60, %s7696_s25  ;;  %v8826_v60 = vld [vmem:[%s9830_s7 + $0x28] sm:$0xff] }
0x12ce   :  { %v2405_v49 = vpop.permute.xlu0 %2404 }
0x12cf   :  { %v8743_v62 = vadd.f32 %v2405_v49, %v2397_v61  ;;  %v8834_v61 = vld [vmem:[%s9830_s7 + $0x68] sm:$0xff]  ;;  %v8840_v49 = vld [vmem:[%s9830_s7 + $0x20] sm:$0xff] }
0x12d1   :  { %7472 = vtanh.f32 %v8743_v62 }
0x12de   :  { %v7473_v57 = vpop.eup %7472 }
0x12df   :  { %2410 = vrot.lane.b32.xlu0 %v7473_v57, %s7697_s29  ;;  %v8854_v57 = vld [vmem:[%s9830_s7 + $0x18] sm:$0xff] }
0x12e6   :  { %v2575_v4 = vpop.permute.xlu1 %2574 }
0x12e7   :  { %v8748_v58 = vadd.f32 %v2575_v4, %v2567_v52  ;;  %v8862_v52 = vld [vmem:[%s9830_s7 + $0x58] sm:$0xff]  ;;  %v8868_v4 = vld [vmem:[%s9830_s7 + $0x10] sm:$0xff] }
0x12e9   :  { %7474 = vtanh.f32 %v8748_v58 }
0x12f6   :  { %v7475_v48 = vpop.eup %7474 }
0x12f7   :  { %2580 = vrot.lane.b32.xlu1 %v7475_v48, %s7697_s29 }
0x1351   :  { %v2411_v5 = vpop.permute.xlu0 %2410 }
0x1352   :  { %v2413_v50 = vmul.f32 %v7467_v33, %v2411_v5 }
0x1354   :  { %2655 = vrot.lane.b32.xlu0 %v2413_v50, %s7696_s25  ;;  %v8889_v50 = vld [vmem:[%s9830_s7] sm:$0xff] }
0x1369   :  { %v2581_v6 = vpop.permute.xlu1 %2580 }
0x136a   :  { %v8753_v13 = vmul.f32 %v7471_v54, %v2581_v6  ;;  %v8815_v54 = vld [vmem:[%s9830_s7 + $0x78] sm:$0xff]  ;;  %v8894_v6 = vld [vmem:[%s9830_s7 + $0x50] sm:$0xff] }
0x136c   :  { %2825 = vrot.lane.b32.xlu1 %v8753_v13, %s7696_s25 }
0x13c6   :  { %v8757_v15 = vpop.permute.xlu0 %2655 }
0x13c7   :  { %6847 = vmatmul.mubr.msk.f32.vlgmr.msra.gmra.mxu1 %vm291_vm2, %v8757_v15 }
0x13c8   :  { %6850 = vmatpush3.msra.mxu1 %v8516_v26  ;;  %6865 = vmatprep.mubr.msk.f32.mxu1 %vm7695_vm1, %v7694_v23 }
0x13c9   :  { %6851 = vmatprep.subr.mxu1 %v7694_v23 }
0x13ca   :  { %6852 = vmatpush3.msra.mxu1 %v8525_v42  ;;  %v2651_v42 = vadd.f32 %v8619_v16, %v8737_v27 }
0x13cb   :  { %6853 = vmatprep.subr.mxu1 %v7694_v23 }
0x13cc   :  { %6854 = vmatpush3.msra.mxu1 %v8532_v44 }
0x13cd   :  { %6855 = vmatprep.subr.mxu1 %v7694_v23 }
0x13ce   :  { %6856 = vmatpush3.msra.mxu1 %v8539_v45 }
0x13cf   :  { %6857 = vmatprep.subr.mxu1 %v7694_v23 }
0x13d0   :  { %6858 = vmatpush3.msra.mxu1 %v8546_v47 }
0x13d1   :  { %6859 = vmatprep.subr.mxu1 %v7694_v23 }
0x13d2   :  { %6860 = vmatpush3.msra.mxu1 %v8553_v46 }
0x13d3   :  { %6861 = vmatprep.subr.mxu1 %v7694_v23 }
0x13d4   :  { %6862 = vmatpush3.msra.mxu1 %v8560_v17 }
0x13d5   :  { %6863 = vmatprep.subr.mxu1 %v7694_v23 }
0x13d6   :  { %6864 = vmatpush3.msra.mxu1 %v8567_v38 }
0x13d7   :  { %6866 = vmatmul.mubr.msk.f32.vlgmr.msra.gmra.mxu1 %vm329_vm3, %v7941_v3  ;;  %6898 = vmatprep.subr.mxu1 %v7694_v23 }
0x13d8   :  { %6914 = vmatprep.mubr.msk.f32.mxu1 %vm7695_vm1, %v7694_v23  ;;  %6899 = vmatpush3.msra.mxu1 %v8815_v54 }
0x13d9   :  { %6900 = vmatprep.subr.mxu1 %v7694_v23 }
0x13da   :  { %6901 = vmatpush3.msra.mxu1 %v8820_v55 }
0x13db   :  { %6902 = vmatprep.subr.mxu1 %v7694_v23 }
0x13dc   :  { %6903 = vmatpush3.msra.mxu1 %v8834_v61 }
0x13dd   :  { %6904 = vmatprep.subr.mxu1 %v7694_v23 }
0x13de   :  { %v2826_v26 = vpop.permute.xlu1 %2825 }
0x13df   :  { %6877 = vmatmul.mubr.msk.f32.vlgmr.msra.gmra.mxu0 %vm291_vm2, %v2826_v26  ;;  %v8901_v26 = vld [vmem:[%s9830_s7 + $0x48] sm:$0xff] }
0x13e0   :  { %6895 = vmatprep.mubr.msk.f32.mxu0 %vm7695_vm1, %v7694_v23  ;;  %6880 = vmatpush3.msra.mxu0 %v8804_v37 }
0x13e1   :  { %6881 = vmatprep.subr.mxu0 %v7694_v23 }
0x13e2   :  { %6882 = vmatpush3.msra.mxu0 %v8809_v53 }
0x13e3   :  { %6883 = vmatprep.subr.mxu0 %v7694_v23 }
0x13e4   :  { %6884 = vmatpush3.msra.mxu0 %v8826_v60 }
0x13e5   :  { %6885 = vmatprep.subr.mxu0 %v7694_v23 }
0x13e6   :  { %6886 = vmatpush3.msra.mxu0 %v8840_v49 }
0x13e7   :  { %6887 = vmatprep.subr.mxu0 %v7694_v23 }
0x13e8   :  { %6888 = vmatpush3.msra.mxu0 %v8854_v57 }
0x13e9   :  { %6889 = vmatprep.subr.mxu0 %v7694_v23 }
0x13ea   :  { %6890 = vmatpush3.msra.mxu0 %v8868_v4 }
0x13eb   :  { %6891 = vmatprep.subr.mxu0 %v7694_v23 }
0x1487   :  { %v2725_v44 = vpop.f32.mrf.mxu1 }
0x1488   :  { %v2729_v45 = vadd.f32 %v2725_v44, %v2651_v42  ;;  %v8910_v42 = vld [vmem:[%s9830_s7 + $0x40] sm:$0xff] }
0x1489   :  { %v6848_v47 = vpop.f32.mrf.mxu1 }
0x148a   :  { %7476 = vtanh.f32 %v2729_v45  ;;  %v5857_v12 = vmul.f32 -1.442695, %v2729_v45 }
0x1497   :  { %v7477_v46 = vpop.eup %7476  ;;  %v2820_v3 = vpop.f32.mrf.mxu1 }
0x1498   :  { %2739 = vrot.lane.b32.xlu1 %v7477_v46, %s7697_s29  ;;  %v2821_v38 = vadd.f32 %v8627_v63, %v2820_v3 }
0x1499   :  { %v6867_v17 = vpop.f32.mrf.mxu1 }
0x149f   :  { %v2895_v56 = vpop.f32.mrf.mxu0 }
0x14a0   :  { %v2899_v7 = vadd.f32 %v2895_v56, %v2821_v38 }
0x14a1   :  { %v6878_v8 = vpop.f32.mrf.mxu0 }
0x14a2   :  { %7478 = vtanh.f32 %v2899_v7  ;;  %v5860_v43 = vmul.f32 -1.442695, %v2899_v7  ;;  %v8958_v8 = vld [vmem:[%s9832_s9 + $0x1] ss:$0 sm:$0xff] }
0x14a3   :  { %7480 = vpow2.f32 %v5857_v12 }
0x14af   :  { %v7479_v11 = vpop.eup %7478 }
0x14b0   :  { %2909 = vrot.lane.b32.xlu0 %v7479_v11, %s7697_s29  ;;  %v7481_v16 = vpop.eup %7480 }
0x14b1   :  { %v2733_v14 = vadd.f32 1.0, %v7481_v16 }
0x14b3   :  { %7482 = vrcp.f32 %v2733_v14 }
0x14b4   :  { %7484 = vpow2.f32 %v5860_v43 }
0x14c0   :  { %v7483_v32 = vpop.eup %7482 }
0x14c1   :  { %v7485_v63 = vpop.eup %7484  ;;  %v2737_v59 = vmul.f32 %v7483_v32, %v8743_v62  ;;  %v8848_v62 = vld [vmem:[%s9830_s7 + $0x60] sm:$0xff] }
0x14c2   :  { %v2903_v22 = vadd.f32 1.0, %v7485_v63  ;;  %6905 = vmatpush3.msra.mxu1 %v8848_v62 }
0x14c3   :  { %6906 = vmatprep.subr.mxu1 %v7694_v23 }
0x14c4   :  { %7486 = vrcp.f32 %v2903_v22  ;;  %6907 = vmatpush3.msra.mxu1 %v8862_v52 }
0x14c5   :  { %6908 = vmatprep.subr.mxu1 %v7694_v23 }
0x14c6   :  { %6909 = vmatpush3.msra.mxu1 %v8894_v6 }
0x14c7   :  { %6910 = vmatprep.subr.mxu1 %v7694_v23 }
0x14c8   :  { %6911 = vmatpush3.msra.mxu1 %v8901_v26 }
0x14c9   :  { %6912 = vmatprep.subr.mxu1 %v7694_v23 }
0x14ca   :  { %6913 = vmatpush3.msra.mxu1 %v8910_v42 }
0x14cb   :  { %6936 = vmatprep.subr.mxu1 %v7694_v23 }
0x14d1   :  { %v8792_v24 = vpop.eup %7486 }
0x14d2   :  { %v2907_v41 = vmul.f32 %v8792_v24, %v8748_v58  ;;  %v8877_v58 = vld [vmem:[%s9830_s7 + $0x8] sm:$0xff] }
0x14d3   :  { %6892 = vmatpush3.msra.mxu0 %v8877_v58 }
0x14d4   :  { %6893 = vmatprep.subr.mxu0 %v7694_v23 }
0x14d5   :  { %6894 = vmatpush3.msra.mxu0 %v8889_v50 }
0x14d6   :  { %6917 = vmatprep.subr.mxu0 %v7694_v23 }
0x150a   :  { %v2740_v18 = vpop.permute.xlu1 %2739 }
0x150b   :  { %v2742_v36 = vmul.f32 %v7483_v32, %v2740_v18 }
0x150d   :  { %2744 = vrot.lane.b32.xlu1 %v2742_v36, %s7696_s25 }
0x1522   :  { %v2910_v25 = vpop.permute.xlu0 %2909 }
0x1523   :  { %v2912_v27 = vmul.f32 %v8792_v24, %v2910_v25 }
0x1525   :  { %2914 = vrot.lane.b32.xlu0 %v2912_v27, %s7696_s25 }
0x157f   :  { %v2745_v28 = vpop.permute.xlu1 %2744 }
0x1580   :  { %v2747_v29 = vadd.f32 %v2745_v28, %v2737_v59 }
0x1582   :  { %7488 = vtanh.f32 %v2747_v29 }
0x158f   :  { %v7489_v2 = vpop.eup %7488 }
0x1590   :  { %2750 = vrot.lane.b32.xlu1 %v7489_v2, %s7697_s29 }
0x1597   :  { %v2915_v33 = vpop.permute.xlu0 %2914 }
0x1598   :  { %v2917_v35 = vadd.f32 %v2915_v33, %v2907_v41  ;;  %v8972_v41 = vld [vmem:[%s9831_s8 + $0x18] sm:$0xff]  ;;  %v8977_v33 = vld [vmem:[%s9831_s8 + $0x10] sm:$0xff] }
0x159a   :  { %7490 = vtanh.f32 %v2917_v35  ;;  %v8984_v35 = vld [vmem:[%s9831_s8 + $0x8] sm:$0xff] }
0x15a7   :  { %v7491_v34 = vpop.eup %7490 }
0x15a8   :  { %2920 = vrot.lane.b32.xlu0 %v7491_v34, %s7697_s29 }
0x1602   :  { %v2751_v48 = vpop.permute.xlu1 %2750 }
0x1603   :  { %v2753_v5 = vmul.f32 %v7483_v32, %v2751_v48  ;;  %v8991_v48 = vld [vmem:[%s9831_s8] sm:$0xff] }
0x1605   :  { %2961 = vrot.lane.b32.xlu1 %v2753_v5, %s7696_s25 }
0x161a   :  { %v2921_v44 = vpop.permute.xlu0 %2920 }
0x161b   :  { %v2923_v45 = vmul.f32 %v8792_v24, %v2921_v44 }
0x161d   :  { %2926 = vrot.lane.b32.xlu0 %v2923_v45, %s7697_s29 }
0x1621   :  { %2964 = vrot.lane.b32.xlu0 %v8121_v1, %s7697_s29  ;;  %v8952_v1 = vld [vmem:[%s9832_s9] ss:$0 sm:$0xff] }
0x1677   :  { %v2962_v3 = vpop.permute.xlu1 %2961 }
0x168f   :  { %v2927_v47 = vpop.permute.xlu0 %2926 }
0x1690   :  { %v8920_v46 = vsel %vm291_vm2, %v8125_v9, %v2927_v47 }
0x1691   :  { %6896 = vmatmul.mubr.msk.f32.vlgmr.msra.gmra.mxu0 %vm329_vm3, %v8920_v46 }
0x1692   :  { %6918 = vmatpush3.msra.mxu0 %v8804_v37  ;;  %6933 = vmatprep.mubr.msk.f32.mxu0 %vm7695_vm1, %v7694_v23 }
0x1693   :  { %v2965_v17 = vpop.permute.xlu0 %2964  ;;  %6919 = vmatprep.subr.mxu0 %v7694_v23 }
0x1694   :  { %v8929_v38 = vsel %vm291_vm2, %v2962_v3, %v2965_v17  ;;  %6920 = vmatpush3.msra.mxu0 %v8809_v53  ;;  %v9007_v17 = vld [vmem:[%s9831_s8 + $0x38] sm:$0xff] }
0x1695   :  { %6915 = vmatmul.mubr.msk.f32.vlgmr.msra.gmra.mxu1 %vm329_vm3, %v8929_v38  ;;  %6921 = vmatprep.subr.mxu0 %v7694_v23 }
0x1696   :  { %6922 = vmatpush3.msra.mxu0 %v8826_v60  ;;  %6944 = vmatprep.mubr.msk.f32.mxu1 %vm7695_vm1, %v7694_v23 }
0x1697   :  { %6923 = vmatprep.subr.mxu0 %v7694_v23  ;;  %6937 = vmatpush3.msra.mxu1 %v8972_v41 }
0x1698   :  { %6924 = vmatpush3.msra.mxu0 %v8840_v49  ;;  %6938 = vmatprep.subr.mxu1 %v7694_v23 }
0x1699   :  { %6925 = vmatprep.subr.mxu0 %v7694_v23  ;;  %6939 = vmatpush3.msra.mxu1 %v8977_v33 }
0x169a   :  { %6926 = vmatpush3.msra.mxu0 %v8854_v57  ;;  %6940 = vmatprep.subr.mxu1 %v7694_v23 }
0x169b   :  { %6927 = vmatprep.subr.mxu0 %v7694_v23  ;;  %6941 = vmatpush3.msra.mxu1 %v8984_v35 }
0x169c   :  { %6928 = vmatpush3.msra.mxu0 %v8868_v4  ;;  %6942 = vmatprep.subr.mxu1 %v7694_v23 }
0x169d   :  { %6929 = vmatprep.subr.mxu0 %v7694_v23  ;;  %6943 = vmatpush3.msra.mxu1 %v8991_v48 }
0x169e   :  { %6930 = vmatpush3.msra.mxu0 %v8877_v58  ;;  %6947 = vmatprep.subr.mxu1 %v7694_v23 }
0x169f   :  { %6931 = vmatprep.subr.mxu0 %v7694_v23 }
0x16a0   :  { %6932 = vmatpush3.msra.mxu0 %v8889_v50 }
0x16a1   :  { %6966 = vmatprep.subr.mxu0 %v7694_v23 }
0x1751   :  { %v3072_v9 = vpop.f32.mrf.mxu0 }
0x1752   :  { %v3073_v56 = vadd.f32 %v8952_v1, %v3072_v9 }
0x1753   :  { %v6897_v7 = vpop.f32.mrf.mxu0 }
0x1754   :  { %7492 = vtanh.f32 %v3073_v56  ;;  %v5876_v32 = vmul.f32 -1.442695, %v3073_v56  ;;  %v9038_v56 = vld [vmem:[%s9831_s8 + $0x20] sm:$0xff] }
0x1755   :  { %v3169_v11 = vpop.f32.mrf.mxu1 }
0x1756   :  { %v3170_v12 = vadd.f32 %v8958_v8, %v3169_v11 }
0x1757   :  { %v6916_v16 = vpop.f32.mrf.mxu1 }
0x1758   :  { %7494 = vtanh.f32 %v3170_v12  ;;  %v5879_v18 = vmul.f32 -1.442695, %v3170_v12 }
0x1759   :  { %7496 = vpow2.f32 %v5876_v32 }
0x175a   :  { %7498 = vpow2.f32 %v5879_v18 }
0x1761   :  { %v7493_v14 = vpop.eup %7492 }
0x1762   :  { %3084 = vrot.lane.b32.xlu1 %v7493_v14, %s7697_s29 }
0x1765   :  { %v7495_v43 = vpop.eup %7494 }
0x1766   :  { %3181 = vrot.lane.b32.xlu0 %v7495_v43, %s7697_s29  ;;  %v7497_v36 = vpop.eup %7496 }
0x1767   :  { %v3079_v63 = vadd.f32 1.0, %v7497_v36  ;;  %v7499_v22 = vpop.eup %7498 }
0x1768   :  { %v3176_v24 = vadd.f32 1.0, %v7499_v22 }
0x1769   :  { %7500 = vrcp.f32 %v3079_v63 }
0x176a   :  { %7502 = vrcp.f32 %v3176_v24 }
0x1776   :  { %v7501_v25 = vpop.eup %7500 }
0x1777   :  { %v7503_v28 = vpop.eup %7502 }
0x17d4   :  { %v3085_v27 = vpop.permute.xlu1 %3084 }
0x17d5   :  { %v8963_v59 = vmul.f32 %v7501_v25, %v3085_v27 }
0x17d7   :  { %7504 = vtanh.f32 %v8963_v59 }
0x17d8   :  { %v3182_v29 = vpop.permute.xlu0 %3181 }
0x17d9   :  { %v8966_v2 = vmul.f32 %v7503_v28, %v3182_v29 }
0x17db   :  { %7506 = vtanh.f32 %v8966_v2 }
0x17e4   :  { %v7505_v34 = vpop.eup %7504 }
0x17e5   :  { %3090 = vrot.lane.b32.xlu1 %v7505_v34, %s7698_s3 }
0x17e8   :  { %v7507_v5 = vpop.eup %7506 }
0x17e9   :  { %2931 = vrot.lane.b32.xlu1 %v8753_v13, %s7697_s29  ;;  %3187 = vrot.lane.b32.xlu0 %v7507_v5, %s7698_s3 }
0x17ed   :  { %2956 = vrot.lane.b32.xlu1 %v8192_v40, %s7697_s29  ;;  %v9020_v40 = vld [vmem:[%s9831_s8 + $0x30] sm:$0xff] }
0x1857   :  { %v3091_v44 = vpop.permute.xlu1 %3090 }
0x1858   :  { %v3093_v45 = vmul.f32 %v7501_v25, %v3091_v44 }
0x185a   :  { %3265 = vrot.lane.b32.xlu0 %v3093_v45, %s7696_s25 }
0x185b   :  { %v2932_v47 = vpop.permute.xlu1 %2931  ;;  %v3188_v3 = vpop.permute.xlu0 %3187 }
0x185c   :  { %v9011_v9 = vsel %vm291_vm2, %v8196_v21, %v2932_v47  ;;  %v9013_v13 = vmul.f32 %v7503_v28, %v3188_v3  ;;  %v9029_v21 = vld [vmem:[%s9831_s8 + $0x28] sm:$0xff] }
0x185d   :  { %6934 = vmatmul.mubr.msk.f32.vlgmr.msra.gmra.mxu0 %vm329_vm3, %v9011_v9 }
0x185e   :  { %3442 = vrot.lane.b32.xlu0 %v9013_v13, %s7696_s25  ;;  %6967 = vmatpush3.msra.mxu0 %v9007_v17 }
0x185f   :  { %6968 = vmatprep.subr.mxu0 %v7694_v23  ;;  %6974 = vmatprep.mubr.msk.f32.mxu0 %vm7695_vm1, %v7694_v23  ;;  %v2957_v12 = vpop.permute.xlu1 %2956 }
0x1860   :  { %6969 = vmatpush3.msra.mxu0 %v9020_v40  ;;  %v9077_v16 = vsel %vm291_vm2, %v8757_v15, %v2957_v12 }
0x1861   :  { %6970 = vmatprep.subr.mxu0 %v7694_v23 }
0x1862   :  { %6971 = vmatpush3.msra.mxu0 %v9029_v21 }
0x1863   :  { %6972 = vmatprep.subr.mxu0 %v7694_v23 }
0x1864   :  { %6973 = vmatpush3.msra.mxu0 %v9038_v56 }
0x1865   :  { %6977 = vmatprep.subr.mxu0 %v7694_v23 }
0x18cc   :  { %v9044_v7 = vpop.permute.xlu0 %3265 }
0x18cd   :  { %6945 = vmatmul.mubr.msk.f32.vlgmr.msra.gmra.mxu1 %vm291_vm2, %v9044_v7 }
0x18ce   :  { %6948 = vmatpush3.msra.mxu1 %v8815_v54  ;;  %6963 = vmatprep.mubr.msk.f32.mxu1 %vm7695_vm1, %v7694_v23 }
0x18cf   :  { %6949 = vmatprep.subr.mxu1 %v7694_v23 }
0x18d0   :  { %6950 = vmatpush3.msra.mxu1 %v8820_v55  ;;  %v3443_v11 = vpop.permute.xlu0 %3442 }
0x18d1   :  { %6951 = vmatprep.subr.mxu1 %v7694_v23  ;;  %6975 = vmatmul.mubr.msk.f32.vlgmr.msra.gmra.mxu0 %vm291_vm2, %v3443_v11 }
0x18d2   :  { %6952 = vmatpush3.msra.mxu1 %v8834_v61  ;;  %6978 = vmatpush3.msra.mxu0 %v8804_v37 }
0x18d3   :  { %6953 = vmatprep.subr.mxu1 %v7694_v23  ;;  %6979 = vmatprep.subr.mxu0 %v7694_v23 }
0x18d4   :  { %6954 = vmatpush3.msra.mxu1 %v8848_v62  ;;  %6980 = vmatpush3.msra.mxu0 %v8809_v53 }
0x18d5   :  { %6955 = vmatprep.subr.mxu1 %v7694_v23  ;;  %6981 = vmatprep.subr.mxu0 %v7694_v23 }
0x18d6   :  { %6956 = vmatpush3.msra.mxu1 %v8862_v52  ;;  %6982 = vmatpush3.msra.mxu0 %v8826_v60 }
0x18d7   :  { %6957 = vmatprep.subr.mxu1 %v7694_v23  ;;  %6983 = vmatprep.subr.mxu0 %v7694_v23 }
0x18d8   :  { %6958 = vmatpush3.msra.mxu1 %v8894_v6  ;;  %6984 = vmatpush3.msra.mxu0 %v8840_v49 }
0x18d9   :  { %6959 = vmatprep.subr.mxu1 %v7694_v23  ;;  %6985 = vmatprep.subr.mxu0 %v7694_v23 }
0x18da   :  { %6960 = vmatpush3.msra.mxu1 %v8901_v26  ;;  %6986 = vmatpush3.msra.mxu0 %v8854_v57 }
0x18db   :  { %6961 = vmatprep.subr.mxu1 %v7694_v23  ;;  %6987 = vmatprep.subr.mxu0 %v7694_v23 }
0x18dc   :  { %6962 = vmatpush3.msra.mxu1 %v8910_v42  ;;  %6988 = vmatpush3.msra.mxu0 %v8868_v4 }
0x18dd   :  { %6964 = vmatmul.mubr.msk.f32.vlgmr.msra.gmra.mxu1 %vm329_vm3, %v9077_v16  ;;  %6989 = vmatprep.subr.mxu0 %v7694_v23 }
0x18de   :  { %6990 = vmatpush3.msra.mxu0 %v8877_v58  ;;  %6993 = vmatprep.mubr.msk.f32.mxu0 %vm7695_vm1, %v7694_v23 }
0x18df   :  { %6991 = vmatprep.subr.mxu0 %v7694_v23  ;;  %6996 = vmatprep.subr.mxu1 %v7694_v23 }
0x18e0   :  { %6992 = vmatpush3.msra.mxu0 %v8889_v50  ;;  %6997 = vmatpush3.msra.mxu1 %v8972_v41 }
0x18e1   :  { %6998 = vmatprep.subr.mxu1 %v7694_v23  ;;  %7004 = vmatprep.mubr.msk.f32.mxu1 %vm7695_vm1, %v7694_v23 }
0x18e2   :  { %6999 = vmatpush3.msra.mxu1 %v8977_v33  ;;  %7026 = vmatprep.subr.mxu0 %v7694_v23 }
0x18e3   :  { %7000 = vmatprep.subr.mxu1 %v7694_v23 }
0x18e4   :  { %7001 = vmatpush3.msra.mxu1 %v8984_v35 }
0x18e5   :  { %7002 = vmatprep.subr.mxu1 %v7694_v23 }
0x18e6   :  { %7003 = vmatpush3.msra.mxu1 %v8991_v48 }
0x18e7   :  { %7007 = vmatprep.subr.mxu1 %v7694_v23 }
0x191d   :  { %v3260_v15 = vpop.f32.mrf.mxu0 }
0x191e   :  { %v3261_v43 = vadd.f32 %v8952_v1, %v3260_v15 }
0x191f   :  { %v6935_v14 = vpop.f32.mrf.mxu0 }
0x198d   :  { %v3335_v32 = vpop.f32.mrf.mxu1 }
0x198e   :  { %v3339_v18 = vadd.f32 %v3335_v32, %v3261_v43 }
0x198f   :  { %v6946_v36 = vpop.f32.mrf.mxu1 }
0x1990   :  { %7508 = vtanh.f32 %v3339_v18  ;;  %v5882_v5 = vmul.f32 -1.442695, %v3339_v18 }
0x1991   :  { %v3512_v63 = vpop.f32.mrf.mxu0 }
0x1993   :  { %v6976_v22 = vpop.f32.mrf.mxu0 }
0x199d   :  { %v7509_v24 = vpop.eup %7508  ;;  %v3437_v25 = vpop.f32.mrf.mxu1 }
0x199e   :  { %v3438_v27 = vadd.f32 %v8958_v8, %v3437_v25  ;;  %3353 = vrot.lane.b32.xlu1 %v7509_v24, %s7697_s29 }
0x199f   :  { %v6965_v28 = vpop.f32.mrf.mxu1 }
0x19a0   :  { %v3516_v29 = vadd.f32 %v3512_v63, %v3438_v27 }
0x19a2   :  { %3348 = vrot.lane.b32.xlu1 %v8963_v59, %s7696_s25  ;;  %7510 = vtanh.f32 %v3516_v29  ;;  %v5885_v45 = vmul.f32 -1.442695, %v3516_v29 }
0x19a3   :  { %7512 = vpow2.f32 %v5882_v5 }
0x19a4   :  { %7514 = vpow2.f32 %v5885_v45 }
0x19a6   :  { %3525 = vrot.lane.b32.xlu1 %v8966_v2, %s7696_s25 }
0x19af   :  { %v7511_v34 = vpop.eup %7510 }
0x19b0   :  { %3530 = vrot.lane.b32.xlu0 %v7511_v34, %s7697_s29  ;;  %v7513_v44 = vpop.eup %7512 }
0x19b1   :  { %v3343_v47 = vadd.f32 1.0, %v7513_v44  ;;  %v7515_v3 = vpop.eup %7514 }
0x19b2   :  { %v3520_v14 = vadd.f32 1.0, %v7515_v3 }
0x19b3   :  { %7516 = vrcp.f32 %v3343_v47 }
0x19b4   :  { %7518 = vrcp.f32 %v3520_v14 }
0x19c0   :  { %v7517_v11 = vpop.eup %7516 }
0x19c1   :  { %v7519_v59 = vpop.eup %7518 }
0x1a10   :  { %v3354_v12 = vpop.permute.xlu1 %3353 }
0x1a11   :  { %v3356_v15 = vmul.f32 %v7517_v11, %v3354_v12 }
0x1a13   :  { %3358 = vrot.lane.b32.xlu0 %v3356_v15, %s7696_s25 }
0x1a14   :  { %v3349_v32 = vpop.permute.xlu1 %3348 }
0x1a15   :  { %v3351_v18 = vmul.f32 %v7517_v11, %v3349_v32 }
0x1a18   :  { %v3526_v22 = vpop.permute.xlu1 %3525 }
0x1a19   :  { %v3528_v25 = vmul.f32 %v7519_v59, %v3526_v22 }
0x1a22   :  { %v3531_v2 = vpop.permute.xlu0 %3530 }
0x1a23   :  { %v3533_v43 = vmul.f32 %v7519_v59, %v3531_v2 }
0x1a25   :  { %3535 = vrot.lane.b32.xlu0 %v3533_v43, %s7696_s25 }
0x1a85   :  { %v3359_v36 = vpop.permute.xlu0 %3358 }
0x1a86   :  { %v9111_v63 = vadd.f32 %v3359_v36, %v3351_v18 }
0x1a88   :  { %7520 = vtanh.f32 %v9111_v63 }
0x1a95   :  { %v7521_v24 = vpop.eup %7520 }
0x1a96   :  { %3364 = vrot.lane.b32.xlu1 %v7521_v24, %s7697_s29 }
0x1a97   :  { %v3536_v27 = vpop.permute.xlu0 %3535 }
0x1a98   :  { %v9115_v28 = vadd.f32 %v3536_v27, %v3528_v25 }
0x1a9a   :  { %2936 = vrot.lane.b32.xlu1 %v8646_v10, %s7697_s29  ;;  %7522 = vtanh.f32 %v9115_v28 }
0x1a9e   :  { %2951 = vrot.lane.b32.xlu1 %v8285_v19, %s7697_s29 }
0x1aa7   :  { %v7523_v29 = vpop.eup %7522 }
0x1aa8   :  { %3541 = vrot.lane.b32.xlu0 %v7523_v29, %s7697_s29 }
0x1b08   :  { %v3365_v34 = vpop.permute.xlu1 %3364 }
0x1b09   :  { %v3367_v5 = vmul.f32 %v7517_v11, %v3365_v34 }
0x1b0b   :  { %3619 = vrot.lane.b32.xlu0 %v3367_v5, %s7696_s25 }
0x1b0c   :  { %v2937_v44 = vpop.permute.xlu1 %2936 }
0x1b0d   :  { %v9126_v45 = vsel %vm291_vm2, %v8289_v20, %v2937_v44 }
0x1b0e   :  { %6994 = vmatmul.mubr.msk.f32.vlgmr.msra.gmra.mxu0 %vm329_vm3, %v9126_v45 }
0x1b0f   :  { %7027 = vmatpush3.msra.mxu0 %v9007_v17  ;;  %7034 = vmatprep.mubr.msk.f32.mxu0 %vm7695_vm1, %v7694_v23 }
0x1b10   :  { %7028 = vmatprep.subr.mxu0 %v7694_v23  ;;  %v2952_v47 = vpop.permute.xlu1 %2951 }
0x1b11   :  { %7029 = vmatpush3.msra.mxu0 %v9020_v40  ;;  %v9166_v3 = vsel %vm291_vm2, %v8650_v51, %v2952_v47 }
0x1b12   :  { %7030 = vmatprep.subr.mxu0 %v7694_v23 }
0x1b13   :  { %7031 = vmatpush3.msra.mxu0 %v9029_v21 }
0x1b14   :  { %7032 = vmatprep.subr.mxu0 %v7694_v23 }
0x1b15   :  { %7033 = vmatpush3.msra.mxu0 %v9038_v56 }
0x1b16   :  { %7037 = vmatprep.subr.mxu0 %v7694_v23 }
0x1b1a   :  { %v3542_v19 = vpop.permute.xlu0 %3541 }
0x1b1b   :  { %v9140_v20 = vmul.f32 %v7519_v59, %v3542_v19 }
0x1b1d   :  { %3792 = vrot.lane.b32.xlu0 %v9140_v20, %s7696_s25 }
0x1b7d   :  { %v9144_v10 = vpop.permute.xlu0 %3619 }
0x1b7e   :  { %7005 = vmatmul.mubr.msk.f32.vlgmr.msra.gmra.mxu1 %vm291_vm2, %v9144_v10 }
0x1b7f   :  { %7008 = vmatpush3.msra.mxu1 %v8815_v54  ;;  %7023 = vmatprep.mubr.msk.f32.mxu1 %vm7695_vm1, %v7694_v23 }
0x1b80   :  { %7009 = vmatprep.subr.mxu1 %v7694_v23 }
0x1b81   :  { %7010 = vmatpush3.msra.mxu1 %v8820_v55 }
0x1b82   :  { %7011 = vmatprep.subr.mxu1 %v7694_v23 }
0x1b83   :  { %7012 = vmatpush3.msra.mxu1 %v8834_v61 }
0x1b84   :  { %7013 = vmatprep.subr.mxu1 %v7694_v23 }
0x1b85   :  { %7014 = vmatpush3.msra.mxu1 %v8848_v62 }
0x1b86   :  { %7015 = vmatprep.subr.mxu1 %v7694_v23 }
0x1b87   :  { %7016 = vmatpush3.msra.mxu1 %v8862_v52 }
0x1b88   :  { %7017 = vmatprep.subr.mxu1 %v7694_v23 }
0x1b89   :  { %7018 = vmatpush3.msra.mxu1 %v8894_v6 }
0x1b8a   :  { %7019 = vmatprep.subr.mxu1 %v7694_v23 }
0x1b8b   :  { %7020 = vmatpush3.msra.mxu1 %v8901_v26 }
0x1b8c   :  { %7021 = vmatprep.subr.mxu1 %v7694_v23 }
0x1b8d   :  { %7022 = vmatpush3.msra.mxu1 %v8910_v42 }
0x1b8e   :  { %7024 = vmatmul.mubr.msk.f32.vlgmr.msra.gmra.mxu1 %vm329_vm3, %v9166_v3  ;;  %7056 = vmatprep.subr.mxu1 %v7694_v23 }
0x1b8f   :  { %7057 = vmatpush3.msra.mxu1 %v8972_v41  ;;  %7064 = vmatprep.mubr.msk.f32.mxu1 %vm7695_vm1, %v7694_v23  ;;  %v3793_v11 = vpop.permute.xlu0 %3792 }
0x1b90   :  { %7058 = vmatprep.subr.mxu1 %v7694_v23  ;;  %7035 = vmatmul.mubr.msk.f32.vlgmr.msra.gmra.mxu0 %vm291_vm2, %v3793_v11 }
0x1b91   :  { %7059 = vmatpush3.msra.mxu1 %v8977_v33  ;;  %7038 = vmatpush3.msra.mxu0 %v8804_v37 }
0x1b92   :  { %7053 = vmatprep.mubr.msk.f32.mxu0 %vm7695_vm1, %v7694_v23  ;;  %7039 = vmatprep.subr.mxu0 %v7694_v23 }
0x1b93   :  { %7060 = vmatprep.subr.mxu1 %v7694_v23  ;;  %7040 = vmatpush3.msra.mxu0 %v8809_v53 }
0x1b94   :  { %7061 = vmatpush3.msra.mxu1 %v8984_v35  ;;  %7041 = vmatprep.subr.mxu0 %v7694_v23 }
0x1b95   :  { %7062 = vmatprep.subr.mxu1 %v7694_v23  ;;  %7042 = vmatpush3.msra.mxu0 %v8826_v60 }
0x1b96   :  { %7063 = vmatpush3.msra.mxu1 %v8991_v48  ;;  %7043 = vmatprep.subr.mxu0 %v7694_v23 }
0x1b97   :  { %7067 = vmatprep.subr.mxu1 %v7694_v23  ;;  %7044 = vmatpush3.msra.mxu0 %v8840_v49 }
0x1b98   :  { %7045 = vmatprep.subr.mxu0 %v7694_v23 }
0x1b99   :  { %7046 = vmatpush3.msra.mxu0 %v8854_v57 }
0x1b9a   :  { %7047 = vmatprep.subr.mxu0 %v7694_v23 }
0x1b9b   :  { %7048 = vmatpush3.msra.mxu0 %v8868_v4 }
0x1b9c   :  { %7049 = vmatprep.subr.mxu0 %v7694_v23 }
0x1b9d   :  { %7050 = vmatpush3.msra.mxu0 %v8877_v58 }
0x1b9e   :  { %7051 = vmatprep.subr.mxu0 %v7694_v23 }
0x1b9f   :  { %7052 = vmatpush3.msra.mxu0 %v8889_v50 }
0x1ba0   :  { %7086 = vmatprep.subr.mxu0 %v7694_v23 }
0x1bce   :  { %v3614_v51 = vpop.f32.mrf.mxu0 }
0x1bcf   :  { %v3615_v15 = vadd.f32 %v8952_v1, %v3614_v51 }
0x1bd0   :  { %v6995_v12 = vpop.f32.mrf.mxu0 }
0x1c3e   :  { %v3689_v14 = vpop.f32.mrf.mxu1 }
0x1c3f   :  { %v3693_v59 = vadd.f32 %v3689_v14, %v3615_v15 }
0x1c40   :  { %v7006_v2 = vpop.f32.mrf.mxu1 }
0x1c41   :  { %7524 = vtanh.f32 %v3693_v59  ;;  %v5888_v29 = vmul.f32 -1.442695, %v3693_v59 }
0x1c4e   :  { %v7525_v43 = vpop.eup %7524  ;;  %v3787_v32 = vpop.f32.mrf.mxu1 }
0x1c4f   :  { %v3788_v18 = vadd.f32 %v8958_v8, %v3787_v32  ;;  %3703 = vrot.lane.b32.xlu1 %v7525_v43, %s7697_s29 }
0x1c50   :  { %v7025_v36 = vpop.f32.mrf.mxu1  ;;  %v3862_v22 = vpop.f32.mrf.mxu0 }
0x1c51   :  { %v3866_v24 = vadd.f32 %v3862_v22, %v3788_v18 }
0x1c52   :  { %v7036_v25 = vpop.f32.mrf.mxu0 }
0x1c53   :  { %7526 = vtanh.f32 %v3866_v24  ;;  %v5891_v5 = vmul.f32 -1.442695, %v3866_v24 }
0x1c54   :  { %7528 = vpow2.f32 %v5888_v29 }
0x1c55   :  { %7530 = vpow2.f32 %v5891_v5 }
0x1c60   :  { %v7527_v27 = vpop.eup %7526 }
0x1c61   :  { %3876 = vrot.lane.b32.xlu0 %v7527_v27, %s7697_s29  ;;  %v7529_v34 = vpop.eup %7528 }
0x1c62   :  { %v3697_v44 = vadd.f32 1.0, %v7529_v34  ;;  %v7531_v19 = vpop.eup %7530 }
0x1c63   :  { %v3870_v12 = vadd.f32 1.0, %v7531_v19 }
0x1c64   :  { %7532 = vrcp.f32 %v3697_v44 }
0x1c65   :  { %7534 = vrcp.f32 %v3870_v12 }
0x1c71   :  { %v7533_v47 = vpop.eup %7532 }
0x1c72   :  { %v7535_v15 = vpop.eup %7534  ;;  %v3701_v59 = vmul.f32 %v7533_v47, %v9111_v63 }
0x1c73   :  { %v3874_v36 = vmul.f32 %v7535_v15, %v9115_v28 }
0x1cc1   :  { %v3704_v11 = vpop.permute.xlu1 %3703 }
0x1cc2   :  { %v3706_v51 = vmul.f32 %v7533_v47, %v3704_v11 }
0x1cc4   :  { %3708 = vrot.lane.b32.xlu1 %v3706_v51, %s7696_s25 }
0x1cd3   :  { %v3877_v14 = vpop.permute.xlu0 %3876 }
0x1cd4   :  { %v3879_v2 = vmul.f32 %v7535_v15, %v3877_v14 }
0x1cd6   :  { %3881 = vrot.lane.b32.xlu0 %v3879_v2, %s7696_s25 }
0x1d36   :  { %v3709_v43 = vpop.permute.xlu1 %3708 }
0x1d37   :  { %v9208_v32 = vadd.f32 %v3709_v43, %v3701_v59 }
0x1d39   :  { %7536 = vtanh.f32 %v9208_v32 }
0x1d46   :  { %v7537_v18 = vpop.eup %7536 }
0x1d47   :  { %3714 = vrot.lane.b32.xlu1 %v7537_v18, %s7697_s29 }
0x1d48   :  { %v3882_v22 = vpop.permute.xlu0 %3881 }
0x1d49   :  { %v9213_v24 = vadd.f32 %v3882_v22, %v3874_v36 }
0x1d4b   :  { %2941 = vrot.lane.b32.xlu1 %v8505_v0, %s7697_s29  ;;  %7538 = vtanh.f32 %v9213_v24 }
0x1d4f   :  { %2946 = vrot.lane.b32.xlu1 %v8374_v30, %s7697_s29 }
0x1d58   :  { %v7539_v63 = vpop.eup %7538 }
0x1d59   :  { %3887 = vrot.lane.b32.xlu0 %v7539_v63, %s7697_s29 }
0x1db9   :  { %v3715_v25 = vpop.permute.xlu1 %3714 }
0x1dba   :  { %v3717_v27 = vmul.f32 %v7533_v47, %v3715_v25 }
0x1dbc   :  { %3965 = vrot.lane.b32.xlu0 %v3717_v27, %s7696_s25 }
0x1dbd   :  { %v2942_v29 = vpop.permute.xlu1 %2941 }
0x1dbe   :  { %v9224_v28 = vsel %vm291_vm2, %v8378_v31, %v2942_v29 }
0x1dbf   :  { %7054 = vmatmul.mubr.msk.f32.vlgmr.msra.gmra.mxu0 %vm329_vm3, %v9224_v28 }
0x1dc0   :  { %7087 = vmatpush3.msra.mxu0 %v9007_v17  ;;  %7094 = vmatprep.mubr.msk.f32.mxu0 %vm7695_vm1, %v7694_v23 }
0x1dc1   :  { %7088 = vmatprep.subr.mxu0 %v7694_v23  ;;  %v2947_v34 = vpop.permute.xlu1 %2946 }
0x1dc2   :  { %7089 = vmatpush3.msra.mxu0 %v9020_v40  ;;  %v2949_v5 = vsel %vm291_vm2, %v8509_v39, %v2947_v34 }
0x1dc3   :  { %7090 = vmatprep.subr.mxu0 %v7694_v23 }
0x1dc4   :  { %7091 = vmatpush3.msra.mxu0 %v9029_v21 }
0x1dc5   :  { %7092 = vmatprep.subr.mxu0 %v7694_v23 }
0x1dc6   :  { %7093 = vmatpush3.msra.mxu0 %v9038_v56 }
0x1dc7   :  { %7097 = vmatprep.subr.mxu0 %v7694_v23 }
0x1dcb   :  { %v3888_v30 = vpop.permute.xlu0 %3887 }
0x1dcc   :  { %v9238_v31 = vmul.f32 %v7535_v15, %v3888_v30 }
0x1dce   :  { %4138 = vrot.lane.b32.xlu0 %v9238_v31, %s7696_s25 }
0x1e2e   :  { %v9242_v0 = vpop.permute.xlu0 %3965 }
0x1e2f   :  { %7065 = vmatmul.mubr.msk.f32.vlgmr.msra.gmra.mxu1 %vm291_vm2, %v9242_v0 }
0x1e30   :  { %7068 = vmatpush3.msra.mxu1 %v8815_v54  ;;  %7083 = vmatprep.mubr.msk.f32.mxu1 %vm7695_vm1, %v7694_v23 }
0x1e31   :  { %7069 = vmatprep.subr.mxu1 %v7694_v23 }
0x1e32   :  { %7070 = vmatpush3.msra.mxu1 %v8820_v55 }
0x1e33   :  { %7071 = vmatprep.subr.mxu1 %v7694_v23 }
0x1e34   :  { %7072 = vmatpush3.msra.mxu1 %v8834_v61 }
0x1e35   :  { %7073 = vmatprep.subr.mxu1 %v7694_v23 }
0x1e36   :  { %7074 = vmatpush3.msra.mxu1 %v8848_v62 }
0x1e37   :  { %7075 = vmatprep.subr.mxu1 %v7694_v23 }
0x1e38   :  { %7076 = vmatpush3.msra.mxu1 %v8862_v52 }
0x1e39   :  { %7077 = vmatprep.subr.mxu1 %v7694_v23 }
0x1e3a   :  { %7078 = vmatpush3.msra.mxu1 %v8894_v6 }
0x1e3b   :  { %7079 = vmatprep.subr.mxu1 %v7694_v23 }
0x1e3c   :  { %7080 = vmatpush3.msra.mxu1 %v8901_v26 }
0x1e3d   :  { %7081 = vmatprep.subr.mxu1 %v7694_v23 }
0x1e3e   :  { %7082 = vmatpush3.msra.mxu1 %v8910_v42 }
0x1e3f   :  { %7084 = vmatmul.mubr.msk.f32.vlgmr.msra.gmra.mxu1 %vm329_vm3, %v2949_v5  ;;  %7116 = vmatprep.subr.mxu1 %v7694_v23 }
0x1e40   :  { %7117 = vmatpush3.msra.mxu1 %v8972_v41  ;;  %7124 = vmatprep.mubr.msk.f32.mxu1 %vm7695_vm1, %v7694_v23  ;;  %v4139_v44 = vpop.permute.xlu0 %4138 }
0x1e41   :  { %7118 = vmatprep.subr.mxu1 %v7694_v23  ;;  %7095 = vmatmul.mubr.msk.f32.vlgmr.msra.gmra.mxu0 %vm291_vm2, %v4139_v44 }
0x1e42   :  { %7119 = vmatpush3.msra.mxu1 %v8977_v33  ;;  %7098 = vmatpush3.msra.mxu0 %v8804_v37 }
0x1e43   :  { %7113 = vmatprep.mubr.msk.f32.mxu0 %vm7695_vm1, %v7694_v23  ;;  %7099 = vmatprep.subr.mxu0 %v7694_v23 }
0x1e44   :  { %7120 = vmatprep.subr.mxu1 %v7694_v23  ;;  %7100 = vmatpush3.msra.mxu0 %v8809_v53 }
0x1e45   :  { %7121 = vmatpush3.msra.mxu1 %v8984_v35  ;;  %7101 = vmatprep.subr.mxu0 %v7694_v23 }
0x1e46   :  { %7122 = vmatprep.subr.mxu1 %v7694_v23  ;;  %7102 = vmatpush3.msra.mxu0 %v8826_v60 }
0x1e47   :  { %7123 = vmatpush3.msra.mxu1 %v8991_v48  ;;  %7103 = vmatprep.subr.mxu0 %v7694_v23 }
0x1e48   :  { %7127 = vmatprep.subr.mxu1 %v7694_v23  ;;  %7104 = vmatpush3.msra.mxu0 %v8840_v49 }
0x1e49   :  { %7105 = vmatprep.subr.mxu0 %v7694_v23 }
0x1e4a   :  { %7106 = vmatpush3.msra.mxu0 %v8854_v57 }
0x1e4b   :  { %7107 = vmatprep.subr.mxu0 %v7694_v23 }
0x1e4c   :  { %7108 = vmatpush3.msra.mxu0 %v8868_v4 }
0x1e4d   :  { %7109 = vmatprep.subr.mxu0 %v7694_v23 }
0x1e4e   :  { %7110 = vmatpush3.msra.mxu0 %v8877_v58 }
0x1e4f   :  { %7111 = vmatprep.subr.mxu0 %v7694_v23 }
0x1e50   :  { %7112 = vmatpush3.msra.mxu0 %v8889_v50 }
0x1e51   :  { %7114 = vmatmul.mubr.msk.f32.vlgmr.msra.gmra.mxu0 %vm329_vm3, %v2949_v5  ;;  %7146 = vmatprep.subr.mxu0 %v7694_v23 }
0x1e52   :  { %7147 = vmatpush3.msra.mxu0 %v9007_v17  ;;  %7154 = vmatprep.mubr.msk.f32.mxu0 %vm7695_vm1, %v7694_v23 }
0x1e53   :  { %7148 = vmatprep.subr.mxu0 %v7694_v23 }
0x1e54   :  { %7149 = vmatpush3.msra.mxu0 %v9020_v40 }
0x1e55   :  { %7150 = vmatprep.subr.mxu0 %v7694_v23 }
0x1e56   :  { %7151 = vmatpush3.msra.mxu0 %v9029_v21 }
0x1e57   :  { %7152 = vmatprep.subr.mxu0 %v7694_v23 }
0x1e58   :  { %7153 = vmatpush3.msra.mxu0 %v9038_v56 }
0x1e59   :  { %7157 = vmatprep.subr.mxu0 %v7694_v23 }
0x1e7f   :  { %v3960_v39 = vpop.f32.mrf.mxu0 }
0x1e80   :  { %v3961_v53 = vadd.f32 %v8952_v1, %v3960_v39 }
0x1e81   :  { %v7055_v37 = vpop.f32.mrf.mxu0 }
0x1eef   :  { %v4035_v60 = vpop.f32.mrf.mxu1 }
0x1ef0   :  { %v4039_v49 = vadd.f32 %v4035_v60, %v3961_v53 }
0x1ef1   :  { %v7066_v57 = vpop.f32.mrf.mxu1 }
0x1ef2   :  { %7540 = vtanh.f32 %v4039_v49  ;;  %v5894_v2 = vmul.f32 -1.442695, %v4039_v49 }
0x1eff   :  { %v7541_v4 = vpop.eup %7540  ;;  %v4133_v58 = vpop.f32.mrf.mxu1 }
0x1f00   :  { %v4134_v50 = vadd.f32 %v8958_v8, %v4133_v58  ;;  %4049 = vrot.lane.b32.xlu1 %v7541_v4, %s7697_s29 }
0x1f01   :  { %v7085_v19 = vpop.f32.mrf.mxu1  ;;  %v4208_v47 = vpop.f32.mrf.mxu0 }
0x1f02   :  { %v4212_v11 = vadd.f32 %v4208_v47, %v4134_v50 }
0x1f03   :  { %v7096_v51 = vpop.f32.mrf.mxu0 }
0x1f04   :  { %7542 = vtanh.f32 %v4212_v11  ;;  %v5897_v43 = vmul.f32 -1.442695, %v4212_v11 }
0x1f05   :  { %7544 = vpow2.f32 %v5894_v2 }
0x1f06   :  { %7546 = vpow2.f32 %v5897_v43 }
0x1f11   :  { %v7543_v12 = vpop.eup %7542  ;;  %v9310_v15 = vpop.f32.mrf.mxu0 }
0x1f12   :  { %4222 = vrot.lane.b32.xlu0 %v7543_v12, %s7697_s29  ;;  %v7545_v59 = vpop.eup %7544 }
0x1f13   :  { %v7115_v14 = vpop.f32.mrf.mxu0  ;;  %v4043_v18 = vadd.f32 1.0, %v7545_v59  ;;  %v7547_v36 = vpop.eup %7546 }
0x1f14   :  { %v4216_v27 = vadd.f32 1.0, %v7547_v36 }
0x1f15   :  { %7548 = vrcp.f32 %v4043_v18 }
0x1f16   :  { %7550 = vrcp.f32 %v4216_v27 }
0x1f22   :  { %v7549_v22 = vpop.eup %7548 }
0x1f23   :  { %v7551_v29 = vpop.eup %7550  ;;  %v4047_v5 = vmul.f32 %v7549_v22, %v9208_v32 }
0x1f24   :  { %v4220_v53 = vmul.f32 %v7551_v29, %v9213_v24 }
0x1f72   :  { %v4050_v63 = vpop.permute.xlu1 %4049 }
0x1f73   :  { %v4052_v25 = vmul.f32 %v7549_v22, %v4050_v63 }
0x1f75   :  { %4054 = vrot.lane.b32.xlu1 %v4052_v25, %s7696_s25 }
0x1f84   :  { %v4223_v30 = vpop.permute.xlu0 %4222 }
0x1f85   :  { %v4225_v34 = vmul.f32 %v7551_v29, %v4223_v30 }
0x1f87   :  { %4227 = vrot.lane.b32.xlu0 %v4225_v34, %s7696_s25 }
0x1fe7   :  { %v4055_v44 = vpop.permute.xlu1 %4054 }
0x1fe8   :  { %v9316_v39 = vadd.f32 %v4055_v44, %v4047_v5 }
0x1fea   :  { %7552 = vtanh.f32 %v9316_v39 }
0x1ff7   :  { %v7553_v37 = vpop.eup %7552 }
0x1ff8   :  { %4060 = vrot.lane.b32.xlu1 %v7553_v37, %s7697_s29 }
0x1ff9   :  { %v4228_v60 = vpop.permute.xlu0 %4227 }
0x1ffa   :  { %v9321_v49 = vadd.f32 %v4228_v60, %v4220_v53 }
0x1ffc   :  { %7554 = vtanh.f32 %v9321_v49 }
0x2009   :  { %v7555_v57 = vpop.eup %7554 }
0x200a   :  { %4233 = vrot.lane.b32.xlu0 %v7555_v57, %s7697_s29 }
0x206a   :  { %v4061_v4 = vpop.permute.xlu1 %4060 }
0x206b   :  { %v4063_v32 = vmul.f32 %v7549_v22, %v4061_v4 }
0x206d   :  { %4308 = vrot.lane.b32.xlu1 %v4063_v32, %s7696_s25 }
0x207c   :  { %v4234_v58 = vpop.permute.xlu0 %4233 }
0x207d   :  { %v9326_v50 = vmul.f32 %v7551_v29, %v4234_v58  ;;  %v9475_v58 = vld [vmem:[%s9830_s7 + $0x70] sm:$0xff] }
0x207f   :  { %4478 = vrot.lane.b32.xlu0 %v9326_v50, %s7696_s25 }
0x20df   :  { %v9330_v19 = vpop.permute.xlu1 %4308 }
0x20e0   :  { %7125 = vmatmul.mubr.msk.f32.vlgmr.msra.gmra.mxu1 %vm291_vm2, %v9330_v19 }
0x20e1   :  { %7128 = vmatpush3.msra.mxu1 %v8815_v54  ;;  %7143 = vmatprep.mubr.msk.f32.mxu1 %vm7695_vm1, %v7694_v23 }
0x20e2   :  { %7129 = vmatprep.subr.mxu1 %v7694_v23 }
0x20e3   :  { %7130 = vmatpush3.msra.mxu1 %v8820_v55  ;;  %v9363_v55 = vld [vmem:[%s9830_s7 + $0x38] sm:$0xff] }
0x20e4   :  { %7131 = vmatprep.subr.mxu1 %v7694_v23 }
0x20e5   :  { %7132 = vmatpush3.msra.mxu1 %v8834_v61  ;;  %v9373_v61 = vld [vmem:[%s9830_s7 + $0x30] sm:$0xff] }
0x20e6   :  { %7133 = vmatprep.subr.mxu1 %v7694_v23 }
0x20e7   :  { %7134 = vmatpush3.msra.mxu1 %v8848_v62  ;;  %v9382_v62 = vld [vmem:[%s9830_s7 + $0x28] sm:$0xff] }
0x20e8   :  { %7135 = vmatprep.subr.mxu1 %v7694_v23 }
0x20e9   :  { %7136 = vmatpush3.msra.mxu1 %v8862_v52  ;;  %v9391_v52 = vld [vmem:[%s9830_s7 + $0x20] sm:$0xff] }
0x20ea   :  { %7137 = vmatprep.subr.mxu1 %v7694_v23 }
0x20eb   :  { %7138 = vmatpush3.msra.mxu1 %v8894_v6  ;;  %v9398_v6 = vld [vmem:[%s9830_s7 + $0x18] sm:$0xff] }
0x20ec   :  { %7139 = vmatprep.subr.mxu1 %v7694_v23 }
0x20ed   :  { %7140 = vmatpush3.msra.mxu1 %v8901_v26  ;;  %v9405_v26 = vld [vmem:[%s9830_s7 + $0x10] sm:$0xff] }
0x20ee   :  { %7141 = vmatprep.subr.mxu1 %v7694_v23 }
0x20ef   :  { %7142 = vmatpush3.msra.mxu1 %v8910_v42  ;;  %v9412_v42 = vld [vmem:[%s9830_s7 + $0x8] sm:$0xff] }
0x20f0   :  { %7144 = vmatmul.mubr.msk.f32.vlgmr.msra.gmra.mxu1 %vm329_vm3, %v9224_v28  ;;  %7176 = vmatprep.subr.mxu1 %v7694_v23 }
0x20f1   :  { %7177 = vmatpush3.msra.mxu1 %v8972_v41  ;;  %7184 = vmatprep.mubr.msk.f32.mxu1 %vm7695_vm1, %v7694_v23  ;;  %v4479_v54 = vpop.permute.xlu0 %4478  ;;  %v9419_v41 = vld [vmem:[%s9830_s7] sm:$0xff] }
0x20f2   :  { %7178 = vmatprep.subr.mxu1 %v7694_v23  ;;  %7155 = vmatmul.mubr.msk.f32.vlgmr.msra.gmra.mxu0 %vm291_vm2, %v4479_v54  ;;  %v9482_v54 = vld [vmem:[%s9830_s7 + $0x68] sm:$0xff] }
0x20f3   :  { %7179 = vmatpush3.msra.mxu1 %v8977_v33  ;;  %7158 = vmatpush3.msra.mxu0 %v9363_v55  ;;  %v4304_v33 = vadd.f32 %v8952_v1, %v9310_v15 }
0x20f4   :  { %7173 = vmatprep.mubr.msk.f32.mxu0 %vm7695_vm1, %v7694_v23  ;;  %7159 = vmatprep.subr.mxu0 %v7694_v23 }
0x20f5   :  { %7180 = vmatprep.subr.mxu1 %v7694_v23  ;;  %7160 = vmatpush3.msra.mxu0 %v9373_v61 }
0x20f6   :  { %7181 = vmatpush3.msra.mxu1 %v8984_v35  ;;  %7161 = vmatprep.subr.mxu0 %v7694_v23 }
0x20f7   :  { %7182 = vmatprep.subr.mxu1 %v7694_v23  ;;  %7162 = vmatpush3.msra.mxu0 %v9382_v62 }
0x20f8   :  { %7183 = vmatpush3.msra.mxu1 %v8991_v48  ;;  %7163 = vmatprep.subr.mxu0 %v7694_v23 }
0x20f9   :  { %7187 = vmatprep.subr.mxu1 %v7694_v23  ;;  %7164 = vmatpush3.msra.mxu0 %v9391_v52 }
0x20fa   :  { %7165 = vmatprep.subr.mxu0 %v7694_v23 }
0x20fb   :  { %7166 = vmatpush3.msra.mxu0 %v9398_v6 }
0x20fc   :  { %7167 = vmatprep.subr.mxu0 %v7694_v23 }
0x20fd   :  { %7168 = vmatpush3.msra.mxu0 %v9405_v26 }
0x20fe   :  { %7169 = vmatprep.subr.mxu0 %v7694_v23 }
0x20ff   :  { %7170 = vmatpush3.msra.mxu0 %v9412_v42 }
0x2100   :  { %7171 = vmatprep.subr.mxu0 %v7694_v23 }
0x2101   :  { %7172 = vmatpush3.msra.mxu0 %v9419_v41 }
0x2102   :  { %7174 = vmatmul.mubr.msk.f32.vlgmr.msra.gmra.mxu0 %vm329_vm3, %v9166_v3  ;;  %7206 = vmatprep.subr.mxu0 %v7694_v23 }
0x2103   :  { %7207 = vmatpush3.msra.mxu0 %v9007_v17  ;;  %7214 = vmatprep.mubr.msk.f32.mxu0 %vm7695_vm1, %v7694_v23 }
0x2104   :  { %7208 = vmatprep.subr.mxu0 %v7694_v23 }
0x2105   :  { %7209 = vmatpush3.msra.mxu0 %v9020_v40 }
0x2106   :  { %7210 = vmatprep.subr.mxu0 %v7694_v23 }
0x2107   :  { %7211 = vmatpush3.msra.mxu0 %v9029_v21 }
0x2108   :  { %7212 = vmatprep.subr.mxu0 %v7694_v23 }
0x2109   :  { %7213 = vmatpush3.msra.mxu0 %v9038_v56 }
0x210a   :  { %7217 = vmatprep.subr.mxu0 %v7694_v23 }
0x21a0   :  { %v4378_v35 = vpop.f32.mrf.mxu1 }
0x21a1   :  { %v4382_v48 = vadd.f32 %v4378_v35, %v4304_v33  ;;  %v9489_v33 = vld [vmem:[%s9830_s7 + $0x60] sm:$0xff]  ;;  %v9496_v35 = vld [vmem:[%s9830_s7 + $0x58] sm:$0xff] }
0x21a2   :  { %v7126_v17 = vpop.f32.mrf.mxu1 }
0x21a3   :  { %7556 = vtanh.f32 %v4382_v48  ;;  %v5900_v12 = vmul.f32 -1.442695, %v4382_v48  ;;  %v9503_v48 = vld [vmem:[%s9830_s7 + $0x50] sm:$0xff]  ;;  %v9510_v17 = vld [vmem:[%s9830_s7 + $0x48] sm:$0xff] }
0x21b0   :  { %v7557_v3 = vpop.eup %7556  ;;  %v4473_v24 = vpop.f32.mrf.mxu1 }
0x21b1   :  { %v4474_v40 = vadd.f32 %v8958_v8, %v4473_v24  ;;  %4392 = vrot.lane.b32.xlu1 %v7557_v3, %s7697_s29  ;;  %v9517_v3 = vld [vmem:[%s9830_s7 + $0x40] sm:$0xff]  ;;  %v9526_v24 = vld [vmem:[%s9831_s8 + $0x18] sm:$0xff] }
0x21b2   :  { %v7145_v21 = vpop.f32.mrf.mxu1  ;;  %v4548_v28 = vpop.f32.mrf.mxu0 }
0x21b3   :  { %v4552_v47 = vadd.f32 %v4548_v28, %v4474_v40  ;;  %v9548_v21 = vld [vmem:[%s9831_s8 + $0x8] sm:$0xff]  ;;  %v9557_v28 = vld [vmem:[%s9831_s8] sm:$0xff] }
0x21b4   :  { %v7156_v11 = vpop.f32.mrf.mxu0 }
0x21b5   :  { %7558 = vtanh.f32 %v4552_v47  ;;  %v5903_v14 = vmul.f32 -1.442695, %v4552_v47  ;;  %v9577_v47 = vld [vmem:[%s9831_s8 + $0x38] sm:$0xff]  ;;  %v9586_v11 = vld [vmem:[%s9831_s8 + $0x30] sm:$0xff] }
0x21b6   :  { %7560 = vpow2.f32 %v5900_v12 }
0x21b7   :  { %7562 = vpow2.f32 %v5903_v14 }
0x21c2   :  { %v7559_v56 = vpop.eup %7558  ;;  %v9439_v51 = vpop.f32.mrf.mxu0 }
0x21c3   :  { %4562 = vrot.lane.b32.xlu0 %v7559_v56, %s7697_s29  ;;  %v7561_v15 = vpop.eup %7560  ;;  %v9600_v56 = vld [vmem:[%s9831_s8 + $0x20] sm:$0xff] }
0x21c4   :  { %v7175_v1 = vpop.f32.mrf.mxu0  ;;  %v4386_v2 = vadd.f32 1.0, %v7561_v15  ;;  %v7563_v8 = vpop.eup %7562 }
0x21c5   :  { %v4556_v36 = vadd.f32 1.0, %v7563_v8  ;;  %v9607_v1 = vld [vmem:[%s9832_s9] ss:$0 sm:$0xff] }
0x21c6   :  { %7564 = vrcp.f32 %v4386_v2  ;;  %v4644_v12 = vadd.f32 %v9607_v1, %v9439_v51 }
0x21c7   :  { %7566 = vrcp.f32 %v4556_v36 }
0x21d3   :  { %v7565_v59 = vpop.eup %7564 }
0x21d4   :  { %v7567_v22 = vpop.eup %7566  ;;  %v4390_v27 = vmul.f32 %v7565_v59, %v9316_v39 }
0x21d5   :  { %v4560_v5 = vmul.f32 %v7567_v22, %v9321_v49  ;;  %v9466_v49 = vld [vmem:[%s9830_s7 + $0x78] sm:$0xff] }
0x2223   :  { %v4393_v43 = vpop.permute.xlu1 %4392 }
0x2224   :  { %v4395_v18 = vmul.f32 %v7565_v59, %v4393_v43  ;;  %v9614_v43 = vld [vmem:[%s9832_s9 + $0x1] ss:$0 sm:$0xff] }
0x2226   :  { %4397 = vrot.lane.b32.xlu1 %v4395_v18, %s7696_s25 }
0x2235   :  { %v4563_v63 = vpop.permute.xlu0 %4562 }
0x2236   :  { %v4565_v25 = vmul.f32 %v7567_v22, %v4563_v63 }
0x2238   :  { %4567 = vrot.lane.b32.xlu0 %v4565_v25, %s7696_s25 }
0x2298   :  { %v4398_v29 = vpop.permute.xlu1 %4397 }
0x2299   :  { %v9445_v30 = vadd.f32 %v4398_v29, %v4390_v27 }
0x229b   :  { %7568 = vtanh.f32 %v9445_v30 }
0x22a8   :  { %v7569_v34 = vpop.eup %7568 }
0x22a9   :  { %4403 = vrot.lane.b32.xlu1 %v7569_v34, %s7697_s29 }
0x22aa   :  { %v4568_v44 = vpop.permute.xlu0 %4567 }
0x22ab   :  { %v9450_v37 = vadd.f32 %v4568_v44, %v4560_v5 }
0x22ad   :  { %7570 = vtanh.f32 %v9450_v37 }
0x22ba   :  { %v7571_v53 = vpop.eup %7570 }
0x22bb   :  { %4573 = vrot.lane.b32.xlu0 %v7571_v53, %s7697_s29 }
0x231b   :  { %v4404_v60 = vpop.permute.xlu1 %4403 }
0x231c   :  { %v4406_v39 = vmul.f32 %v7565_v59, %v4404_v60 }
0x231e   :  { %4648 = vrot.lane.b32.xlu1 %v4406_v39, %s7696_s25 }
0x232d   :  { %v4574_v57 = vpop.permute.xlu0 %4573 }
0x232e   :  { %v9455_v4 = vmul.f32 %v7567_v22, %v4574_v57 }
0x2330   :  { %4818 = vrot.lane.b32.xlu0 %v9455_v4, %s7696_s25 }
0x2390   :  { %v9459_v32 = vpop.permute.xlu1 %4648 }
0x2391   :  { %7185 = vmatmul.mubr.msk.f32.vlgmr.msra.gmra.mxu1 %vm291_vm2, %v9459_v32 }
0x2392   :  { %7188 = vmatpush3.msra.mxu1 %v9466_v49  ;;  %7203 = vmatprep.mubr.msk.f32.mxu1 %vm7695_vm1, %v7694_v23 }
0x2393   :  { %7189 = vmatprep.subr.mxu1 %v7694_v23 }
0x2394   :  { %7190 = vmatpush3.msra.mxu1 %v9475_v58 }
0x2395   :  { %7191 = vmatprep.subr.mxu1 %v7694_v23 }
0x2396   :  { %7192 = vmatpush3.msra.mxu1 %v9482_v54 }
0x2397   :  { %7193 = vmatprep.subr.mxu1 %v7694_v23 }
0x2398   :  { %7194 = vmatpush3.msra.mxu1 %v9489_v33 }
0x2399   :  { %7195 = vmatprep.subr.mxu1 %v7694_v23 }
0x239a   :  { %7196 = vmatpush3.msra.mxu1 %v9496_v35 }
0x239b   :  { %7197 = vmatprep.subr.mxu1 %v7694_v23 }
0x239c   :  { %7198 = vmatpush3.msra.mxu1 %v9503_v48 }
0x239d   :  { %7199 = vmatprep.subr.mxu1 %v7694_v23 }
0x239e   :  { %7200 = vmatpush3.msra.mxu1 %v9510_v17 }
0x239f   :  { %7201 = vmatprep.subr.mxu1 %v7694_v23 }
0x23a0   :  { %7202 = vmatpush3.msra.mxu1 %v9517_v3 }
0x23a1   :  { %7204 = vmatmul.mubr.msk.f32.vlgmr.msra.gmra.mxu1 %vm329_vm3, %v9126_v45  ;;  %7236 = vmatprep.subr.mxu1 %v7694_v23  ;;  %v9536_v45 = vld [vmem:[%s9831_s8 + $0x10] sm:$0xff] }
0x23a2   :  { %7237 = vmatpush3.msra.mxu1 %v9526_v24  ;;  %7244 = vmatprep.mubr.msk.f32.mxu1 %vm7695_vm1, %v7694_v23  ;;  %v4819_v40 = vpop.permute.xlu0 %4818 }
0x23a3   :  { %7238 = vmatprep.subr.mxu1 %v7694_v23  ;;  %7215 = vmatmul.mubr.msk.f32.vlgmr.msra.gmra.mxu0 %vm291_vm2, %v4819_v40 }
0x23a4   :  { %7239 = vmatpush3.msra.mxu1 %v9536_v45  ;;  %7218 = vmatpush3.msra.mxu0 %v9363_v55 }
0x23a5   :  { %7233 = vmatprep.mubr.msk.f32.mxu0 %vm7695_vm1, %v7694_v23  ;;  %7219 = vmatprep.subr.mxu0 %v7694_v23 }
0x23a6   :  { %7240 = vmatprep.subr.mxu1 %v7694_v23  ;;  %7220 = vmatpush3.msra.mxu0 %v9373_v61 }
0x23a7   :  { %7241 = vmatpush3.msra.mxu1 %v9548_v21  ;;  %7221 = vmatprep.subr.mxu0 %v7694_v23 }
0x23a8   :  { %7242 = vmatprep.subr.mxu1 %v7694_v23  ;;  %7222 = vmatpush3.msra.mxu0 %v9382_v62 }
0x23a9   :  { %7243 = vmatpush3.msra.mxu1 %v9557_v28  ;;  %7223 = vmatprep.subr.mxu0 %v7694_v23 }
0x23aa   :  { %7247 = vmatprep.subr.mxu1 %v7694_v23  ;;  %7224 = vmatpush3.msra.mxu0 %v9391_v52 }
0x23ab   :  { %7225 = vmatprep.subr.mxu0 %v7694_v23 }
0x23ac   :  { %7226 = vmatpush3.msra.mxu0 %v9398_v6 }
0x23ad   :  { %7227 = vmatprep.subr.mxu0 %v7694_v23 }
0x23ae   :  { %7228 = vmatpush3.msra.mxu0 %v9405_v26 }
0x23af   :  { %7229 = vmatprep.subr.mxu0 %v7694_v23 }
0x23b0   :  { %7230 = vmatpush3.msra.mxu0 %v9412_v42 }
0x23b1   :  { %7231 = vmatprep.subr.mxu0 %v7694_v23 }
0x23b2   :  { %7232 = vmatpush3.msra.mxu0 %v9419_v41 }
0x23b3   :  { %7234 = vmatmul.mubr.msk.f32.vlgmr.msra.gmra.mxu0 %vm329_vm3, %v9077_v16  ;;  %7266 = vmatprep.subr.mxu0 %v7694_v23  ;;  %v9593_v16 = vld [vmem:[%s9831_s8 + $0x28] sm:$0xff] }
0x23b4   :  { %7267 = vmatpush3.msra.mxu0 %v9577_v47  ;;  %7274 = vmatprep.mubr.msk.f32.mxu0 %vm7695_vm1, %v7694_v23 }
0x23b5   :  { %7268 = vmatprep.subr.mxu0 %v7694_v23 }
0x23b6   :  { %7269 = vmatpush3.msra.mxu0 %v9586_v11 }
0x23b7   :  { %7270 = vmatprep.subr.mxu0 %v7694_v23 }
0x23b8   :  { %7271 = vmatpush3.msra.mxu0 %v9593_v16 }
0x23b9   :  { %7272 = vmatprep.subr.mxu0 %v7694_v23 }
0x23ba   :  { %7273 = vmatpush3.msra.mxu0 %v9600_v56 }
0x23bb   :  { %7277 = vmatprep.subr.mxu0 %v7694_v23 }
0x2451   :  { %v4718_v15 = vpop.f32.mrf.mxu1 }
0x2452   :  { %v4722_v14 = vadd.f32 %v4718_v15, %v4644_v12 }
0x2453   :  { %v7186_v2 = vpop.f32.mrf.mxu1 }
0x2454   :  { %7572 = vtanh.f32 %v4722_v14  ;;  %v5906_v34 = vmul.f32 -1.442695, %v4722_v14 }
0x2461   :  { %v7573_v8 = vpop.eup %7572  ;;  %v4813_v59 = vpop.f32.mrf.mxu1 }
0x2462   :  { %v4814_v18 = vadd.f32 %v9614_v43, %v4813_v59  ;;  %4732 = vrot.lane.b32.xlu1 %v7573_v8, %s7697_s29 }
0x2463   :  { %v7205_v36 = vpop.f32.mrf.mxu1  ;;  %v4888_v22 = vpop.f32.mrf.mxu0 }
0x2464   :  { %v4892_v63 = vadd.f32 %v4888_v22, %v4814_v18 }
0x2465   :  { %v7216_v25 = vpop.f32.mrf.mxu0 }
0x2466   :  { %7574 = vtanh.f32 %v4892_v63  ;;  %v5909_v44 = vmul.f32 -1.442695, %v4892_v63 }
0x2467   :  { %7576 = vpow2.f32 %v5906_v34 }
0x2468   :  { %7578 = vpow2.f32 %v5909_v44 }
0x2473   :  { %v7575_v51 = vpop.eup %7574  ;;  %v9618_v27 = vpop.f32.mrf.mxu0 }
0x2474   :  { %4902 = vrot.lane.b32.xlu0 %v7575_v51, %s7697_s29  ;;  %v7577_v5 = vpop.eup %7576 }
0x2475   :  { %v7235_v29 = vpop.f32.mrf.mxu0  ;;  %v4726_v53 = vadd.f32 1.0, %v7577_v5  ;;  %v7579_v60 = vpop.eup %7578 }
0x2476   :  { %v4896_v12 = vadd.f32 1.0, %v7579_v60 }
0x2477   :  { %7580 = vrcp.f32 %v4726_v53 }
0x2478   :  { %7582 = vrcp.f32 %v4896_v12 }
0x2484   :  { %v7581_v39 = vpop.eup %7580 }
0x2485   :  { %v7583_v15 = vpop.eup %7582  ;;  %v4730_v14 = vmul.f32 %v7581_v39, %v9445_v30 }
0x2486   :  { %v4900_v22 = vmul.f32 %v7583_v15, %v9450_v37 }
0x24d4   :  { %v4733_v57 = vpop.permute.xlu1 %4732 }
0x24d5   :  { %v4735_v40 = vmul.f32 %v7581_v39, %v4733_v57 }
0x24d7   :  { %4737 = vrot.lane.b32.xlu1 %v4735_v40, %s7696_s25 }
0x24e6   :  { %v4903_v2 = vpop.permute.xlu0 %4902 }
0x24e7   :  { %v4905_v8 = vmul.f32 %v7583_v15, %v4903_v2 }
0x24e9   :  { %4907 = vrot.lane.b32.xlu0 %v4905_v8, %s7696_s25 }
0x2549   :  { %v4738_v59 = vpop.permute.xlu1 %4737 }
0x254a   :  { %v9624_v18 = vadd.f32 %v4738_v59, %v4730_v14 }
0x254c   :  { %7584 = vtanh.f32 %v9624_v18 }
0x2559   :  { %v7585_v36 = vpop.eup %7584 }
0x255a   :  { %4743 = vrot.lane.b32.xlu1 %v7585_v36, %s7697_s29 }
0x255b   :  { %v4908_v63 = vpop.permute.xlu0 %4907 }
0x255c   :  { %v9629_v25 = vadd.f32 %v4908_v63, %v4900_v22 }
0x255e   :  { %7586 = vtanh.f32 %v9629_v25 }
0x256b   :  { %v7587_v51 = vpop.eup %7586 }
0x256c   :  { %4913 = vrot.lane.b32.xlu0 %v7587_v51, %s7697_s29 }
0x25cc   :  { %v4744_v29 = vpop.permute.xlu1 %4743 }
0x25cd   :  { %v4746_v30 = vmul.f32 %v7581_v39, %v4744_v29 }
0x25cf   :  { %4988 = vrot.lane.b32.xlu1 %v4746_v30, %s7696_s25 }
0x25de   :  { %v4914_v34 = vpop.permute.xlu0 %4913 }
0x25df   :  { %v9634_v5 = vmul.f32 %v7583_v15, %v4914_v34 }
0x25e1   :  { %5158 = vrot.lane.b32.xlu0 %v9634_v5, %s7696_s25 }
0x2641   :  { %v9638_v44 = vpop.permute.xlu1 %4988 }
0x2642   :  { %7245 = vmatmul.mubr.msk.f32.vlgmr.msra.gmra.mxu1 %vm291_vm2, %v9638_v44 }
0x2643   :  { %7248 = vmatpush3.msra.mxu1 %v9466_v49  ;;  %7263 = vmatprep.mubr.msk.f32.mxu1 %vm7695_vm1, %v7694_v23 }
0x2644   :  { %7249 = vmatprep.subr.mxu1 %v7694_v23 }
0x2645   :  { %7250 = vmatpush3.msra.mxu1 %v9475_v58 }
0x2646   :  { %7251 = vmatprep.subr.mxu1 %v7694_v23 }
0x2647   :  { %7252 = vmatpush3.msra.mxu1 %v9482_v54 }
0x2648   :  { %7253 = vmatprep.subr.mxu1 %v7694_v23 }
0x2649   :  { %7254 = vmatpush3.msra.mxu1 %v9489_v33 }
0x264a   :  { %7255 = vmatprep.subr.mxu1 %v7694_v23 }
0x264b   :  { %7256 = vmatpush3.msra.mxu1 %v9496_v35 }
0x264c   :  { %7257 = vmatprep.subr.mxu1 %v7694_v23 }
0x264d   :  { %7258 = vmatpush3.msra.mxu1 %v9503_v48 }
0x264e   :  { %7259 = vmatprep.subr.mxu1 %v7694_v23 }
0x264f   :  { %7260 = vmatpush3.msra.mxu1 %v9510_v17 }
0x2650   :  { %7261 = vmatprep.subr.mxu1 %v7694_v23 }
0x2651   :  { %7262 = vmatpush3.msra.mxu1 %v9517_v3 }
0x2652   :  { %7264 = vmatmul.mubr.msk.f32.vlgmr.msra.gmra.mxu1 %vm329_vm3, %v9011_v9  ;;  %7296 = vmatprep.subr.mxu1 %v7694_v23 }
0x2653   :  { %7297 = vmatpush3.msra.mxu1 %v9526_v24  ;;  %7304 = vmatprep.mubr.msk.f32.mxu1 %vm7695_vm1, %v7694_v23  ;;  %v5159_v37 = vpop.permute.xlu0 %5158 }
0x2654   :  { %7298 = vmatprep.subr.mxu1 %v7694_v23  ;;  %7275 = vmatmul.mubr.msk.f32.vlgmr.msra.gmra.mxu0 %vm291_vm2, %v5159_v37 }
0x2655   :  { %7299 = vmatpush3.msra.mxu1 %v9536_v45  ;;  %7278 = vmatpush3.msra.mxu0 %v9363_v55 }
0x2656   :  { %7293 = vmatprep.mubr.msk.f32.mxu0 %vm7695_vm1, %v7694_v23  ;;  %7279 = vmatprep.subr.mxu0 %v7694_v23 }
0x2657   :  { %7300 = vmatprep.subr.mxu1 %v7694_v23  ;;  %7280 = vmatpush3.msra.mxu0 %v9373_v61 }
0x2658   :  { %7301 = vmatpush3.msra.mxu1 %v9548_v21  ;;  %7281 = vmatprep.subr.mxu0 %v7694_v23 }
0x2659   :  { %7302 = vmatprep.subr.mxu1 %v7694_v23  ;;  %7282 = vmatpush3.msra.mxu0 %v9382_v62 }
0x265a   :  { %7303 = vmatpush3.msra.mxu1 %v9557_v28  ;;  %7283 = vmatprep.subr.mxu0 %v7694_v23 }
0x265b   :  { %7307 = vmatprep.subr.mxu1 %v7694_v23  ;;  %7284 = vmatpush3.msra.mxu0 %v9391_v52 }
0x265c   :  { %7285 = vmatprep.subr.mxu0 %v7694_v23 }
0x265d   :  { %7286 = vmatpush3.msra.mxu0 %v9398_v6 }
0x265e   :  { %7287 = vmatprep.subr.mxu0 %v7694_v23 }
0x265f   :  { %7288 = vmatpush3.msra.mxu0 %v9405_v26 }
0x2660   :  { %7289 = vmatprep.subr.mxu0 %v7694_v23 }
0x2661   :  { %7290 = vmatpush3.msra.mxu0 %v9412_v42 }
0x2662   :  { %7291 = vmatprep.subr.mxu0 %v7694_v23 }
0x2663   :  { %7292 = vmatpush3.msra.mxu0 %v9419_v41 }
0x2664   :  { %7294 = vmatmul.mubr.msk.f32.vlgmr.msra.gmra.mxu0 %vm329_vm3, %v8929_v38  ;;  %7326 = vmatprep.subr.mxu0 %v7694_v23  ;;  %v4984_v38 = vadd.f32 %v9607_v1, %v9618_v27 }
0x2665   :  { %7327 = vmatpush3.msra.mxu0 %v9577_v47  ;;  %7334 = vmatprep.mubr.msk.f32.mxu0 %vm7695_vm1, %v7694_v23 }
0x2666   :  { %7328 = vmatprep.subr.mxu0 %v7694_v23 }
0x2667   :  { %7329 = vmatpush3.msra.mxu0 %v9586_v11 }
0x2668   :  { %7330 = vmatprep.subr.mxu0 %v7694_v23 }
0x2669   :  { %7331 = vmatpush3.msra.mxu0 %v9593_v16 }
0x266a   :  { %7332 = vmatprep.subr.mxu0 %v7694_v23 }
0x266b   :  { %7333 = vmatpush3.msra.mxu0 %v9600_v56 }
0x2702   :  { %v5058_v9 = vpop.f32.mrf.mxu1 }
0x2703   :  { %v5062_v55 = vadd.f32 %v5058_v9, %v4984_v38 }
0x2704   :  { %v7246_v61 = vpop.f32.mrf.mxu1 }
0x2705   :  { %7588 = vtanh.f32 %v5062_v55  ;;  %v5912_v47 = vmul.f32 -1.442695, %v5062_v55 }
0x2712   :  { %v7589_v62 = vpop.eup %7588  ;;  %v5153_v52 = vpop.f32.mrf.mxu1 }
0x2713   :  { %v5154_v6 = vadd.f32 %v9614_v43, %v5153_v52  ;;  %5072 = vrot.lane.b32.xlu1 %v7589_v62, %s7697_s29 }
0x2714   :  { %v7265_v26 = vpop.f32.mrf.mxu1  ;;  %v5228_v42 = vpop.f32.mrf.mxu0 }
0x2715   :  { %v5232_v41 = vadd.f32 %v5228_v42, %v5154_v6 }
0x2716   :  { %v7276_v24 = vpop.f32.mrf.mxu0 }
0x2717   :  { %7590 = vtanh.f32 %v5232_v41  ;;  %v5915_v16 = vmul.f32 -1.442695, %v5232_v41 }
0x2718   :  { %7592 = vpow2.f32 %v5912_v47 }
0x2719   :  { %7594 = vpow2.f32 %v5915_v16 }
0x2724   :  { %v7591_v45 = vpop.eup %7590  ;;  %v5323_v21 = vpop.f32.mrf.mxu0 }
0x2725   :  { %5242 = vrot.lane.b32.xlu0 %v7591_v45, %s7697_s29  ;;  %v7593_v11 = vpop.eup %7592 }
0x2726   :  { %v7295_v28 = vpop.f32.mrf.mxu0  ;;  %v5066_v56 = vadd.f32 1.0, %v7593_v11  ;;  %v7595_v27 = vpop.eup %7594 }
0x2727   :  { %v5236_v57 = vadd.f32 1.0, %v7595_v27 }
0x2728   :  { %7596 = vrcp.f32 %v5066_v56 }
0x2729   :  { %7598 = vrcp.f32 %v5236_v57  ;;  %v5670_v57 = vld [vmem:[%s9833_s10 + $0x10] sm:$0xff] }
0x2735   :  { %v7597_v53 = vpop.eup %7596 }
0x2736   :  { %v7599_v40 = vpop.eup %7598  ;;  %v5070_v2 = vmul.f32 %v7597_v53, %v9624_v18 }
0x2737   :  { %v5240_v36 = vmul.f32 %v7599_v40, %v9629_v25 }
0x2785   :  { %v5073_v60 = vpop.permute.xlu1 %5072 }
0x2786   :  { %v5075_v39 = vmul.f32 %v7597_v53, %v5073_v60  ;;  %v5675_v60 = vld [vmem:[%s9833_s10 + $0x38] sm:$0xff] }
0x2787   :  { %7337 = vmatprep.subr.mxu0 %v5675_v60 }
0x2788   :  { %5077 = vrot.lane.b32.xlu1 %v5075_v39, %s7696_s25  ;;  %v5674_v39 = vld [vmem:[%s9833_s10 + $0x30] sm:$0xff] }
0x2797   :  { %v5243_v12 = vpop.permute.xlu0 %5242 }
0x2798   :  { %v5245_v15 = vmul.f32 %v7599_v40, %v5243_v12 }
0x279a   :  { %5247 = vrot.lane.b32.xlu0 %v5245_v15, %s7696_s25 }
0x27fa   :  { %v5078_v8 = vpop.permute.xlu1 %5077 }
0x27fb   :  { %v9710_v14 = vadd.f32 %v5078_v8, %v5070_v2 }
0x27fd   :  { %7600 = vtanh.f32 %v9710_v14 }
0x280a   :  { %v7601_v59 = vpop.eup %7600 }
0x280b   :  { %5083 = vrot.lane.b32.xlu1 %v7601_v59, %s7697_s29 }
0x280c   :  { %v5248_v22 = vpop.permute.xlu0 %5247 }
0x280d   :  { %v9715_v63 = vadd.f32 %v5248_v22, %v5240_v36 }
0x280f   :  { %7602 = vtanh.f32 %v9715_v63 }
0x281c   :  { %v7603_v51 = vpop.eup %7602 }
0x281d   :  { %5253 = vrot.lane.b32.xlu0 %v7603_v51, %s7697_s29 }
0x287d   :  { %v5084_v29 = vpop.permute.xlu1 %5083 }
0x287e   :  { %v5086_v18 = vmul.f32 %v7597_v53, %v5084_v29 }
0x2880   :  { %5328 = vrot.lane.b32.xlu1 %v5086_v18, %s7696_s25 }
0x288f   :  { %v5254_v30 = vpop.permute.xlu0 %5253 }
0x2890   :  { %v9720_v34 = vmul.f32 %v7599_v40, %v5254_v30 }
0x2892   :  { %5498 = vrot.lane.b32.xlu0 %v9720_v34, %s7696_s25 }
0x28f2   :  { %v9724_v37 = vpop.permute.xlu1 %5328 }
0x28f3   :  { %7305 = vmatmul.mubr.msk.f32.vlgmr.msra.gmra.mxu1 %vm291_vm2, %v9724_v37 }
0x28f4   :  { %7308 = vmatpush3.msra.mxu1 %v9466_v49  ;;  %7323 = vmatprep.mubr.msk.f32.mxu1 %vm7695_vm1, %v7694_v23 }
0x28f5   :  { %7309 = vmatprep.subr.mxu1 %v7694_v23 }
0x28f6   :  { %7310 = vmatpush3.msra.mxu1 %v9475_v58  ;;  %v5324_v58 = vadd.f32 %v9607_v1, %v5323_v21 }
0x28f7   :  { %7311 = vmatprep.subr.mxu1 %v7694_v23 }
0x28f8   :  { %7312 = vmatpush3.msra.mxu1 %v9482_v54 }
0x28f9   :  { %7313 = vmatprep.subr.mxu1 %v7694_v23 }
0x28fa   :  { %7314 = vmatpush3.msra.mxu1 %v9489_v33 }
0x28fb   :  { %7315 = vmatprep.subr.mxu1 %v7694_v23 }
0x28fc   :  { %7316 = vmatpush3.msra.mxu1 %v9496_v35 }
0x28fd   :  { %7317 = vmatprep.subr.mxu1 %v7694_v23 }
0x28fe   :  { %7318 = vmatpush3.msra.mxu1 %v9503_v48 }
0x28ff   :  { %7319 = vmatprep.subr.mxu1 %v7694_v23 }
0x2900   :  { %7320 = vmatpush3.msra.mxu1 %v9510_v17 }
0x2901   :  { %7321 = vmatprep.subr.mxu1 %v7694_v23 }
0x2902   :  { %7322 = vmatpush3.msra.mxu1 %v9517_v3 }
0x2903   :  { %7324 = vmatmul.mubr.msk.f32.vlgmr.msra.gmra.mxu1 %vm329_vm3, %v8920_v46 }
0x2904   :  { %v5499_v49 = vpop.permute.xlu0 %5498 }
0x2905   :  { %7335 = vmatmul.mubr.msk.f32.vlgmr.msra.gmra.mxu0 %vm291_vm2, %v5499_v49 }
0x2906   :  { %7338 = vmatpush3.msra.mxu0 %v5675_v60 }
0x2907   :  { %7339 = vmatprep.subr.mxu0 %v5674_v39 }
0x2908   :  { %7340 = vmatpush3.msra.mxu0 %v5674_v39 }
0x29b3   :  { %v5398_v54 = vpop.f32.mrf.mxu1 }
0x29b4   :  { %v5402_v33 = vadd.f32 %v5398_v54, %v5324_v58 }
0x29b5   :  { %v7306_v35 = vpop.f32.mrf.mxu1 }
0x29b6   :  { %7604 = vtanh.f32 %v5402_v33  ;;  %v5918_v55 = vmul.f32 -1.442695, %v5402_v33 }
0x29c3   :  { %v7605_v48 = vpop.eup %7604  ;;  %v5493_v25 = vpop.f32.mrf.mxu1 }
0x29c4   :  { %v5494_v17 = vadd.f32 %v9614_v43, %v5493_v25  ;;  %5412 = vrot.lane.b32.xlu0 %v7605_v48, %s7697_s29 }
0x29c5   :  { %v7325_v23 = vpop.f32.mrf.mxu1  ;;  %v5568_v3 = vpop.f32.mrf.mxu0 }
0x29c6   :  { %v5572_v38 = vadd.f32 %v5568_v3, %v5494_v17 }
0x29c7   :  { %v7336_v9 = vpop.f32.mrf.mxu0 }
0x29c8   :  { %7606 = vtanh.f32 %v5572_v38  ;;  %v5921_v61 = vmul.f32 -1.442695, %v5572_v38 }
0x29c9   :  { %7608 = vpow2.f32 %v5918_v55 }
0x29ca   :  { %7610 = vpow2.f32 %v5921_v61 }
0x29d5   :  { %v7607_v46 = vpop.eup %7606 }
0x29d6   :  { %5582 = vrot.lane.b32.xlu1 %v7607_v46, %s7697_s29  ;;  %v7609_v1 = vpop.eup %7608 }
0x29d7   :  { %v5406_v62 = vadd.f32 1.0, %v7609_v1  ;;  %v7611_v52 = vpop.eup %7610 }
0x29d8   :  { %v5576_v42 = vadd.f32 1.0, %v7611_v52 }
0x29d9   :  { %7612 = vrcp.f32 %v5406_v62 }
0x29da   :  { %7614 = vrcp.f32 %v5576_v42 }
0x29e6   :  { %v7613_v6 = vpop.eup %7612 }
0x29e7   :  { %v7615_v41 = vpop.eup %7614  ;;  %v5410_v21 = vmul.f32 %v7613_v6, %v9710_v14 }
0x29e8   :  { %v5580_v16 = vmul.f32 %v7615_v41, %v9715_v63 }
0x2a36   :  { %v5413_v43 = vpop.permute.xlu0 %5412 }
0x2a37   :  { %v5415_v26 = vmul.f32 %v7613_v6, %v5413_v43 }
0x2a39   :  { %5417 = vrot.lane.b32.xlu0 %v5415_v26, %s7696_s25 }
0x2a48   :  { %v5583_v24 = vpop.permute.xlu1 %5582 }
0x2a49   :  { %v5585_v45 = vmul.f32 %v7615_v41, %v5583_v24 }
0x2a4b   :  { %5587 = vrot.lane.b32.xlu1 %v5585_v45, %s7696_s25 }
0x2aab   :  { %v5418_v28 = vpop.permute.xlu0 %5417 }
0x2aac   :  { %v5420_v47 = vadd.f32 %v5418_v28, %v5410_v21 }
0x2aae   :  { %7616 = vtanh.f32 %v5420_v47 }
0x2abb   :  { %v7617_v11 = vpop.eup %7616 }
0x2abc   :  { %5423 = vrot.lane.b32.xlu0 %v7617_v11, %s7697_s29 }
0x2abd   :  { %v5588_v56 = vpop.permute.xlu1 %5587 }
0x2abe   :  { %v5590_v27 = vadd.f32 %v5588_v56, %v5580_v16 }
0x2ac0   :  { %5609 = vrot.lane.b32.xlu0 %v9634_v5, %s7697_s29  ;;  %7618 = vtanh.f32 %v5590_v27  ;;  %v5672_v5 = vld [vmem:[%s9833_s10 + $0x20] sm:$0xff] }
0x2ac4   :  { %5629 = vrot.lane.b32.xlu0 %v9140_v20, %s7697_s29  ;;  %v5673_v20 = vld [vmem:[%s9833_s10 + $0x28] sm:$0xff] }
0x2ac5   :  { %7341 = vmatprep.subr.mxu0 %v5673_v20 }
0x2ac6   :  { %7342 = vmatpush3.msra.mxu0 %v5673_v20 }
0x2ac7   :  { %7343 = vmatprep.subr.mxu0 %v5672_v5 }
0x2ac8   :  { %7344 = vmatpush3.msra.mxu0 %v5672_v5 }
0x2acd   :  { %v7619_v53 = vpop.eup %7618 }
0x2ace   :  { %5593 = vrot.lane.b32.xlu1 %v7619_v53, %s7697_s29 }
0x2ad2   :  { %5604 = vrot.lane.b32.xlu1 %v9720_v34, %s7697_s29 }
0x2ad6   :  { %5624 = vrot.lane.b32.xlu1 %v9238_v31, %s7697_s29  ;;  %v5671_v31 = vld [vmem:[%s9833_s10 + $0x18] sm:$0xff] }
0x2ad7   :  { %7345 = vmatprep.subr.mxu0 %v5671_v31 }
0x2ad8   :  { %7346 = vmatpush3.msra.mxu0 %v5671_v31 }
0x2ad9   :  { %7347 = vmatprep.subr.mxu0 %v5670_v57 }
0x2ada   :  { %5614 = vrot.lane.b32.xlu1 %v9455_v4, %s7697_s29  ;;  %7348 = vmatpush3.msra.mxu0 %v5670_v57  ;;  %v5669_v4 = vld [vmem:[%s9833_s10 + $0x8] sm:$0xff] }
0x2adb   :  { %7349 = vmatprep.subr.mxu0 %v5669_v4 }
0x2adc   :  { %7350 = vmatpush3.msra.mxu0 %v5669_v4 }
0x2ade   :  { %5619 = vrot.lane.b32.xlu1 %v9326_v50, %s7697_s29 }
0x2ae2   :  { %5637 = vrot.lane.b32.xlu1 %v9013_v13, %s7697_s29  ;;  %v5668_v13 = vld [vmem:[%s9833_s10] sm:$0xff] }
0x2ae3   :  { %7351 = vmatprep.subr.mxu0 %v5668_v13 }
0x2ae4   :  { %7352 = vmatpush3.msra.mxu0 %v5668_v13 }
0x2b2e   :  { %v5424_v12 = vpop.permute.xlu0 %5423 }
0x2b2f   :  { %v5426_v15 = vmul.f32 %v7613_v6, %v5424_v12 }
0x2b32   :  { %v5610_v14 = vpop.permute.xlu0 %5609 }
0x2b33   :  { %v5612_v63 = vsel %vm291_vm2, %v9242_v0, %v5610_v14 }
0x2b34   :  { %v5645_v49 = vrot.slane %v5612_v63, 4 }
0x2b36   :  { %v5630_v36 = vpop.permute.xlu0 %5629 }
0x2b37   :  { %v5632_v0 = vsel %vm291_vm2, %v9724_v37, %v5630_v36  ;;  %v5922_v37 = vld [vmem:[%s9834_s11] ss:$0 sm:$0xff] }
0x2b38   :  { %v5654_v23 = vrot.slane %v5632_v0, 4 }
0x2b40   :  { %v5594_v50 = vpop.permute.xlu1 %5593 }
0x2b41   :  { %v5596_v40 = vmul.f32 %v7615_v41, %v5594_v50 }
0x2b43   :  { %5599 = vrot.lane.b32.xlu0 %v5596_v40, %s7697_s29  ;;  %s7699_s29 = smov [#allocation2]  }
0x2b44   :  { %v5605_v2 = vpop.permute.xlu1 %5604  ;;  %s5772_s4 = sshll.u32 %s7699_s29, 4  ;;  %s5773_s4 = int_to_ptr.vmem [resolvable:$true] %s5772_s4 }
0x2b45   :  { %v5607_v22 = vsel %vm291_vm2, %v9144_v10, %v5605_v2  ;;  %s7672_s21 = scalar_lea.vmem %s5773_s4, 256  ;;  %p7677_p1 = scmp.lt.s32.totalorder %s5773_s4, %s5773_s4 }
0x2b46   :  { %v5642_v30 = vrot.slane %v5607_v22, 6  ;;  %p7673_p0 = scmp.ne.s32.totalorder %s5773_s4, %s7672_s21  ;;  %p7678_p2 = scmp.lt.s32.totalorder %s7672_s21, %s7672_s21 }
0x2b47   :  { %5634 = vrot.lane.b32.xlu0 %v5426_v15, %s7696_s25 }
0x2b48   :  { %v5625_v8 = vpop.permute.xlu1 %5624  ;;  %p7679_p3 = por %p7678_p2, %p7677_p1 }
0x2b49   :  { %v5627_v29 = vsel %vm291_vm2, %v9638_v44, %v5625_v8 }
0x2b4a   :  { %v5651_v54 = vrot.slane %v5627_v29, 6  ;;  %p7680_p4 = pnand %p7679_p3, %p7673_p0 }
0x2b4c   :  { %v5615_v59 = vpop.permute.xlu1 %5614 }
0x2b4d   :  { %v5617_v18 = vsel %vm291_vm2, %v9330_v19, %v5615_v59 }
0x2b4e   :  { %v5648_v44 = vrot.slane %v5617_v18, 2 }
0x2b50   :  { %v5620_v51 = vpop.permute.xlu1 %5619 }
0x2b51   :  { %v5622_v58 = vsel %vm291_vm2, %v9459_v32, %v5620_v51 }
0x2b52   :  { %v5665_v35 = vsel %vm5659_vm4, %v5622_v58, %v5651_v54 }
0x2b54   :  { %v5638_v48 = vpop.permute.xlu1 %5637 }
0x2bb5   :  { %v5600_v34 = vpop.permute.xlu0 %5599 }
0x2bb6   :  { %v5602_v10 = vsel %vm291_vm2, %v9044_v7, %v5600_v34  ;;  %v5666_v7 = vsel %vm5661_vm5, %v5665_v35, %v5654_v23 }
0x2bb7   :  { %v5660_v33 = vsel %vm5659_vm4, %v5602_v10, %v5642_v30 }
0x2bb8   :  { %v5662_v19 = vsel %vm5661_vm5, %v5660_v33, %v5645_v49 }
0x2bb9   :  { %v5635_v25 = vpop.permute.xlu0 %5634  ;;  %v5664_v17 = vsel %vm5663_vm6, %v5662_v19, %v5648_v44 }
0x2bba   :  { %v5640_v3 = vsel %vm291_vm2, %v5635_v25, %v5638_v48  ;;  %7353 = vmatprep.mubr.msk.f32.mxu0 %vm329_vm3, %v5664_v17 }
0x2bbb   :  { %v5657_v32 = vrot.slane %v5640_v3, 2 }
0x2bbd   :  { %v5667_v38 = vsel %vm5663_vm6, %v5666_v7, %v5657_v32 }
0x2bbe   :  { %7354 = vmatmul.mubr.msk.f32.vlgmr.msra.gmra.mxu0 %vm329_vm3, %v5667_v38 }
0x2c7e   :  { %v7355_v9 = vpop.f32.mrf.mxu0 }
0x2c7f   :  { %v5761_v46 = vadd.f32 %v7355_v9, %v5922_v37 }
0x2c80   :  { %v5755_v55 = vpop.f32.mrf.mxu0 }
0x2c81   :  { %5766 = vst.msk [vmem:[#allocation2 + $0x8] sm:$0xff] %vm5764_vm7, %v5761_v46  ;;  %v5756_v1 = vadd.f32 %v5922_v37, %v5755_v55 }
0x2c83   :  { %5765 = vst.msk [vmem:[#allocation2] sm:$0xff] %vm5764_vm7, %v5756_v1 }
0x2c84   :  { %7683 = shalt.err (!%p7680_p4)
}
0x2c85   :  { %s7700_s22 = smov 128   ;;  %s7701_s0 = smov 8  }
0x2c86   :  { %5778 = dma.vmem_to_hbm [thread:$0]  %s5773_s4, 256, %s9835_s12, [#allocation3], %s7700_s22, %s7700_s22, %s7701_s0  }
0x2c87   :  { %7692 = dma.done.wait [#allocation3], 256  }
0x2c88   :  { %7693 = vsyncadd [#allocation3], 4294967040 }
0x2c89   :  { %5782 = vsyncpa [#allocation3], 1 }

</bundles_post_ra>
